<compile_context>
chip_gen: v7x
topology: tpu7x:2x2x1
jax: 0.10.0
libtpu: 0.0.40
codegen_flags: <defaults>
</compile_context>

<pallas_src>
import functools
import math

import jax
import jax.numpy as jnp
from jax.experimental import pallas as pl
from jax.experimental.pallas import tpu as pltpu

F32 = jnp.float32
COMPUTE = jnp.bfloat16          # MXU operand / stored-activation dtype
VMEM_LIMIT = 32 * 1024 * 1024   # explicit scoped-VMEM budget (fits v5e/v6e/v7x)


# --------------------------------------------------------------------------
# tile-size helpers (128-lane aligned, small enough for v7x's 64 MiB VMEM)
# --------------------------------------------------------------------------
def _row_tile(m, target=256):
    """Sublane-dim tile: divisor of m, multiple of 8, at most target; else full m."""
    if m <= target:
        return m
    for t in (target, 128, 64, 32, 16, 8):
        if m % t == 0:
            return t
    return m


def _col_tile(n, target=256):
    """Lane-dim tile: multiple of 128 dividing n, at most target; else full n."""
    if n <= 128 or n % 128 != 0:
        return n
    t = (target // 128) * 128
    while t > 128 and n % t != 0:
        t -= 128
    return t


# --------------------------------------------------------------------------
# Tiled linear (+ fused bias / activation)
# --------------------------------------------------------------------------
def _linear_kernel(x_ref, w_ref, b_ref, o_ref, acc_ref, *, act):
    k = pl.program_id(2)

    @pl.when(k == 0)
    def _():
        acc_ref[...] = jnp.zeros_like(acc_ref)

    acc_ref[...] += jnp.dot(x_ref[...], w_ref[...], preferred_element_type=F32)

    @pl.when(k == pl.num_programs(2) - 1)
    def _():
        y = acc_ref[...] + b_ref[...]
        if act == "relu":
            y = jnp.maximum(y, 0.0)
        elif act == "silu":
            y = y * jax.nn.sigmoid(y)
        o_ref[...] = y.astype(o_ref.dtype)


def linear(x2d, w, b, act="none"):
    """x2d: (M, K); w: (K, Nout) (already transposed vs. torch nn.Linear); b: (Nout,)."""
    M, K = x2d.shape
    Kw, Nout = w.shape
    assert Kw == K
    tm = _row_tile(M, 256)
    tn = _col_tile(Nout, 256)
    tk = _col_tile(K, 256)
    return pl.pallas_call(
        functools.partial(_linear_kernel, act=act),
        out_shape=jax.ShapeDtypeStruct((M, Nout), COMPUTE),
        grid=(M // tm, Nout // tn, K // tk),
        in_specs=[
            pl.BlockSpec((tm, tk), lambda i, j, k: (i, k)),
            pl.BlockSpec((tk, tn), lambda i, j, k: (k, j)),
            pl.BlockSpec((1, tn), lambda i, j, k: (0, j)),
        ],
        out_specs=pl.BlockSpec((tm, tn), lambda i, j, k: (i, j)),
        scratch_shapes=[pltpu.VMEM((tm, tn), F32)],
        compiler_params=pltpu.CompilerParams(
            dimension_semantics=("parallel", "parallel", "arbitrary"),
            vmem_limit_bytes=VMEM_LIMIT),
    )(x2d.astype(COMPUTE), w.astype(COMPUTE), b.reshape(1, Nout).astype(F32))


# --------------------------------------------------------------------------
# Fused residual-add + LayerNorm (row-tiled)
# --------------------------------------------------------------------------
def _add_ln_kernel(x_ref, r_ref, g_ref, b_ref, o_ref, *, eps):
    x = x_ref[...].astype(F32) + r_ref[...].astype(F32)
    mu = jnp.mean(x, axis=-1, keepdims=True)
    xc = x - mu
    var = jnp.mean(xc * xc, axis=-1, keepdims=True)
    y = xc * jax.lax.rsqrt(var + eps)
    o_ref[...] = (y * g_ref[...] + b_ref[...]).astype(o_ref.dtype)


def add_layernorm(x2d, r2d, g, b, eps=1e-5):
    M, H = x2d.shape
    tm = _row_tile(M, 256)
    return pl.pallas_call(
        functools.partial(_add_ln_kernel, eps=eps),
        out_shape=jax.ShapeDtypeStruct((M, H), COMPUTE),
        grid=(M // tm,),
        in_specs=[
            pl.BlockSpec((tm, H), lambda i: (i, 0)),
            pl.BlockSpec((tm, H), lambda i: (i, 0)),
            pl.BlockSpec((1, H), lambda i: (0, 0)),
            pl.BlockSpec((1, H), lambda i: (0, 0)),
        ],
        out_specs=pl.BlockSpec((tm, H), lambda i: (i, 0)),
        compiler_params=pltpu.CompilerParams(dimension_semantics=("parallel",)),
    )(x2d.astype(COMPUTE), r2d.astype(COMPUTE),
      g.reshape(1, H).astype(F32), b.reshape(1, H).astype(F32))


# --------------------------------------------------------------------------
# Attention: one batch per grid step, all heads inside the kernel,
# lane-dense (Tq, H) output, in-kernel causal mask, approx reciprocal.
# TODO(synk): add a flash-style inner Tk tiling for long sequences.
# --------------------------------------------------------------------------
def _attn_body(q, k, v, heads, scale, causal):
    Tq, H = q.shape
    hd = H // heads
    outs = []
    for h in range(heads):
        sl = slice(h * hd, (h + 1) * hd)
        s = jax.lax.dot_general(q[:, sl], k[:, sl], (((1,), (1,)), ((), ())),
                                preferred_element_type=F32) * scale      # (Tq, Tk) f32
        if causal:
            row = jax.lax.broadcasted_iota(jnp.int32, s.shape, 0)
            col = jax.lax.broadcasted_iota(jnp.int32, s.shape, 1)
            s = jnp.where(row >= col, s, -1e30)                          # mask stays f32
        s = s - jnp.max(s, axis=-1, keepdims=True)
        p = jnp.exp(s)
        p = p * pl.reciprocal(jnp.sum(p, axis=-1, keepdims=True), approx=True)
        outs.append(jnp.dot(p.astype(v.dtype), v[:, sl], preferred_element_type=F32))
    return outs[0] if heads == 1 else jnp.concatenate(outs, axis=-1)     # (Tq, H)


def _self_attn_kernel(qkv_ref, o_ref, *, heads, scale, causal):
    H = o_ref.shape[2]
    q = qkv_ref[0, :, 0:H]
    k = qkv_ref[0, :, H:2 * H]
    v = qkv_ref[0, :, 2 * H:3 * H]
    o_ref[0] = _attn_body(q, k, v, heads, scale, causal).astype(o_ref.dtype)


def _cross_attn_kernel(q_ref, kv_ref, o_ref, *, heads, scale):
    H = o_ref.shape[2]
    k = kv_ref[0, :, 0:H]
    v = kv_ref[0, :, H:2 * H]
    o_ref[0] = _attn_body(q_ref[0], k, v, heads, scale, False).astype(o_ref.dtype)


def self_attention(x, p, heads, causal):
    N, T, H = x.shape
    scale = float(H // heads) ** -0.5
    qkv = linear(x.reshape(-1, H), p["w_qkv"], p["b_qkv"]).reshape(N, T, 3 * H)
    o = pl.pallas_call(
        functools.partial(_self_attn_kernel, heads=heads, scale=scale, causal=causal),
        out_shape=jax.ShapeDtypeStruct((N, T, H), COMPUTE),
        grid=(N,),
        in_specs=[pl.BlockSpec((1, T, 3 * H), lambda b: (b, 0, 0))],
        out_specs=pl.BlockSpec((1, T, H), lambda b: (b, 0, 0)),
        compiler_params=pltpu.CompilerParams(dimension_semantics=("parallel",)),
    )(qkv)
    return linear(o.reshape(-1, H), p["wo"], p["bo"]).reshape(N, T, H)


def cross_attention(x, enc_out, p, heads):
    N, Tq, H = x.shape
    Tk = enc_out.shape[1]
    scale = float(H // heads) ** -0.5
    q = linear(x.reshape(-1, H), p["wq"], p["bq"]).reshape(N, Tq, H)
    kv = linear(enc_out.reshape(-1, H), p["w_kv"], p["b_kv"]).reshape(N, Tk, 2 * H)
    o = pl.pallas_call(
        functools.partial(_cross_attn_kernel, heads=heads, scale=scale),
        out_shape=jax.ShapeDtypeStruct((N, Tq, H), COMPUTE),
        grid=(N,),
        in_specs=[pl.BlockSpec((1, Tq, H), lambda b: (b, 0, 0)),
                  pl.BlockSpec((1, Tk, 2 * H), lambda b: (b, 0, 0))],
        out_specs=pl.BlockSpec((1, Tq, H), lambda b: (b, 0, 0)),
        compiler_params=pltpu.CompilerParams(dimension_semantics=("parallel",)),
    )(q, kv)
    return linear(o.reshape(-1, H), p["wo"], p["bo"]).reshape(N, Tq, H)


# --------------------------------------------------------------------------
# Fused nearest-token search (get_logits mode 2 + argmax), vocab-tiled.
# dist = ||w||^2 - 2 x.w  (||x||^2 dropped: constant per row; sqrt dropped: monotone).
# Ties (dist numerically ~equal) break toward the smallest vocab index.
# --------------------------------------------------------------------------
def _nearest_kernel(x_ref, w_ref, wn_ref, o_ref, best_d, best_i):
    v = pl.program_id(1)

    @pl.when(v == 0)
    def _():
        best_d[...] = jnp.full_like(best_d, jnp.inf)
        best_i[...] = jnp.zeros_like(best_i)

    xw = jax.lax.dot_general(x_ref[...], w_ref[...], (((1,), (1,)), ((), ())),
                             preferred_element_type=F32)                 # (tm, tv)
    dist = wn_ref[...] - 2.0 * xw
    tile_min = jnp.min(dist, axis=-1, keepdims=True)
    tv = dist.shape[1]
    idx = jax.lax.broadcasted_iota(jnp.int32, dist.shape, 1) + v * tv
    cand = jnp.where(dist == tile_min, idx, jnp.int32(2 ** 30))
    tile_arg = jnp.min(cand, axis=-1, keepdims=True)
    better = tile_min < best_d[...]
    best_i[...] = jnp.where(better, tile_arg, best_i[...])
    best_d[...] = jnp.where(better, tile_min, best_d[...])

    @pl.when(v == pl.num_programs(1) - 1)
    def _():
        # lane-dense int32 slab (broadcast across 128 lanes); wrapper slices column 0.
        o_ref[...] = jnp.broadcast_to(best_i[...], o_ref.shape)


def nearest_tokens(x2d, W):
    M, H = x2d.shape
    V = W.shape[0]
    tm = _row_tile(M, 256)
    tv = _col_tile(V, 512)
    wn = jnp.sum(jnp.square(W.astype(F32)), axis=-1).reshape(1, V)
    out = pl.pallas_call(
        _nearest_kernel,
        out_shape=jax.ShapeDtypeStruct((M, 128), jnp.int32),
        grid=(M // tm, V // tv),
        in_specs=[
            pl.BlockSpec((tm, H), lambda i, v: (i, 0)),
            pl.BlockSpec((tv, H), lambda i, v: (v, 0)),
            pl.BlockSpec((1, tv), lambda i, v: (0, v)),
        ],
        out_specs=pl.BlockSpec((tm, 128), lambda i, v: (i, 0)),
        scratch_shapes=[pltpu.VMEM((tm, 1), F32), pltpu.VMEM((tm, 1), jnp.int32)],
        compiler_params=pltpu.CompilerParams(
            dimension_semantics=("parallel", "arbitrary"),
            vmem_limit_bytes=VMEM_LIMIT),
    )(x2d.astype(COMPUTE), W.astype(COMPUTE), wn)
    return out[:, 0]


# --------------------------------------------------------------------------
# Fused tied LM head: logits = x @ W^T -> online softmax over vocab -> probs @ W.
# Vocab-tiled; the (M, V) logits never touch HBM and no W.T copy is made.
# --------------------------------------------------------------------------
def _lm_head_kernel(x_ref, w_ref, o_ref, m_sc, l_sc, acc_sc):
    v = pl.program_id(1)

    @pl.when(v == 0)
    def _():
        m_sc[...] = jnp.full_like(m_sc, -jnp.inf)
        l_sc[...] = jnp.zeros_like(l_sc)
        acc_sc[...] = jnp.zeros_like(acc_sc)

    w = w_ref[...]
    s = jax.lax.dot_general(x_ref[...], w, (((1,), (1,)), ((), ())),
                            preferred_element_type=F32)                  # (tm, tv)
    m_new = jnp.maximum(m_sc[...], jnp.max(s, axis=-1, keepdims=True))
    alpha = jnp.exp(m_sc[...] - m_new)
    p = jnp.exp(s - m_new)
    l_sc[...] = alpha * l_sc[...] + jnp.sum(p, axis=-1, keepdims=True)
    acc_sc[...] = alpha * acc_sc[...] + jnp.dot(p.astype(w.dtype), w,
                                                preferred_element_type=F32)
    m_sc[...] = m_new

    @pl.when(v == pl.num_programs(1) - 1)
    def _():
        o_ref[...] = (acc_sc[...] *
                      pl.reciprocal(l_sc[...], approx=True)).astype(o_ref.dtype)


def lm_head(x2d, W):
    M, H = x2d.shape
    V = W.shape[0]
    tm = _row_tile(M, 256)
    tv = _col_tile(V, 512)
    return pl.pallas_call(
        _lm_head_kernel,
        out_shape=jax.ShapeDtypeStruct((M, H), COMPUTE),
        grid=(M // tm, V // tv),
        in_specs=[
            pl.BlockSpec((tm, H), lambda i, v: (i, 0)),
            pl.BlockSpec((tv, H), lambda i, v: (v, 0)),
        ],
        out_specs=pl.BlockSpec((tm, H), lambda i, v: (i, 0)),
        scratch_shapes=[pltpu.VMEM((tm, 1), F32),
                        pltpu.VMEM((tm, 1), F32),
                        pltpu.VMEM((tm, H), F32)],
        compiler_params=pltpu.CompilerParams(
            dimension_semantics=("parallel", "arbitrary"),
            vmem_limit_bytes=VMEM_LIMIT),
    )(x2d.astype(COMPUTE), W.astype(COMPUTE))


# --------------------------------------------------------------------------
# Transformer blocks (glue around the kernels)
# --------------------------------------------------------------------------
def encoder_layer(x, lp, heads):
    N, T, H = x.shape
    a = self_attention(x, lp["self_attn"], heads, causal=False)
    x2 = add_layernorm(x.reshape(-1, H), a.reshape(-1, H), lp["ln1_g"], lp["ln1_b"])
    f = linear(x2, lp["fc1_w"], lp["fc1_b"], act="relu")
    f = linear(f, lp["fc2_w"], lp["fc2_b"])
    return add_layernorm(x2, f, lp["ln2_g"], lp["ln2_b"]).reshape(N, T, H)


def decoder_layer(x, enc_out, lp, heads):
    N, T, H = x.shape
    a = self_attention(x, lp["self_attn"], heads, causal=True)
    x2 = add_layernorm(x.reshape(-1, H), a.reshape(-1, H),
                       lp["ln1_g"], lp["ln1_b"]).reshape(N, T, H)
    a = cross_attention(x2, enc_out, lp["cross_attn"], heads)
    x3 = add_layernorm(x2.reshape(-1, H), a.reshape(-1, H), lp["ln2_g"], lp["ln2_b"])
    f = linear(x3, lp["fc1_w"], lp["fc1_b"], act="relu")
    f = linear(f, lp["fc2_w"], lp["fc2_b"])
    return add_layernorm(x3, f, lp["ln3_g"], lp["ln3_b"]).reshape(N, T, H)


def timestep_embedding(timesteps, dim, max_period=10000):
    half = dim // 2
    freqs = jnp.exp(-math.log(max_period) * jnp.arange(half, dtype=F32) / half)
    args = timesteps[:, None].astype(F32) * freqs[None, :]
    return jnp.concatenate([jnp.cos(args), jnp.sin(args)], axis=-1)


def forward(params, x, timesteps, cfg):
    N, T, D = x.shape
    H = cfg["hidden"]
    heads = cfg["heads"]
    W = params["word_emb"]                                  # (V, H) bf16, tied everywhere
    embed_scale = math.sqrt(H)

    # time embedding MLP: Linear -> SiLU -> Linear
    te = timestep_embedding(timesteps, cfg["hidden_t_dim"])
    h = linear(te, params["time_w1"], params["time_b1"], act="silu")
    emb_t = linear(h, params["time_w2"], params["time_b2"])            # (N, H)

    # embedding sum + LayerNorm (input_dims == hidden_size => no input_up_proj)
    emb_x = x.astype(COMPUTE)
    pos = params["pos_emb"][:T]
    base = pos[None, :, :] + emb_x                                     # XLA glue add
    emb_t_b = jnp.broadcast_to(emb_t[:, None, :], (N, T, H))
    emb_inputs = add_layernorm(base.reshape(-1, H), emb_t_b.reshape(-1, H),
                               params["ln_g"], params["ln_b"]).reshape(N, T, H)

    # guessed_tokens = argmax(-1) of get_logits(x)  (fused running-argmin kernel)
    tok = nearest_tokens(x.reshape(-1, D), W).reshape(N, T)

    # ---- encoder (token_embeddings = emb_inputs) ----
    h_enc = embed_scale * emb_inputs
    for lp in params["enc_layers"]:
        h_enc = encoder_layer(h_enc, lp, heads)
    enc_out = h_enc

    # ---- decoder (prev_output_tokens = guessed_tokens) ----
    dec = embed_scale * jnp.take(W, tok, axis=0)                       # embedding gather (glue)
    for lp in params["dec_layers"]:
        dec = decoder_layer(dec, enc_out, lp, heads)

    # tied output projection -> softmax over vocab -> probs @ W  (single fused kernel)
    mean = lm_head(dec.reshape(-1, H), W).reshape(N, T, H)
    return mean.astype(x.dtype)


# --------------------------------------------------------------------------
# Deterministic parameter init (matmul weights in bf16, bias/LN params in f32)
# --------------------------------------------------------------------------
def init_params(key, cfg):
    H, V = cfg["hidden"], cfg["vocab"]
    t, ffn = cfg["hidden_t_dim"], cfg["ffn"]
    t4 = 4 * t
    ks = iter(jax.random.split(key, 256))

    def dense(k_in, k_out):
        w = (0.02 * jax.random.normal(next(ks), (k_in, k_out), F32)).astype(COMPUTE)
        return w, jnp.zeros((k_out,), F32)

    def self_attn_params():
        w_qkv, b_qkv = dense(H, 3 * H)        # fused QKV projection
        wo, bo = dense(H, H)
        return dict(w_qkv=w_qkv, b_qkv=b_qkv, wo=wo, bo=bo)

    def cross_attn_params():
        wq, bq = dense(H, H)
        w_kv, b_kv = dense(H, 2 * H)          # fused KV projection
        wo, bo = dense(H, H)
        return dict(wq=wq, bq=bq, w_kv=w_kv, b_kv=b_kv, wo=wo, bo=bo)

    def ln():
        return jnp.ones((H,), F32), jnp.zeros((H,), F32)

    params = {}
    params["word_emb"] = (0.02 * jax.random.normal(next(ks), (V, H), F32)).astype(COMPUTE)
    params["pos_emb"] = (0.02 * jax.random.normal(next(ks), (cfg["max_pos"], H), F32)).astype(COMPUTE)
    params["time_w1"], params["time_b1"] = dense(t, t4)
    params["time_w2"], params["time_b2"] = dense(t4, H)
    params["ln_g"], params["ln_b"] = ln()

    enc_layers = []
    for _ in range(cfg["enc_layers"]):
        fc1_w, fc1_b = dense(H, ffn)
        fc2_w, fc2_b = dense(ffn, H)
        g1, b1 = ln(); g2, b2 = ln()
        enc_layers.append(dict(self_attn=self_attn_params(),
                               fc1_w=fc1_w, fc1_b=fc1_b, fc2_w=fc2_w, fc2_b=fc2_b,
                               ln1_g=g1, ln1_b=b1, ln2_g=g2, ln2_b=b2))
    params["enc_layers"] = enc_layers

    dec_layers = []
    for _ in range(cfg["dec_layers"]):
        fc1_w, fc1_b = dense(H, ffn)
        fc2_w, fc2_b = dense(ffn, H)
        g1, b1 = ln(); g2, b2 = ln(); g3, b3 = ln()
        dec_layers.append(dict(self_attn=self_attn_params(), cross_attn=cross_attn_params(),
                               fc1_w=fc1_w, fc1_b=fc1_b, fc2_w=fc2_w, fc2_b=fc2_b,
                               ln1_g=g1, ln1_b=b1, ln2_g=g2, ln2_b=b2,
                               ln3_g=g3, ln3_b=b3))
    params["dec_layers"] = dec_layers
    return params


if __name__ == "__main__":
    cfg = dict(vocab=1024, hidden=128, hidden_t_dim=64, heads=4, ffn=512,
               enc_layers=2, dec_layers=2, max_pos=64)
    key = jax.random.PRNGKey(0)
    kp, kx = jax.random.split(key, 2)
    params = init_params(kp, cfg)

    N, T = 2, 16
    x = jax.random.normal(kx, (N, T, cfg["hidden"]), dtype=jnp.float32)
    timesteps = jnp.array([3.0, 11.0], dtype=jnp.float32)

    fwd = jax.jit(functools.partial(forward, cfg=cfg))
    out = jax.block_until_ready(fwd(params, x, timesteps))
    assert out.shape == (N, T, cfg["hidden"]) and out.dtype == x.dtype
    print("KERNEL_OK")
</pallas_src>

<mosaic_0001>
module attributes {stable_mosaic.version = 11 : i64} {
  func.func @_linear_kernel(%arg0: i32, %arg1: i32, %arg2: i32, %arg3: memref<2x64xbf16, #tpu.memory_space<vmem>>, %arg4: memref<64x256xbf16, #tpu.memory_space<vmem>>, %arg5: memref<1x256xf32, #tpu.memory_space<vmem>>, %arg6: memref<2x256xbf16, #tpu.memory_space<vmem>>, %arg7: memref<2x256xf32, #tpu.memory_space<vmem>>) attributes {dimension_semantics = [#tpu.dimension_semantics<parallel>, #tpu.dimension_semantics<parallel>, #tpu.dimension_semantics<arbitrary>], iteration_bounds = array<i64: 1, 1, 1>, scalar_prefetch = 0 : i64, scratch_operands = 1 : i64, tpu.core_type = #tpu.core_type<tc>, window_params = [{transform_indices = @transform_0, window_bounds = array<i64: 2, 64>}, {transform_indices = @transform_1, window_bounds = array<i64: 64, 256>}, {transform_indices = @transform_2, window_bounds = array<i64: 1, 256>}, {transform_indices = @transform_3, window_bounds = array<i64: 2, 256>}]} {
    %c0_i32 = arith.constant 0 : i32
    %0 = arith.cmpi eq, %arg2, %c0_i32 : i32
    %1 = arith.extui %0 : i1 to i32
    %c0_i32_0 = arith.constant 0 : i32
    %2 = arith.cmpi ne, %1, %c0_i32_0 : i32
    scf.if %2 {
      %cst_10 = arith.constant 0.000000e+00 : f32
      %12 = vector.broadcast %cst_10 : f32 to vector<2x256xf32>
      %c0_11 = arith.constant 0 : index
      %c0_12 = arith.constant 0 : index
      %13 = vector.load %arg7[%c0_11, %c0_12] : memref<2x256xf32, #tpu.memory_space<vmem>>, vector<2x256xf32>
      tpu.vector_store %arg7[%c0_11, %c0_12], %12 {strides = array<i32>} : memref<2x256xf32, #tpu.memory_space<vmem>>, vector<2x256xf32>,
    } else {
    }
    %c0 = arith.constant 0 : index
    %c0_1 = arith.constant 0 : index
    %3 = vector.load %arg7[%c0, %c0_1] : memref<2x256xf32, #tpu.memory_space<vmem>>, vector<2x256xf32>
    %c0_2 = arith.constant 0 : index
    %c0_3 = arith.constant 0 : index
    %4 = vector.load %arg3[%c0_2, %c0_3] : memref<2x64xbf16, #tpu.memory_space<vmem>>, vector<2x64xbf16>
    %c0_4 = arith.constant 0 : index
    %c0_5 = arith.constant 0 : index
    %5 = vector.load %arg4[%c0_4, %c0_5] : memref<64x256xbf16, #tpu.memory_space<vmem>>, vector<64x256xbf16>
    %cst = arith.constant dense<0.000000e+00> : vector<2x256xf32>
    %6 = tpu.matmul %4, %5, %cst {dimension_numbers = #tpu.dot_dimension_numbers<[1], [0], [0], [1], [0, 0, 1, 1], [], []>} : vector<2x64xbf16>, vector<64x256xbf16>, vector<2x256xf32> -> vector<2x256xf32>
    %7 = arith.addf %3, %6 : vector<2x256xf32>
    %c0_6 = arith.constant 0 : index
    %c0_7 = arith.constant 0 : index
    %8 = vector.load %arg7[%c0_6, %c0_7] : memref<2x256xf32, #tpu.memory_space<vmem>>, vector<2x256xf32>
    tpu.vector_store %arg7[%c0_6, %c0_7], %7 {strides = array<i32>} : memref<2x256xf32, #tpu.memory_space<vmem>>, vector<2x256xf32>,
    %c0_i32_8 = arith.constant 0 : i32
    %9 = arith.cmpi eq, %arg2, %c0_i32_8 : i32
    %10 = arith.extui %9 : i1 to i32
    %c0_i32_9 = arith.constant 0 : i32
    %11 = arith.cmpi ne, %10, %c0_i32_9 : i32
    scf.if %11 {
      %c0_10 = arith.constant 0 : index
      %c0_11 = arith.constant 0 : index
      %12 = vector.load %arg7[%c0_10, %c0_11] : memref<2x256xf32, #tpu.memory_space<vmem>>, vector<2x256xf32>
      %c0_12 = arith.constant 0 : index
      %c0_13 = arith.constant 0 : index
      %13 = vector.load %arg5[%c0_12, %c0_13] : memref<1x256xf32, #tpu.memory_space<vmem>>, vector<1x256xf32>
      %14 = vector.broadcast %13 : vector<1x256xf32> to vector<2x256xf32>
      %15 = arith.addf %12, %14 : vector<2x256xf32>
      %16 = arith.negf %15 : vector<2x256xf32>
      %17 = math.exp %16 : vector<2x256xf32>
      %cst_14 = arith.constant 1.000000e+00 : f32
      %18 = vector.broadcast %cst_14 : f32 to vector<2x256xf32>
      %19 = arith.addf %18, %17 : vector<2x256xf32>
      %20 = arith.divf %18, %19 : vector<2x256xf32>
      %21 = arith.mulf %15, %20 : vector<2x256xf32>
      %22 = arith.truncf %21 : vector<2x256xf32> to vector<2x256xbf16>
      %c0_15 = arith.constant 0 : index
      %c0_16 = arith.constant 0 : index
      %23 = vector.load %arg6[%c0_15, %c0_16] : memref<2x256xbf16, #tpu.memory_space<vmem>>, vector<2x256xbf16>
      tpu.vector_store %arg6[%c0_15, %c0_16], %22 {strides = array<i32>} : memref<2x256xbf16, #tpu.memory_space<vmem>>, vector<2x256xbf16>,
    } else {
    }
    return
  }
  func.func @transform_0(%arg0: i32, %arg1: i32, %arg2: i32) -> (i32, i32) {
    %c0_i32 = arith.constant 0 : i32
    return %arg0, %arg2 : i32, i32
  }
  func.func @transform_1(%arg0: i32, %arg1: i32, %arg2: i32) -> (i32, i32) {
    %c0_i32 = arith.constant 0 : i32
    return %arg2, %arg1 : i32, i32
  }
  func.func @transform_2(%arg0: i32, %arg1: i32, %arg2: i32) -> (i32, i32) {
    %c0_i32 = arith.constant 0 : i32
    %c0_i32_0 = arith.constant 0 : i32
    return %c0_i32, %arg1 : i32, i32
  }
  func.func @transform_3(%arg0: i32, %arg1: i32, %arg2: i32) -> (i32, i32) {
    %c0_i32 = arith.constant 0 : i32
    return %arg0, %arg1 : i32, i32
  }
}

module attributes {stable_mosaic.version = 11 : i64} {
  func.func @_linear_kernel(%arg0: i32, %arg1: i32, %arg2: i32, %arg3: memref<2x256xbf16, #tpu.memory_space<vmem>>, %arg4: memref<256x128xbf16, #tpu.memory_space<vmem>>, %arg5: memref<1x128xf32, #tpu.memory_space<vmem>>, %arg6: memref<2x128xbf16, #tpu.memory_space<vmem>>, %arg7: memref<2x128xf32, #tpu.memory_space<vmem>>) attributes {dimension_semantics = [#tpu.dimension_semantics<parallel>, #tpu.dimension_semantics<parallel>, #tpu.dimension_semantics<arbitrary>], iteration_bounds = array<i64: 1, 1, 1>, scalar_prefetch = 0 : i64, scratch_operands = 1 : i64, tpu.core_type = #tpu.core_type<tc>, window_params = [{transform_indices = @transform_0, window_bounds = array<i64: 2, 256>}, {transform_indices = @transform_1, window_bounds = array<i64: 256, 128>}, {transform_indices = @transform_2, window_bounds = array<i64: 1, 128>}, {transform_indices = @transform_3, window_bounds = array<i64: 2, 128>}]} {
    %c0_i32 = arith.constant 0 : i32
    %0 = arith.cmpi eq, %arg2, %c0_i32 : i32
    %1 = arith.extui %0 : i1 to i32
    %c0_i32_0 = arith.constant 0 : i32
    %2 = arith.cmpi ne, %1, %c0_i32_0 : i32
    scf.if %2 {
      %cst_10 = arith.constant 0.000000e+00 : f32
      %12 = vector.broadcast %cst_10 : f32 to vector<2x128xf32>
      %c0_11 = arith.constant 0 : index
      %c0_12 = arith.constant 0 : index
      %13 = vector.load %arg7[%c0_11, %c0_12] : memref<2x128xf32, #tpu.memory_space<vmem>>, vector<2x128xf32>
      tpu.vector_store %arg7[%c0_11, %c0_12], %12 {strides = array<i32>} : memref<2x128xf32, #tpu.memory_space<vmem>>, vector<2x128xf32>,
    } else {
    }
    %c0 = arith.constant 0 : index
    %c0_1 = arith.constant 0 : index
    %3 = vector.load %arg7[%c0, %c0_1] : memref<2x128xf32, #tpu.memory_space<vmem>>, vector<2x128xf32>
    %c0_2 = arith.constant 0 : index
    %c0_3 = arith.constant 0 : index
    %4 = vector.load %arg3[%c0_2, %c0_3] : memref<2x256xbf16, #tpu.memory_space<vmem>>, vector<2x256xbf16>
    %c0_4 = arith.constant 0 : index
    %c0_5 = arith.constant 0 : index
    %5 = vector.load %arg4[%c0_4, %c0_5] : memref<256x128xbf16, #tpu.memory_space<vmem>>, vector<256x128xbf16>
    %cst = arith.constant dense<0.000000e+00> : vector<2x128xf32>
    %6 = tpu.matmul %4, %5, %cst {dimension_numbers = #tpu.dot_dimension_numbers<[1], [0], [0], [1], [0, 0, 1, 1], [], []>} : vector<2x256xbf16>, vector<256x128xbf16>, vector<2x128xf32> -> vector<2x128xf32>
    %7 = arith.addf %3, %6 : vector<2x128xf32>
    %c0_6 = arith.constant 0 : index
    %c0_7 = arith.constant 0 : index
    %8 = vector.load %arg7[%c0_6, %c0_7] : memref<2x128xf32, #tpu.memory_space<vmem>>, vector<2x128xf32>
    tpu.vector_store %arg7[%c0_6, %c0_7], %7 {strides = array<i32>} : memref<2x128xf32, #tpu.memory_space<vmem>>, vector<2x128xf32>,
    %c0_i32_8 = arith.constant 0 : i32
    %9 = arith.cmpi eq, %arg2, %c0_i32_8 : i32
    %10 = arith.extui %9 : i1 to i32
    %c0_i32_9 = arith.constant 0 : i32
    %11 = arith.cmpi ne, %10, %c0_i32_9 : i32
    scf.if %11 {
      %c0_10 = arith.constant 0 : index
      %c0_11 = arith.constant 0 : index
      %12 = vector.load %arg7[%c0_10, %c0_11] : memref<2x128xf32, #tpu.memory_space<vmem>>, vector<2x128xf32>
      %c0_12 = arith.constant 0 : index
      %c0_13 = arith.constant 0 : index
      %13 = vector.load %arg5[%c0_12, %c0_13] : memref<1x128xf32, #tpu.memory_space<vmem>>, vector<1x128xf32>
      %14 = vector.broadcast %13 : vector<1x128xf32> to vector<2x128xf32>
      %15 = arith.addf %12, %14 : vector<2x128xf32>
      %16 = arith.truncf %15 : vector<2x128xf32> to vector<2x128xbf16>
      %c0_14 = arith.constant 0 : index
      %c0_15 = arith.constant 0 : index
      %17 = vector.load %arg6[%c0_14, %c0_15] : memref<2x128xbf16, #tpu.memory_space<vmem>>, vector<2x128xbf16>
      tpu.vector_store %arg6[%c0_14, %c0_15], %16 {strides = array<i32>} : memref<2x128xbf16, #tpu.memory_space<vmem>>, vector<2x128xbf16>,
    } else {
    }
    return
  }
  func.func @transform_0(%arg0: i32, %arg1: i32, %arg2: i32) -> (i32, i32) {
    %c0_i32 = arith.constant 0 : i32
    return %arg0, %arg2 : i32, i32
  }
  func.func @transform_1(%arg0: i32, %arg1: i32, %arg2: i32) -> (i32, i32) {
    %c0_i32 = arith.constant 0 : i32
    return %arg2, %arg1 : i32, i32
  }
  func.func @transform_2(%arg0: i32, %arg1: i32, %arg2: i32) -> (i32, i32) {
    %c0_i32 = arith.constant 0 : i32
    %c0_i32_0 = arith.constant 0 : i32
    return %c0_i32, %arg1 : i32, i32
  }
  func.func @transform_3(%arg0: i32, %arg1: i32, %arg2: i32) -> (i32, i32) {
    %c0_i32 = arith.constant 0 : i32
    return %arg0, %arg1 : i32, i32
  }
}

module attributes {stable_mosaic.version = 11 : i64} {
  func.func @_add_ln_kernel(%arg0: i32, %arg1: memref<32x128xbf16, #tpu.memory_space<vmem>>, %arg2: memref<32x128xbf16, #tpu.memory_space<vmem>>, %arg3: memref<1x128xf32, #tpu.memory_space<vmem>>, %arg4: memref<1x128xf32, #tpu.memory_space<vmem>>, %arg5: memref<32x128xbf16, #tpu.memory_space<vmem>>) attributes {dimension_semantics = [#tpu.dimension_semantics<parallel>], iteration_bounds = array<i64: 1>, scalar_prefetch = 0 : i64, scratch_operands = 0 : i64, tpu.core_type = #tpu.core_type<tc>, window_params = [{transform_indices = @transform_0, window_bounds = array<i64: 32, 128>}, {transform_indices = @transform_1, window_bounds = array<i64: 32, 128>}, {pipeline_mode = #tpu.pipeline_mode<synchronous>, transform_indices = @transform_2, window_bounds = array<i64: 1, 128>}, {pipeline_mode = #tpu.pipeline_mode<synchronous>, transform_indices = @transform_3, window_bounds = array<i64: 1, 128>}, {transform_indices = @transform_4, window_bounds = array<i64: 32, 128>}]} {
    %c0 = arith.constant 0 : index
    %c0_0 = arith.constant 0 : index
    %0 = vector.load %arg1[%c0, %c0_0] : memref<32x128xbf16, #tpu.memory_space<vmem>>, vector<32x128xbf16>
    %1 = arith.extf %0 : vector<32x128xbf16> to vector<32x128xf32>
    %c0_1 = arith.constant 0 : index
    %c0_2 = arith.constant 0 : index
    %2 = vector.load %arg2[%c0_1, %c0_2] : memref<32x128xbf16, #tpu.memory_space<vmem>>, vector<32x128xbf16>
    %3 = arith.extf %2 : vector<32x128xbf16> to vector<32x128xf32>
    %4 = arith.addf %1, %3 : vector<32x128xf32>
    %cst = arith.constant dense<0.000000e+00> : vector<32xf32>
    %5 = vector.multi_reduction <add>, %4, %cst [1] : vector<32x128xf32> to vector<32xf32>
    %6 = vector.shape_cast %5 : vector<32xf32> to vector<32x1xf32>
    %cst_3 = arith.constant 1.280000e+02 : f32
    %7 = vector.broadcast %cst_3 : f32 to vector<32x1xf32>
    %8 = arith.divf %6, %7 : vector<32x1xf32>
    %9 = vector.broadcast %8 : vector<32x1xf32> to vector<32x128xf32>
    %10 = arith.subf %4, %9 : vector<32x128xf32>
    %11 = arith.mulf %10, %10 : vector<32x128xf32>
    %cst_4 = arith.constant dense<0.000000e+00> : vector<32xf32>
    %12 = vector.multi_reduction <add>, %11, %cst_4 [1] : vector<32x128xf32> to vector<32xf32>
    %13 = vector.shape_cast %12 : vector<32xf32> to vector<32x1xf32>
    %cst_5 = arith.constant 1.280000e+02 : f32
    %14 = vector.broadcast %cst_5 : f32 to vector<32x1xf32>
    %15 = arith.divf %13, %14 : vector<32x1xf32>
    %cst_6 = arith.constant 9.99999974E-6 : f32
    %16 = vector.broadcast %cst_6 : f32 to vector<32x1xf32>
    %17 = arith.addf %15, %16 : vector<32x1xf32>
    %18 = math.rsqrt %17 : vector<32x1xf32>
    %19 = vector.broadcast %18 : vector<32x1xf32> to vector<32x128xf32>
    %20 = arith.mulf %10, %19 : vector<32x128xf32>
    %c0_7 = arith.constant 0 : index
    %c0_8 = arith.constant 0 : index
    %21 = vector.load %arg3[%c0_7, %c0_8] : memref<1x128xf32, #tpu.memory_space<vmem>>, vector<1x128xf32>
    %22 = vector.broadcast %21 : vector<1x128xf32> to vector<32x128xf32>
    %23 = arith.mulf %20, %22 : vector<32x128xf32>
    %c0_9 = arith.constant 0 : index
    %c0_10 = arith.constant 0 : index
    %24 = vector.load %arg4[%c0_9, %c0_10] : memref<1x128xf32, #tpu.memory_space<vmem>>, vector<1x128xf32>
    %25 = vector.broadcast %24 : vector<1x128xf32> to vector<32x128xf32>
    %26 = arith.addf %23, %25 : vector<32x128xf32>
    %27 = arith.truncf %26 : vector<32x128xf32> to vector<32x128xbf16>
    %c0_11 = arith.constant 0 : index
    %c0_12 = arith.constant 0 : index
    %28 = vector.load %arg5[%c0_11, %c0_12] : memref<32x128xbf16, #tpu.memory_space<vmem>>, vector<32x128xbf16>
    tpu.vector_store %arg5[%c0_11, %c0_12], %27 {strides = array<i32>} : memref<32x128xbf16, #tpu.memory_space<vmem>>, vector<32x128xbf16>,
    return
  }
  func.func @transform_0(%arg0: i32) -> (i32, i32) {
    %c0_i32 = arith.constant 0 : i32
    %c0_i32_0 = arith.constant 0 : i32
    return %arg0, %c0_i32 : i32, i32
  }
  func.func @transform_1(%arg0: i32) -> (i32, i32) {
    %c0_i32 = arith.constant 0 : i32
    %c0_i32_0 = arith.constant 0 : i32
    return %arg0, %c0_i32 : i32, i32
  }
  func.func @transform_2(%arg0: i32) -> (i32, i32) {
    %c0_i32 = arith.constant 0 : i32
    %c0_i32_0 = arith.constant 0 : i32
    %c0_i32_1 = arith.constant 0 : i32
    return %c0_i32, %c0_i32_0 : i32, i32
  }
  func.func @transform_3(%arg0: i32) -> (i32, i32) {
    %c0_i32 = arith.constant 0 : i32
    %c0_i32_0 = arith.constant 0 : i32
    %c0_i32_1 = arith.constant 0 : i32
    return %c0_i32, %c0_i32_0 : i32, i32
  }
  func.func @transform_4(%arg0: i32) -> (i32, i32) {
    %c0_i32 = arith.constant 0 : i32
    %c0_i32_0 = arith.constant 0 : i32
    return %arg0, %c0_i32 : i32, i32
  }
}

module attributes {stable_mosaic.version = 11 : i64} {
  func.func @_linear_kernel(%arg0: i32, %arg1: i32, %arg2: i32, %arg3: memref<32x128xbf16, #tpu.memory_space<vmem>>, %arg4: memref<128x128xbf16, #tpu.memory_space<vmem>>, %arg5: memref<1x128xf32, #tpu.memory_space<vmem>>, %arg6: memref<32x128xbf16, #tpu.memory_space<vmem>>, %arg7: memref<32x128xf32, #tpu.memory_space<vmem>>) attributes {dimension_semantics = [#tpu.dimension_semantics<parallel>, #tpu.dimension_semantics<parallel>, #tpu.dimension_semantics<arbitrary>], iteration_bounds = array<i64: 1, 3, 1>, scalar_prefetch = 0 : i64, scratch_operands = 1 : i64, tpu.core_type = #tpu.core_type<tc>, window_params = [{transform_indices = @transform_0, window_bounds = array<i64: 32, 128>}, {transform_indices = @transform_1, window_bounds = array<i64: 128, 128>}, {transform_indices = @transform_2, window_bounds = array<i64: 1, 128>}, {transform_indices = @transform_3, window_bounds = array<i64: 32, 128>}]} {
    %c0_i32 = arith.constant 0 : i32
    %0 = arith.cmpi eq, %arg2, %c0_i32 : i32
    %1 = arith.extui %0 : i1 to i32
    %c0_i32_0 = arith.constant 0 : i32
    %2 = arith.cmpi ne, %1, %c0_i32_0 : i32
    scf.if %2 {
      %cst_10 = arith.constant 0.000000e+00 : f32
      %12 = vector.broadcast %cst_10 : f32 to vector<32x128xf32>
      %c0_11 = arith.constant 0 : index
      %c0_12 = arith.constant 0 : index
      %13 = vector.load %arg7[%c0_11, %c0_12] : memref<32x128xf32, #tpu.memory_space<vmem>>, vector<32x128xf32>
      tpu.vector_store %arg7[%c0_11, %c0_12], %12 {strides = array<i32>} : memref<32x128xf32, #tpu.memory_space<vmem>>, vector<32x128xf32>,
    } else {
    }
    %c0 = arith.constant 0 : index
    %c0_1 = arith.constant 0 : index
    %3 = vector.load %arg7[%c0, %c0_1] : memref<32x128xf32, #tpu.memory_space<vmem>>, vector<32x128xf32>
    %c0_2 = arith.constant 0 : index
    %c0_3 = arith.constant 0 : index
    %4 = vector.load %arg3[%c0_2, %c0_3] : memref<32x128xbf16, #tpu.memory_space<vmem>>, vector<32x128xbf16>
    %c0_4 = arith.constant 0 : index
    %c0_5 = arith.constant 0 : index
    %5 = vector.load %arg4[%c0_4, %c0_5] : memref<128x128xbf16, #tpu.memory_space<vmem>>, vector<128x128xbf16>
    %cst = arith.constant dense<0.000000e+00> : vector<32x128xf32>
    %6 = tpu.matmul %4, %5, %cst {dimension_numbers = #tpu.dot_dimension_numbers<[1], [0], [0], [1], [0, 0, 1, 1], [], []>} : vector<32x128xbf16>, vector<128x128xbf16>, vector<32x128xf32> -> vector<32x128xf32>
    %7 = arith.addf %3, %6 : vector<32x128xf32>
    %c0_6 = arith.constant 0 : index
    %c0_7 = arith.constant 0 : index
    %8 = vector.load %arg7[%c0_6, %c0_7] : memref<32x128xf32, #tpu.memory_space<vmem>>, vector<32x128xf32>
    tpu.vector_store %arg7[%c0_6, %c0_7], %7 {strides = array<i32>} : memref<32x128xf32, #tpu.memory_space<vmem>>, vector<32x128xf32>,
    %c0_i32_8 = arith.constant 0 : i32
    %9 = arith.cmpi eq, %arg2, %c0_i32_8 : i32
    %10 = arith.extui %9 : i1 to i32
    %c0_i32_9 = arith.constant 0 : i32
    %11 = arith.cmpi ne, %10, %c0_i32_9 : i32
    scf.if %11 {
      %c0_10 = arith.constant 0 : index
      %c0_11 = arith.constant 0 : index
      %12 = vector.load %arg7[%c0_10, %c0_11] : memref<32x128xf32, #tpu.memory_space<vmem>>, vector<32x128xf32>
      %c0_12 = arith.constant 0 : index
      %c0_13 = arith.constant 0 : index
      %13 = vector.load %arg5[%c0_12, %c0_13] : memref<1x128xf32, #tpu.memory_space<vmem>>, vector<1x128xf32>
      %14 = vector.broadcast %13 : vector<1x128xf32> to vector<32x128xf32>
      %15 = arith.addf %12, %14 : vector<32x128xf32>
      %16 = arith.truncf %15 : vector<32x128xf32> to vector<32x128xbf16>
      %c0_14 = arith.constant 0 : index
      %c0_15 = arith.constant 0 : index
      %17 = vector.load %arg6[%c0_14, %c0_15] : memref<32x128xbf16, #tpu.memory_space<vmem>>, vector<32x128xbf16>
      tpu.vector_store %arg6[%c0_14, %c0_15], %16 {strides = array<i32>} : memref<32x128xbf16, #tpu.memory_space<vmem>>, vector<32x128xbf16>,
    } else {
    }
    return
  }
  func.func @transform_0(%arg0: i32, %arg1: i32, %arg2: i32) -> (i32, i32) {
    %c0_i32 = arith.constant 0 : i32
    return %arg0, %arg2 : i32, i32
  }
  func.func @transform_1(%arg0: i32, %arg1: i32, %arg2: i32) -> (i32, i32) {
    %c0_i32 = arith.constant 0 : i32
    return %arg2, %arg1 : i32, i32
  }
  func.func @transform_2(%arg0: i32, %arg1: i32, %arg2: i32) -> (i32, i32) {
    %c0_i32 = arith.constant 0 : i32
    %c0_i32_0 = arith.constant 0 : i32
    return %c0_i32, %arg1 : i32, i32
  }
  func.func @transform_3(%arg0: i32, %arg1: i32, %arg2: i32) -> (i32, i32) {
    %c0_i32 = arith.constant 0 : i32
    return %arg0, %arg1 : i32, i32
  }
}

module attributes {stable_mosaic.version = 11 : i64} {
  func.func @_linear_kernel(%arg0: i32, %arg1: i32, %arg2: i32, %arg3: memref<32x128xbf16, #tpu.memory_space<vmem>>, %arg4: memref<128x128xbf16, #tpu.memory_space<vmem>>, %arg5: memref<1x128xf32, #tpu.memory_space<vmem>>, %arg6: memref<32x128xbf16, #tpu.memory_space<vmem>>, %arg7: memref<32x128xf32, #tpu.memory_space<vmem>>) attributes {dimension_semantics = [#tpu.dimension_semantics<parallel>, #tpu.dimension_semantics<parallel>, #tpu.dimension_semantics<arbitrary>], iteration_bounds = array<i64: 1, 1, 1>, scalar_prefetch = 0 : i64, scratch_operands = 1 : i64, tpu.core_type = #tpu.core_type<tc>, window_params = [{transform_indices = @transform_0, window_bounds = array<i64: 32, 128>}, {transform_indices = @transform_1, window_bounds = array<i64: 128, 128>}, {transform_indices = @transform_2, window_bounds = array<i64: 1, 128>}, {transform_indices = @transform_3, window_bounds = array<i64: 32, 128>}]} {
    %c0_i32 = arith.constant 0 : i32
    %0 = arith.cmpi eq, %arg2, %c0_i32 : i32
    %1 = arith.extui %0 : i1 to i32
    %c0_i32_0 = arith.constant 0 : i32
    %2 = arith.cmpi ne, %1, %c0_i32_0 : i32
    scf.if %2 {
      %cst_10 = arith.constant 0.000000e+00 : f32
      %12 = vector.broadcast %cst_10 : f32 to vector<32x128xf32>
      %c0_11 = arith.constant 0 : index
      %c0_12 = arith.constant 0 : index
      %13 = vector.load %arg7[%c0_11, %c0_12] : memref<32x128xf32, #tpu.memory_space<vmem>>, vector<32x128xf32>
      tpu.vector_store %arg7[%c0_11, %c0_12], %12 {strides = array<i32>} : memref<32x128xf32, #tpu.memory_space<vmem>>, vector<32x128xf32>,
    } else {
    }
    %c0 = arith.constant 0 : index
    %c0_1 = arith.constant 0 : index
    %3 = vector.load %arg7[%c0, %c0_1] : memref<32x128xf32, #tpu.memory_space<vmem>>, vector<32x128xf32>
    %c0_2 = arith.constant 0 : index
    %c0_3 = arith.constant 0 : index
    %4 = vector.load %arg3[%c0_2, %c0_3] : memref<32x128xbf16, #tpu.memory_space<vmem>>, vector<32x128xbf16>
    %c0_4 = arith.constant 0 : index
    %c0_5 = arith.constant 0 : index
    %5 = vector.load %arg4[%c0_4, %c0_5] : memref<128x128xbf16, #tpu.memory_space<vmem>>, vector<128x128xbf16>
    %cst = arith.constant dense<0.000000e+00> : vector<32x128xf32>
    %6 = tpu.matmul %4, %5, %cst {dimension_numbers = #tpu.dot_dimension_numbers<[1], [0], [0], [1], [0, 0, 1, 1], [], []>} : vector<32x128xbf16>, vector<128x128xbf16>, vector<32x128xf32> -> vector<32x128xf32>
    %7 = arith.addf %3, %6 : vector<32x128xf32>
    %c0_6 = arith.constant 0 : index
    %c0_7 = arith.constant 0 : index
    %8 = vector.load %arg7[%c0_6, %c0_7] : memref<32x128xf32, #tpu.memory_space<vmem>>, vector<32x128xf32>
    tpu.vector_store %arg7[%c0_6, %c0_7], %7 {strides = array<i32>} : memref<32x128xf32, #tpu.memory_space<vmem>>, vector<32x128xf32>,
    %c0_i32_8 = arith.constant 0 : i32
    %9 = arith.cmpi eq, %arg2, %c0_i32_8 : i32
    %10 = arith.extui %9 : i1 to i32
    %c0_i32_9 = arith.constant 0 : i32
    %11 = arith.cmpi ne, %10, %c0_i32_9 : i32
    scf.if %11 {
      %c0_10 = arith.constant 0 : index
      %c0_11 = arith.constant 0 : index
      %12 = vector.load %arg7[%c0_10, %c0_11] : memref<32x128xf32, #tpu.memory_space<vmem>>, vector<32x128xf32>
      %c0_12 = arith.constant 0 : index
      %c0_13 = arith.constant 0 : index
      %13 = vector.load %arg5[%c0_12, %c0_13] : memref<1x128xf32, #tpu.memory_space<vmem>>, vector<1x128xf32>
      %14 = vector.broadcast %13 : vector<1x128xf32> to vector<32x128xf32>
      %15 = arith.addf %12, %14 : vector<32x128xf32>
      %16 = arith.truncf %15 : vector<32x128xf32> to vector<32x128xbf16>
      %c0_14 = arith.constant 0 : index
      %c0_15 = arith.constant 0 : index
      %17 = vector.load %arg6[%c0_14, %c0_15] : memref<32x128xbf16, #tpu.memory_space<vmem>>, vector<32x128xbf16>
      tpu.vector_store %arg6[%c0_14, %c0_15], %16 {strides = array<i32>} : memref<32x128xbf16, #tpu.memory_space<vmem>>, vector<32x128xbf16>,
    } else {
    }
    return
  }
  func.func @transform_0(%arg0: i32, %arg1: i32, %arg2: i32) -> (i32, i32) {
    %c0_i32 = arith.constant 0 : i32
    return %arg0, %arg2 : i32, i32
  }
  func.func @transform_1(%arg0: i32, %arg1: i32, %arg2: i32) -> (i32, i32) {
    %c0_i32 = arith.constant 0 : i32
    return %arg2, %arg1 : i32, i32
  }
  func.func @transform_2(%arg0: i32, %arg1: i32, %arg2: i32) -> (i32, i32) {
    %c0_i32 = arith.constant 0 : i32
    %c0_i32_0 = arith.constant 0 : i32
    return %c0_i32, %arg1 : i32, i32
  }
  func.func @transform_3(%arg0: i32, %arg1: i32, %arg2: i32) -> (i32, i32) {
    %c0_i32 = arith.constant 0 : i32
    return %arg0, %arg1 : i32, i32
  }
}

module attributes {stable_mosaic.version = 11 : i64} {
  func.func @_linear_kernel(%arg0: i32, %arg1: i32, %arg2: i32, %arg3: memref<32x256xbf16, #tpu.memory_space<vmem>>, %arg4: memref<256x128xbf16, #tpu.memory_space<vmem>>, %arg5: memref<1x128xf32, #tpu.memory_space<vmem>>, %arg6: memref<32x128xbf16, #tpu.memory_space<vmem>>, %arg7: memref<32x128xf32, #tpu.memory_space<vmem>>) attributes {dimension_semantics = [#tpu.dimension_semantics<parallel>, #tpu.dimension_semantics<parallel>, #tpu.dimension_semantics<arbitrary>], iteration_bounds = array<i64: 1, 1, 2>, scalar_prefetch = 0 : i64, scratch_operands = 1 : i64, tpu.core_type = #tpu.core_type<tc>, window_params = [{transform_indices = @transform_0, window_bounds = array<i64: 32, 256>}, {transform_indices = @transform_1, window_bounds = array<i64: 256, 128>}, {transform_indices = @transform_2, window_bounds = array<i64: 1, 128>}, {transform_indices = @transform_3, window_bounds = array<i64: 32, 128>}]} {
    %c0_i32 = arith.constant 0 : i32
    %0 = arith.cmpi eq, %arg2, %c0_i32 : i32
    %1 = arith.extui %0 : i1 to i32
    %c0_i32_0 = arith.constant 0 : i32
    %2 = arith.cmpi ne, %1, %c0_i32_0 : i32
    scf.if %2 {
      %cst_9 = arith.constant 0.000000e+00 : f32
      %12 = vector.broadcast %cst_9 : f32 to vector<32x128xf32>
      %c0_10 = arith.constant 0 : index
      %c0_11 = arith.constant 0 : index
      %13 = vector.load %arg7[%c0_10, %c0_11] : memref<32x128xf32, #tpu.memory_space<vmem>>, vector<32x128xf32>
      tpu.vector_store %arg7[%c0_10, %c0_11], %12 {strides = array<i32>} : memref<32x128xf32, #tpu.memory_space<vmem>>, vector<32x128xf32>,
    } else {
    }
    %c0 = arith.constant 0 : index
    %c0_1 = arith.constant 0 : index
    %3 = vector.load %arg7[%c0, %c0_1] : memref<32x128xf32, #tpu.memory_space<vmem>>, vector<32x128xf32>
    %c0_2 = arith.constant 0 : index
    %c0_3 = arith.constant 0 : index
    %4 = vector.load %arg3[%c0_2, %c0_3] : memref<32x256xbf16, #tpu.memory_space<vmem>>, vector<32x256xbf16>
    %c0_4 = arith.constant 0 : index
    %c0_5 = arith.constant 0 : index
    %5 = vector.load %arg4[%c0_4, %c0_5] : memref<256x128xbf16, #tpu.memory_space<vmem>>, vector<256x128xbf16>
    %cst = arith.constant dense<0.000000e+00> : vector<32x128xf32>
    %6 = tpu.matmul %4, %5, %cst {dimension_numbers = #tpu.dot_dimension_numbers<[1], [0], [0], [1], [0, 0, 1, 1], [], []>} : vector<32x256xbf16>, vector<256x128xbf16>, vector<32x128xf32> -> vector<32x128xf32>
    %7 = arith.addf %3, %6 : vector<32x128xf32>
    %c0_6 = arith.constant 0 : index
    %c0_7 = arith.constant 0 : index
    %8 = vector.load %arg7[%c0_6, %c0_7] : memref<32x128xf32, #tpu.memory_space<vmem>>, vector<32x128xf32>
    tpu.vector_store %arg7[%c0_6, %c0_7], %7 {strides = array<i32>} : memref<32x128xf32, #tpu.memory_space<vmem>>, vector<32x128xf32>,
    %c1_i32 = arith.constant 1 : i32
    %9 = arith.cmpi eq, %arg2, %c1_i32 : i32
    %10 = arith.extui %9 : i1 to i32
    %c0_i32_8 = arith.constant 0 : i32
    %11 = arith.cmpi ne, %10, %c0_i32_8 : i32
    scf.if %11 {
      %c0_9 = arith.constant 0 : index
      %c0_10 = arith.constant 0 : index
      %12 = vector.load %arg7[%c0_9, %c0_10] : memref<32x128xf32, #tpu.memory_space<vmem>>, vector<32x128xf32>
      %c0_11 = arith.constant 0 : index
      %c0_12 = arith.constant 0 : index
      %13 = vector.load %arg5[%c0_11, %c0_12] : memref<1x128xf32, #tpu.memory_space<vmem>>, vector<1x128xf32>
      %14 = vector.broadcast %13 : vector<1x128xf32> to vector<32x128xf32>
      %15 = arith.addf %12, %14 : vector<32x128xf32>
      %16 = arith.truncf %15 : vector<32x128xf32> to vector<32x128xbf16>
      %c0_13 = arith.constant 0 : index
      %c0_14 = arith.constant 0 : index
      %17 = vector.load %arg6[%c0_13, %c0_14] : memref<32x128xbf16, #tpu.memory_space<vmem>>, vector<32x128xbf16>
      tpu.vector_store %arg6[%c0_13, %c0_14], %16 {strides = array<i32>} : memref<32x128xbf16, #tpu.memory_space<vmem>>, vector<32x128xbf16>,
    } else {
    }
    return
  }
  func.func @transform_0(%arg0: i32, %arg1: i32, %arg2: i32) -> (i32, i32) {
    %c0_i32 = arith.constant 0 : i32
    return %arg0, %arg2 : i32, i32
  }
  func.func @transform_1(%arg0: i32, %arg1: i32, %arg2: i32) -> (i32, i32) {
    %c0_i32 = arith.constant 0 : i32
    return %arg2, %arg1 : i32, i32
  }
  func.func @transform_2(%arg0: i32, %arg1: i32, %arg2: i32) -> (i32, i32) {
    %c0_i32 = arith.constant 0 : i32
    %c0_i32_0 = arith.constant 0 : i32
    return %c0_i32, %arg1 : i32, i32
  }
  func.func @transform_3(%arg0: i32, %arg1: i32, %arg2: i32) -> (i32, i32) {
    %c0_i32 = arith.constant 0 : i32
    return %arg0, %arg1 : i32, i32
  }
}

module attributes {stable_mosaic.version = 11 : i64} {
  func.func @_self_attn_kernel(%arg0: i32, %arg1: memref<1x16x384xbf16, #tpu.memory_space<vmem>>, %arg2: memref<1x16x128xbf16, #tpu.memory_space<vmem>>) attributes {dimension_semantics = [#tpu.dimension_semantics<parallel>], iteration_bounds = array<i64: 2>, scalar_prefetch = 0 : i64, scratch_operands = 0 : i64, tpu.core_type = #tpu.core_type<tc>, window_params = [{transform_indices = @transform_0, window_bounds = array<i64: 1, 16, 384>}, {transform_indices = @transform_1, window_bounds = array<i64: 1, 16, 128>}]} {
    %c0 = arith.constant 0 : index
    %c0_0 = arith.constant 0 : index
    %c0_1 = arith.constant 0 : index
    %0 = vector.load %arg1[%c0, %c0_0, %c0_1] : memref<1x16x384xbf16, #tpu.memory_space<vmem>>, vector<1x16x128xbf16>
    %1 = vector.shape_cast %0 : vector<1x16x128xbf16> to vector<16x128xbf16>
    %c0_2 = arith.constant 0 : index
    %c0_3 = arith.constant 0 : index
    %c128 = arith.constant 128 : index
    %2 = vector.load %arg1[%c0_2, %c0_3, %c128] : memref<1x16x384xbf16, #tpu.memory_space<vmem>>, vector<1x16x128xbf16>
    %3 = vector.shape_cast %2 : vector<1x16x128xbf16> to vector<16x128xbf16>
    %c0_4 = arith.constant 0 : index
    %c0_5 = arith.constant 0 : index
    %c256 = arith.constant 256 : index
    %4 = vector.load %arg1[%c0_4, %c0_5, %c256] : memref<1x16x384xbf16, #tpu.memory_space<vmem>>, vector<1x16x128xbf16>
    %5 = vector.shape_cast %4 : vector<1x16x128xbf16> to vector<16x128xbf16>
    %6 = vector.extract_strided_slice %1 {offsets = [0, 0], sizes = [16, 32], strides = [1, 1]} : vector<16x128xbf16> to vector<16x32xbf16>
    %7 = vector.extract_strided_slice %3 {offsets = [0, 0], sizes = [16, 32], strides = [1, 1]} : vector<16x128xbf16> to vector<16x32xbf16>
    %cst = arith.constant dense<0.000000e+00> : vector<16x16xf32>
    %8 = tpu.matmul %6, %7, %cst {dimension_numbers = #tpu.dot_dimension_numbers<[1], [1], [0], [0], [0, 0, 1, 0], [], []>} : vector<16x32xbf16>, vector<16x32xbf16>, vector<16x16xf32> -> vector<16x16xf32>
    %cst_6 = arith.constant 0.176776692 : f32
    %9 = vector.broadcast %cst_6 : f32 to vector<16x16xf32>
    %10 = arith.mulf %8, %9 : vector<16x16xf32>
    %cst_7 = arith.constant dense<0xFF800000> : vector<16xf32>
    %11 = vector.multi_reduction <maximumf>, %10, %cst_7 [1] : vector<16x16xf32> to vector<16xf32>
    %12 = vector.shape_cast %11 : vector<16xf32> to vector<16x1xf32>
    %13 = vector.broadcast %12 : vector<16x1xf32> to vector<16x16xf32>
    %14 = arith.subf %10, %13 : vector<16x16xf32>
    %15 = math.exp %14 : vector<16x16xf32>
    %cst_8 = arith.constant dense<0.000000e+00> : vector<16xf32>
    %16 = vector.multi_reduction <add>, %15, %cst_8 [1] : vector<16x16xf32> to vector<16xf32>
    %17 = vector.shape_cast %16 : vector<16xf32> to vector<16x1xf32>
    %18 = tpu.reciprocal %17 {approx = true} : vector<16x1xf32> -> vector<16x1xf32>
    %19 = vector.broadcast %18 : vector<16x1xf32> to vector<16x16xf32>
    %20 = arith.mulf %15, %19 : vector<16x16xf32>
    %21 = arith.truncf %20 : vector<16x16xf32> to vector<16x16xbf16>
    %22 = vector.extract_strided_slice %5 {offsets = [0, 0], sizes = [16, 32], strides = [1, 1]} : vector<16x128xbf16> to vector<16x32xbf16>
    %cst_9 = arith.constant dense<0.000000e+00> : vector<16x32xf32>
    %23 = tpu.matmul %21, %22, %cst_9 {dimension_numbers = #tpu.dot_dimension_numbers<[1], [0], [0], [1], [0, 0, 1, 1], [], []>} : vector<16x16xbf16>, vector<16x32xbf16>, vector<16x32xf32> -> vector<16x32xf32>
    %24 = vector.extract_strided_slice %1 {offsets = [0, 32], sizes = [16, 32], strides = [1, 1]} : vector<16x128xbf16> to vector<16x32xbf16>
    %25 = vector.extract_strided_slice %3 {offsets = [0, 32], sizes = [16, 32], strides = [1, 1]} : vector<16x128xbf16> to vector<16x32xbf16>
    %cst_10 = arith.constant dense<0.000000e+00> : vector<16x16xf32>
    %26 = tpu.matmul %24, %25, %cst_10 {dimension_numbers = #tpu.dot_dimension_numbers<[1], [1], [0], [0], [0, 0, 1, 0], [], []>} : vector<16x32xbf16>, vector<16x32xbf16>, vector<16x16xf32> -> vector<16x16xf32>
    %cst_11 = arith.constant 0.176776692 : f32
    %27 = vector.broadcast %cst_11 : f32 to vector<16x16xf32>
    %28 = arith.mulf %26, %27 : vector<16x16xf32>
    %cst_12 = arith.constant dense<0xFF800000> : vector<16xf32>
    %29 = vector.multi_reduction <maximumf>, %28, %cst_12 [1] : vector<16x16xf32> to vector<16xf32>
    %30 = vector.shape_cast %29 : vector<16xf32> to vector<16x1xf32>
    %31 = vector.broadcast %30 : vector<16x1xf32> to vector<16x16xf32>
    %32 = arith.subf %28, %31 : vector<16x16xf32>
    %33 = math.exp %32 : vector<16x16xf32>
    %cst_13 = arith.constant dense<0.000000e+00> : vector<16xf32>
    %34 = vector.multi_reduction <add>, %33, %cst_13 [1] : vector<16x16xf32> to vector<16xf32>
    %35 = vector.shape_cast %34 : vector<16xf32> to vector<16x1xf32>
    %36 = tpu.reciprocal %35 {approx = true} : vector<16x1xf32> -> vector<16x1xf32>
    %37 = vector.broadcast %36 : vector<16x1xf32> to vector<16x16xf32>
    %38 = arith.mulf %33, %37 : vector<16x16xf32>
    %39 = arith.truncf %38 : vector<16x16xf32> to vector<16x16xbf16>
    %40 = vector.extract_strided_slice %5 {offsets = [0, 32], sizes = [16, 32], strides = [1, 1]} : vector<16x128xbf16> to vector<16x32xbf16>
    %cst_14 = arith.constant dense<0.000000e+00> : vector<16x32xf32>
    %41 = tpu.matmul %39, %40, %cst_14 {dimension_numbers = #tpu.dot_dimension_numbers<[1], [0], [0], [1], [0, 0, 1, 1], [], []>} : vector<16x16xbf16>, vector<16x32xbf16>, vector<16x32xf32> -> vector<16x32xf32>
    %42 = vector.extract_strided_slice %1 {offsets = [0, 64], sizes = [16, 32], strides = [1, 1]} : vector<16x128xbf16> to vector<16x32xbf16>
    %43 = vector.extract_strided_slice %3 {offsets = [0, 64], sizes = [16, 32], strides = [1, 1]} : vector<16x128xbf16> to vector<16x32xbf16>
    %cst_15 = arith.constant dense<0.000000e+00> : vector<16x16xf32>
    %44 = tpu.matmul %42, %43, %cst_15 {dimension_numbers = #tpu.dot_dimension_numbers<[1], [1], [0], [0], [0, 0, 1, 0], [], []>} : vector<16x32xbf16>, vector<16x32xbf16>, vector<16x16xf32> -> vector<16x16xf32>
    %cst_16 = arith.constant 0.176776692 : f32
    %45 = vector.broadcast %cst_16 : f32 to vector<16x16xf32>
    %46 = arith.mulf %44, %45 : vector<16x16xf32>
    %cst_17 = arith.constant dense<0xFF800000> : vector<16xf32>
    %47 = vector.multi_reduction <maximumf>, %46, %cst_17 [1] : vector<16x16xf32> to vector<16xf32>
    %48 = vector.shape_cast %47 : vector<16xf32> to vector<16x1xf32>
    %49 = vector.broadcast %48 : vector<16x1xf32> to vector<16x16xf32>
    %50 = arith.subf %46, %49 : vector<16x16xf32>
    %51 = math.exp %50 : vector<16x16xf32>
    %cst_18 = arith.constant dense<0.000000e+00> : vector<16xf32>
    %52 = vector.multi_reduction <add>, %51, %cst_18 [1] : vector<16x16xf32> to vector<16xf32>
    %53 = vector.shape_cast %52 : vector<16xf32> to vector<16x1xf32>
    %54 = tpu.reciprocal %53 {approx = true} : vector<16x1xf32> -> vector<16x1xf32>
    %55 = vector.broadcast %54 : vector<16x1xf32> to vector<16x16xf32>
    %56 = arith.mulf %51, %55 : vector<16x16xf32>
    %57 = arith.truncf %56 : vector<16x16xf32> to vector<16x16xbf16>
    %58 = vector.extract_strided_slice %5 {offsets = [0, 64], sizes = [16, 32], strides = [1, 1]} : vector<16x128xbf16> to vector<16x32xbf16>
    %cst_19 = arith.constant dense<0.000000e+00> : vector<16x32xf32>
    %59 = tpu.matmul %57, %58, %cst_19 {dimension_numbers = #tpu.dot_dimension_numbers<[1], [0], [0], [1], [0, 0, 1, 1], [], []>} : vector<16x16xbf16>, vector<16x32xbf16>, vector<16x32xf32> -> vector<16x32xf32>
    %60 = vector.extract_strided_slice %1 {offsets = [0, 96], sizes = [16, 32], strides = [1, 1]} : vector<16x128xbf16> to vector<16x32xbf16>
    %61 = vector.extract_strided_slice %3 {offsets = [0, 96], sizes = [16, 32], strides = [1, 1]} : vector<16x128xbf16> to vector<16x32xbf16>
    %cst_20 = arith.constant dense<0.000000e+00> : vector<16x16xf32>
    %62 = tpu.matmul %60, %61, %cst_20 {dimension_numbers = #tpu.dot_dimension_numbers<[1], [1], [0], [0], [0, 0, 1, 0], [], []>} : vector<16x32xbf16>, vector<16x32xbf16>, vector<16x16xf32> -> vector<16x16xf32>
    %cst_21 = arith.constant 0.176776692 : f32
    %63 = vector.broadcast %cst_21 : f32 to vector<16x16xf32>
    %64 = arith.mulf %62, %63 : vector<16x16xf32>
    %cst_22 = arith.constant dense<0xFF800000> : vector<16xf32>
    %65 = vector.multi_reduction <maximumf>, %64, %cst_22 [1] : vector<16x16xf32> to vector<16xf32>
    %66 = vector.shape_cast %65 : vector<16xf32> to vector<16x1xf32>
    %67 = vector.broadcast %66 : vector<16x1xf32> to vector<16x16xf32>
    %68 = arith.subf %64, %67 : vector<16x16xf32>
    %69 = math.exp %68 : vector<16x16xf32>
    %cst_23 = arith.constant dense<0.000000e+00> : vector<16xf32>
    %70 = vector.multi_reduction <add>, %69, %cst_23 [1] : vector<16x16xf32> to vector<16xf32>
    %71 = vector.shape_cast %70 : vector<16xf32> to vector<16x1xf32>
    %72 = tpu.reciprocal %71 {approx = true} : vector<16x1xf32> -> vector<16x1xf32>
    %73 = vector.broadcast %72 : vector<16x1xf32> to vector<16x16xf32>
    %74 = arith.mulf %69, %73 : vector<16x16xf32>
    %75 = arith.truncf %74 : vector<16x16xf32> to vector<16x16xbf16>
    %76 = vector.extract_strided_slice %5 {offsets = [0, 96], sizes = [16, 32], strides = [1, 1]} : vector<16x128xbf16> to vector<16x32xbf16>
    %cst_24 = arith.constant dense<0.000000e+00> : vector<16x32xf32>
    %77 = tpu.matmul %75, %76, %cst_24 {dimension_numbers = #tpu.dot_dimension_numbers<[1], [0], [0], [1], [0, 0, 1, 1], [], []>} : vector<16x16xbf16>, vector<16x32xbf16>, vector<16x32xf32> -> vector<16x32xf32>
    %78 = tpu.concatenate %23, %41, %59, %77 in 1 : vector<16x32xf32>, vector<16x32xf32>, vector<16x32xf32>, vector<16x32xf32> -> vector<16x128xf32>
    %79 = arith.truncf %78 : vector<16x128xf32> to vector<16x128xbf16>
    %c0_25 = arith.constant 0 : index
    %c0_26 = arith.constant 0 : index
    %c0_27 = arith.constant 0 : index
    %80 = vector.load %arg2[%c0_25, %c0_26, %c0_27] : memref<1x16x128xbf16, #tpu.memory_space<vmem>>, vector<1x16x128xbf16>
    %81 = vector.shape_cast %80 : vector<1x16x128xbf16> to vector<16x128xbf16>
    %82 = vector.shape_cast %79 : vector<16x128xbf16> to vector<1x16x128xbf16>
    tpu.vector_store %arg2[%c0_25, %c0_26, %c0_27], %82 {strides = array<i32>} : memref<1x16x128xbf16, #tpu.memory_space<vmem>>, vector<1x16x128xbf16>,
    return
  }
  func.func @transform_0(%arg0: i32) -> (i32, i32, i32) {
    %c0_i32 = arith.constant 0 : i32
    %c0_i32_0 = arith.constant 0 : i32
    %c0_i32_1 = arith.constant 0 : i32
    return %arg0, %c0_i32, %c0_i32_0 : i32, i32, i32
  }
  func.func @transform_1(%arg0: i32) -> (i32, i32, i32) {
    %c0_i32 = arith.constant 0 : i32
    %c0_i32_0 = arith.constant 0 : i32
    %c0_i32_1 = arith.constant 0 : i32
    return %arg0, %c0_i32, %c0_i32_0 : i32, i32, i32
  }
}

module attributes {stable_mosaic.version = 11 : i64} {
  func.func @_linear_kernel(%arg0: i32, %arg1: i32, %arg2: i32, %arg3: memref<32x128xbf16, #tpu.memory_space<vmem>>, %arg4: memref<128x256xbf16, #tpu.memory_space<vmem>>, %arg5: memref<1x256xf32, #tpu.memory_space<vmem>>, %arg6: memref<32x256xbf16, #tpu.memory_space<vmem>>, %arg7: memref<32x256xf32, #tpu.memory_space<vmem>>) attributes {dimension_semantics = [#tpu.dimension_semantics<parallel>, #tpu.dimension_semantics<parallel>, #tpu.dimension_semantics<arbitrary>], iteration_bounds = array<i64: 1, 2, 1>, scalar_prefetch = 0 : i64, scratch_operands = 1 : i64, tpu.core_type = #tpu.core_type<tc>, window_params = [{transform_indices = @transform_0, window_bounds = array<i64: 32, 128>}, {transform_indices = @transform_1, window_bounds = array<i64: 128, 256>}, {transform_indices = @transform_2, window_bounds = array<i64: 1, 256>}, {transform_indices = @transform_3, window_bounds = array<i64: 32, 256>}]} {
    %c0_i32 = arith.constant 0 : i32
    %0 = arith.cmpi eq, %arg2, %c0_i32 : i32
    %1 = arith.extui %0 : i1 to i32
    %c0_i32_0 = arith.constant 0 : i32
    %2 = arith.cmpi ne, %1, %c0_i32_0 : i32
    scf.if %2 {
      %cst_10 = arith.constant 0.000000e+00 : f32
      %12 = vector.broadcast %cst_10 : f32 to vector<32x256xf32>
      %c0_11 = arith.constant 0 : index
      %c0_12 = arith.constant 0 : index
      %13 = vector.load %arg7[%c0_11, %c0_12] : memref<32x256xf32, #tpu.memory_space<vmem>>, vector<32x256xf32>
      tpu.vector_store %arg7[%c0_11, %c0_12], %12 {strides = array<i32>} : memref<32x256xf32, #tpu.memory_space<vmem>>, vector<32x256xf32>,
    } else {
    }
    %c0 = arith.constant 0 : index
    %c0_1 = arith.constant 0 : index
    %3 = vector.load %arg7[%c0, %c0_1] : memref<32x256xf32, #tpu.memory_space<vmem>>, vector<32x256xf32>
    %c0_2 = arith.constant 0 : index
    %c0_3 = arith.constant 0 : index
    %4 = vector.load %arg3[%c0_2, %c0_3] : memref<32x128xbf16, #tpu.memory_space<vmem>>, vector<32x128xbf16>
    %c0_4 = arith.constant 0 : index
    %c0_5 = arith.constant 0 : index
    %5 = vector.load %arg4[%c0_4, %c0_5] : memref<128x256xbf16, #tpu.memory_space<vmem>>, vector<128x256xbf16>
    %cst = arith.constant dense<0.000000e+00> : vector<32x256xf32>
    %6 = tpu.matmul %4, %5, %cst {dimension_numbers = #tpu.dot_dimension_numbers<[1], [0], [0], [1], [0, 0, 1, 1], [], []>} : vector<32x128xbf16>, vector<128x256xbf16>, vector<32x256xf32> -> vector<32x256xf32>
    %7 = arith.addf %3, %6 : vector<32x256xf32>
    %c0_6 = arith.constant 0 : index
    %c0_7 = arith.constant 0 : index
    %8 = vector.load %arg7[%c0_6, %c0_7] : memref<32x256xf32, #tpu.memory_space<vmem>>, vector<32x256xf32>
    tpu.vector_store %arg7[%c0_6, %c0_7], %7 {strides = array<i32>} : memref<32x256xf32, #tpu.memory_space<vmem>>, vector<32x256xf32>,
    %c0_i32_8 = arith.constant 0 : i32
    %9 = arith.cmpi eq, %arg2, %c0_i32_8 : i32
    %10 = arith.extui %9 : i1 to i32
    %c0_i32_9 = arith.constant 0 : i32
    %11 = arith.cmpi ne, %10, %c0_i32_9 : i32
    scf.if %11 {
      %c0_10 = arith.constant 0 : index
      %c0_11 = arith.constant 0 : index
      %12 = vector.load %arg7[%c0_10, %c0_11] : memref<32x256xf32, #tpu.memory_space<vmem>>, vector<32x256xf32>
      %c0_12 = arith.constant 0 : index
      %c0_13 = arith.constant 0 : index
      %13 = vector.load %arg5[%c0_12, %c0_13] : memref<1x256xf32, #tpu.memory_space<vmem>>, vector<1x256xf32>
      %14 = vector.broadcast %13 : vector<1x256xf32> to vector<32x256xf32>
      %15 = arith.addf %12, %14 : vector<32x256xf32>
      %cst_14 = arith.constant 0.000000e+00 : f32
      %16 = vector.broadcast %cst_14 : f32 to vector<32x256xf32>
      %17 = arith.maximumf %15, %16 : vector<32x256xf32>
      %18 = arith.truncf %17 : vector<32x256xf32> to vector<32x256xbf16>
      %c0_15 = arith.constant 0 : index
      %c0_16 = arith.constant 0 : index
      %19 = vector.load %arg6[%c0_15, %c0_16] : memref<32x256xbf16, #tpu.memory_space<vmem>>, vector<32x256xbf16>
      tpu.vector_store %arg6[%c0_15, %c0_16], %18 {strides = array<i32>} : memref<32x256xbf16, #tpu.memory_space<vmem>>, vector<32x256xbf16>,
    } else {
    }
    return
  }
  func.func @transform_0(%arg0: i32, %arg1: i32, %arg2: i32) -> (i32, i32) {
    %c0_i32 = arith.constant 0 : i32
    return %arg0, %arg2 : i32, i32
  }
  func.func @transform_1(%arg0: i32, %arg1: i32, %arg2: i32) -> (i32, i32) {
    %c0_i32 = arith.constant 0 : i32
    return %arg2, %arg1 : i32, i32
  }
  func.func @transform_2(%arg0: i32, %arg1: i32, %arg2: i32) -> (i32, i32) {
    %c0_i32 = arith.constant 0 : i32
    %c0_i32_0 = arith.constant 0 : i32
    return %c0_i32, %arg1 : i32, i32
  }
  func.func @transform_3(%arg0: i32, %arg1: i32, %arg2: i32) -> (i32, i32) {
    %c0_i32 = arith.constant 0 : i32
    return %arg0, %arg1 : i32, i32
  }
}

module attributes {stable_mosaic.version = 11 : i64} {
  func.func @_linear_kernel(%arg0: i32, %arg1: i32, %arg2: i32, %arg3: memref<32x128xbf16, #tpu.memory_space<vmem>>, %arg4: memref<128x256xbf16, #tpu.memory_space<vmem>>, %arg5: memref<1x256xf32, #tpu.memory_space<vmem>>, %arg6: memref<32x256xbf16, #tpu.memory_space<vmem>>, %arg7: memref<32x256xf32, #tpu.memory_space<vmem>>) attributes {dimension_semantics = [#tpu.dimension_semantics<parallel>, #tpu.dimension_semantics<parallel>, #tpu.dimension_semantics<arbitrary>], iteration_bounds = array<i64: 1, 1, 1>, scalar_prefetch = 0 : i64, scratch_operands = 1 : i64, tpu.core_type = #tpu.core_type<tc>, window_params = [{transform_indices = @transform_0, window_bounds = array<i64: 32, 128>}, {transform_indices = @transform_1, window_bounds = array<i64: 128, 256>}, {transform_indices = @transform_2, window_bounds = array<i64: 1, 256>}, {transform_indices = @transform_3, window_bounds = array<i64: 32, 256>}]} {
    %c0_i32 = arith.constant 0 : i32
    %0 = arith.cmpi eq, %arg2, %c0_i32 : i32
    %1 = arith.extui %0 : i1 to i32
    %c0_i32_0 = arith.constant 0 : i32
    %2 = arith.cmpi ne, %1, %c0_i32_0 : i32
    scf.if %2 {
      %cst_10 = arith.constant 0.000000e+00 : f32
      %12 = vector.broadcast %cst_10 : f32 to vector<32x256xf32>
      %c0_11 = arith.constant 0 : index
      %c0_12 = arith.constant 0 : index
      %13 = vector.load %arg7[%c0_11, %c0_12] : memref<32x256xf32, #tpu.memory_space<vmem>>, vector<32x256xf32>
      tpu.vector_store %arg7[%c0_11, %c0_12], %12 {strides = array<i32>} : memref<32x256xf32, #tpu.memory_space<vmem>>, vector<32x256xf32>,
    } else {
    }
    %c0 = arith.constant 0 : index
    %c0_1 = arith.constant 0 : index
    %3 = vector.load %arg7[%c0, %c0_1] : memref<32x256xf32, #tpu.memory_space<vmem>>, vector<32x256xf32>
    %c0_2 = arith.constant 0 : index
    %c0_3 = arith.constant 0 : index
    %4 = vector.load %arg3[%c0_2, %c0_3] : memref<32x128xbf16, #tpu.memory_space<vmem>>, vector<32x128xbf16>
    %c0_4 = arith.constant 0 : index
    %c0_5 = arith.constant 0 : index
    %5 = vector.load %arg4[%c0_4, %c0_5] : memref<128x256xbf16, #tpu.memory_space<vmem>>, vector<128x256xbf16>
    %cst = arith.constant dense<0.000000e+00> : vector<32x256xf32>
    %6 = tpu.matmul %4, %5, %cst {dimension_numbers = #tpu.dot_dimension_numbers<[1], [0], [0], [1], [0, 0, 1, 1], [], []>} : vector<32x128xbf16>, vector<128x256xbf16>, vector<32x256xf32> -> vector<32x256xf32>
    %7 = arith.addf %3, %6 : vector<32x256xf32>
    %c0_6 = arith.constant 0 : index
    %c0_7 = arith.constant 0 : index
    %8 = vector.load %arg7[%c0_6, %c0_7] : memref<32x256xf32, #tpu.memory_space<vmem>>, vector<32x256xf32>
    tpu.vector_store %arg7[%c0_6, %c0_7], %7 {strides = array<i32>} : memref<32x256xf32, #tpu.memory_space<vmem>>, vector<32x256xf32>,
    %c0_i32_8 = arith.constant 0 : i32
    %9 = arith.cmpi eq, %arg2, %c0_i32_8 : i32
    %10 = arith.extui %9 : i1 to i32
    %c0_i32_9 = arith.constant 0 : i32
    %11 = arith.cmpi ne, %10, %c0_i32_9 : i32
    scf.if %11 {
      %c0_10 = arith.constant 0 : index
      %c0_11 = arith.constant 0 : index
      %12 = vector.load %arg7[%c0_10, %c0_11] : memref<32x256xf32, #tpu.memory_space<vmem>>, vector<32x256xf32>
      %c0_12 = arith.constant 0 : index
      %c0_13 = arith.constant 0 : index
      %13 = vector.load %arg5[%c0_12, %c0_13] : memref<1x256xf32, #tpu.memory_space<vmem>>, vector<1x256xf32>
      %14 = vector.broadcast %13 : vector<1x256xf32> to vector<32x256xf32>
      %15 = arith.addf %12, %14 : vector<32x256xf32>
      %16 = arith.truncf %15 : vector<32x256xf32> to vector<32x256xbf16>
      %c0_14 = arith.constant 0 : index
      %c0_15 = arith.constant 0 : index
      %17 = vector.load %arg6[%c0_14, %c0_15] : memref<32x256xbf16, #tpu.memory_space<vmem>>, vector<32x256xbf16>
      tpu.vector_store %arg6[%c0_14, %c0_15], %16 {strides = array<i32>} : memref<32x256xbf16, #tpu.memory_space<vmem>>, vector<32x256xbf16>,
    } else {
    }
    return
  }
  func.func @transform_0(%arg0: i32, %arg1: i32, %arg2: i32) -> (i32, i32) {
    %c0_i32 = arith.constant 0 : i32
    return %arg0, %arg2 : i32, i32
  }
  func.func @transform_1(%arg0: i32, %arg1: i32, %arg2: i32) -> (i32, i32) {
    %c0_i32 = arith.constant 0 : i32
    return %arg2, %arg1 : i32, i32
  }
  func.func @transform_2(%arg0: i32, %arg1: i32, %arg2: i32) -> (i32, i32) {
    %c0_i32 = arith.constant 0 : i32
    %c0_i32_0 = arith.constant 0 : i32
    return %c0_i32, %arg1 : i32, i32
  }
  func.func @transform_3(%arg0: i32, %arg1: i32, %arg2: i32) -> (i32, i32) {
    %c0_i32 = arith.constant 0 : i32
    return %arg0, %arg1 : i32, i32
  }
}

module attributes {stable_mosaic.version = 11 : i64} {
  func.func @_nearest_kernel(%arg0: i32, %arg1: i32, %arg2: memref<32x128xbf16, #tpu.memory_space<vmem>>, %arg3: memref<512x128xbf16, #tpu.memory_space<vmem>>, %arg4: memref<1x512xf32, #tpu.memory_space<vmem>>, %arg5: memref<32x128xi32, #tpu.memory_space<vmem>>, %arg6: memref<32x1xf32, #tpu.memory_space<vmem>>, %arg7: memref<32x1xi32, #tpu.memory_space<vmem>>) attributes {dimension_semantics = [#tpu.dimension_semantics<parallel>, #tpu.dimension_semantics<arbitrary>], iteration_bounds = array<i64: 1, 2>, scalar_prefetch = 0 : i64, scratch_operands = 2 : i64, tpu.core_type = #tpu.core_type<tc>, window_params = [{transform_indices = @transform_0, window_bounds = array<i64: 32, 128>}, {transform_indices = @transform_1, window_bounds = array<i64: 512, 128>}, {transform_indices = @transform_2, window_bounds = array<i64: 1, 512>}, {transform_indices = @transform_3, window_bounds = array<i64: 32, 128>}]} {
    %c0_i32 = arith.constant 0 : i32
    %0 = arith.cmpi eq, %arg1, %c0_i32 : i32
    %1 = arith.extui %0 : i1 to i32
    %c0_i32_0 = arith.constant 0 : i32
    %2 = arith.cmpi ne, %1, %c0_i32_0 : i32
    scf.if %2 {
      %cst_20 = arith.constant 0x7F800000 : f32
      %34 = vector.broadcast %cst_20 : f32 to vector<32x1xf32>
      %c0_21 = arith.constant 0 : index
      %c0_22 = arith.constant 0 : index
      %35 = vector.load %arg6[%c0_21, %c0_22] : memref<32x1xf32, #tpu.memory_space<vmem>>, vector<32x1xf32>
      tpu.vector_store %arg6[%c0_21, %c0_22], %34 {strides = array<i32>} : memref<32x1xf32, #tpu.memory_space<vmem>>, vector<32x1xf32>,
      %c0_i32_23 = arith.constant 0 : i32
      %36 = vector.broadcast %c0_i32_23 : i32 to vector<32x1xi32>
      %c0_24 = arith.constant 0 : index
      %c0_25 = arith.constant 0 : index
      %37 = vector.load %arg7[%c0_24, %c0_25] : memref<32x1xi32, #tpu.memory_space<vmem>>, vector<32x1xi32>
      tpu.vector_store %arg7[%c0_24, %c0_25], %36 {strides = array<i32>} : memref<32x1xi32, #tpu.memory_space<vmem>>, vector<32x1xi32>,
    } else {
    }
    %c0 = arith.constant 0 : index
    %c0_1 = arith.constant 0 : index
    %3 = vector.load %arg2[%c0, %c0_1] : memref<32x128xbf16, #tpu.memory_space<vmem>>, vector<32x128xbf16>
    %c0_2 = arith.constant 0 : index
    %c0_3 = arith.constant 0 : index
    %4 = vector.load %arg3[%c0_2, %c0_3] : memref<512x128xbf16, #tpu.memory_space<vmem>>, vector<512x128xbf16>
    %cst = arith.constant dense<0.000000e+00> : vector<32x512xf32>
    %5 = tpu.matmul %3, %4, %cst {dimension_numbers = #tpu.dot_dimension_numbers<[1], [1], [0], [0], [0, 0, 1, 0], [], []>} : vector<32x128xbf16>, vector<512x128xbf16>, vector<32x512xf32> -> vector<32x512xf32>
    %c0_4 = arith.constant 0 : index
    %c0_5 = arith.constant 0 : index
    %6 = vector.load %arg4[%c0_4, %c0_5] : memref<1x512xf32, #tpu.memory_space<vmem>>, vector<1x512xf32>
    %cst_6 = arith.constant 2.000000e+00 : f32
    %7 = vector.broadcast %cst_6 : f32 to vector<32x512xf32>
    %8 = arith.mulf %7, %5 : vector<32x512xf32>
    %9 = vector.broadcast %6 : vector<1x512xf32> to vector<32x512xf32>
    %10 = arith.subf %9, %8 : vector<32x512xf32>
    %cst_7 = arith.constant dense<0x7F800000> : vector<32xf32>
    %11 = vector.multi_reduction <minimumf>, %10, %cst_7 [1] : vector<32x512xf32> to vector<32xf32>
    %12 = vector.shape_cast %11 : vector<32xf32> to vector<32x1xf32>
    %13 = tpu.iota {dimensions = array<i32: 1>} : vector<32x512xi32>
    %c512_i32 = arith.constant 512 : i32
    %14 = arith.muli %arg1, %c512_i32 : i32
    %15 = vector.broadcast %14 : i32 to vector<32x512xi32>
    %16 = arith.addi %13, %15 : vector<32x512xi32>
    %17 = vector.broadcast %12 : vector<32x1xf32> to vector<32x512xf32>
    %18 = arith.cmpf oeq, %10, %17 : vector<32x512xf32>
    %c1073741824_i32 = arith.constant 1073741824 : i32
    %19 = vector.broadcast %c1073741824_i32 : i32 to vector<32x512xi32>
    %20 = arith.select %18, %16, %19 : vector<32x512xi1>, vector<32x512xi32>
    %cst_8 = arith.constant dense<2147483647> : vector<32xi32>
    %21 = vector.multi_reduction <minsi>, %20, %cst_8 [1] : vector<32x512xi32> to vector<32xi32>
    %22 = vector.shape_cast %21 : vector<32xi32> to vector<32x1xi32>
    %c0_9 = arith.constant 0 : index
    %c0_10 = arith.constant 0 : index
    %23 = vector.load %arg6[%c0_9, %c0_10] : memref<32x1xf32, #tpu.memory_space<vmem>>, vector<32x1xf32>
    %24 = arith.cmpf olt, %12, %23 : vector<32x1xf32>
    %c0_11 = arith.constant 0 : index
    %c0_12 = arith.constant 0 : index
    %25 = vector.load %arg7[%c0_11, %c0_12] : memref<32x1xi32, #tpu.memory_space<vmem>>, vector<32x1xi32>
    %26 = arith.select %24, %22, %25 : vector<32x1xi1>, vector<32x1xi32>
    %c0_13 = arith.constant 0 : index
    %c0_14 = arith.constant 0 : index
    %27 = vector.load %arg7[%c0_13, %c0_14] : memref<32x1xi32, #tpu.memory_space<vmem>>, vector<32x1xi32>
    tpu.vector_store %arg7[%c0_13, %c0_14], %26 {strides = array<i32>} : memref<32x1xi32, #tpu.memory_space<vmem>>, vector<32x1xi32>,
    %c0_15 = arith.constant 0 : index
    %c0_16 = arith.constant 0 : index
    %28 = vector.load %arg6[%c0_15, %c0_16] : memref<32x1xf32, #tpu.memory_space<vmem>>, vector<32x1xf32>
    %29 = arith.select %24, %12, %28 : vector<32x1xi1>, vector<32x1xf32>
    %c0_17 = arith.constant 0 : index
    %c0_18 = arith.constant 0 : index
    %30 = vector.load %arg6[%c0_17, %c0_18] : memref<32x1xf32, #tpu.memory_space<vmem>>, vector<32x1xf32>
    tpu.vector_store %arg6[%c0_17, %c0_18], %29 {strides = array<i32>} : memref<32x1xf32, #tpu.memory_space<vmem>>, vector<32x1xf32>,
    %c1_i32 = arith.constant 1 : i32
    %31 = arith.cmpi eq, %arg1, %c1_i32 : i32
    %32 = arith.extui %31 : i1 to i32
    %c0_i32_19 = arith.constant 0 : i32
    %33 = arith.cmpi ne, %32, %c0_i32_19 : i32
    scf.if %33 {
      %c0_20 = arith.constant 0 : index
      %c0_21 = arith.constant 0 : index
      %34 = vector.load %arg7[%c0_20, %c0_21] : memref<32x1xi32, #tpu.memory_space<vmem>>, vector<32x1xi32>
      %35 = vector.shape_cast %34 : vector<32x1xi32> to vector<32x1xi32>
      %36 = vector.broadcast %35 : vector<32x1xi32> to vector<32x128xi32>
      %c0_22 = arith.constant 0 : index
      %c0_23 = arith.constant 0 : index
      %37 = vector.load %arg5[%c0_22, %c0_23] : memref<32x128xi32, #tpu.memory_space<vmem>>, vector<32x128xi32>
      tpu.vector_store %arg5[%c0_22, %c0_23], %36 {strides = array<i32>} : memref<32x128xi32, #tpu.memory_space<vmem>>, vector<32x128xi32>,
    } else {
    }
    return
  }
  func.func @transform_0(%arg0: i32, %arg1: i32) -> (i32, i32) {
    %c0_i32 = arith.constant 0 : i32
    %c0_i32_0 = arith.constant 0 : i32
    return %arg0, %c0_i32 : i32, i32
  }
  func.func @transform_1(%arg0: i32, %arg1: i32) -> (i32, i32) {
    %c0_i32 = arith.constant 0 : i32
    %c0_i32_0 = arith.constant 0 : i32
    return %arg1, %c0_i32 : i32, i32
  }
  func.func @transform_2(%arg0: i32, %arg1: i32) -> (i32, i32) {
    %c0_i32 = arith.constant 0 : i32
    %c0_i32_0 = arith.constant 0 : i32
    return %c0_i32, %arg1 : i32, i32
  }
  func.func @transform_3(%arg0: i32, %arg1: i32) -> (i32, i32) {
    %c0_i32 = arith.constant 0 : i32
    %c0_i32_0 = arith.constant 0 : i32
    return %arg0, %c0_i32 : i32, i32
  }
}

module attributes {stable_mosaic.version = 11 : i64} {
  func.func @_cross_attn_kernel(%arg0: i32, %arg1: memref<1x16x128xbf16, #tpu.memory_space<vmem>>, %arg2: memref<1x16x256xbf16, #tpu.memory_space<vmem>>, %arg3: memref<1x16x128xbf16, #tpu.memory_space<vmem>>) attributes {dimension_semantics = [#tpu.dimension_semantics<parallel>], iteration_bounds = array<i64: 2>, scalar_prefetch = 0 : i64, scratch_operands = 0 : i64, tpu.core_type = #tpu.core_type<tc>, window_params = [{transform_indices = @transform_0, window_bounds = array<i64: 1, 16, 128>}, {transform_indices = @transform_1, window_bounds = array<i64: 1, 16, 256>}, {transform_indices = @transform_2, window_bounds = array<i64: 1, 16, 128>}]} {
    %c0 = arith.constant 0 : index
    %c0_0 = arith.constant 0 : index
    %c0_1 = arith.constant 0 : index
    %0 = vector.load %arg2[%c0, %c0_0, %c0_1] : memref<1x16x256xbf16, #tpu.memory_space<vmem>>, vector<1x16x128xbf16>
    %1 = vector.shape_cast %0 : vector<1x16x128xbf16> to vector<16x128xbf16>
    %c0_2 = arith.constant 0 : index
    %c0_3 = arith.constant 0 : index
    %c128 = arith.constant 128 : index
    %2 = vector.load %arg2[%c0_2, %c0_3, %c128] : memref<1x16x256xbf16, #tpu.memory_space<vmem>>, vector<1x16x128xbf16>
    %3 = vector.shape_cast %2 : vector<1x16x128xbf16> to vector<16x128xbf16>
    %c0_4 = arith.constant 0 : index
    %c0_5 = arith.constant 0 : index
    %c0_6 = arith.constant 0 : index
    %4 = vector.load %arg1[%c0_4, %c0_5, %c0_6] : memref<1x16x128xbf16, #tpu.memory_space<vmem>>, vector<1x16x128xbf16>
    %5 = vector.shape_cast %4 : vector<1x16x128xbf16> to vector<16x128xbf16>
    %6 = vector.extract_strided_slice %5 {offsets = [0, 0], sizes = [16, 32], strides = [1, 1]} : vector<16x128xbf16> to vector<16x32xbf16>
    %7 = vector.extract_strided_slice %1 {offsets = [0, 0], sizes = [16, 32], strides = [1, 1]} : vector<16x128xbf16> to vector<16x32xbf16>
    %cst = arith.constant dense<0.000000e+00> : vector<16x16xf32>
    %8 = tpu.matmul %6, %7, %cst {dimension_numbers = #tpu.dot_dimension_numbers<[1], [1], [0], [0], [0, 0, 1, 0], [], []>} : vector<16x32xbf16>, vector<16x32xbf16>, vector<16x16xf32> -> vector<16x16xf32>
    %cst_7 = arith.constant 0.176776692 : f32
    %9 = vector.broadcast %cst_7 : f32 to vector<16x16xf32>
    %10 = arith.mulf %8, %9 : vector<16x16xf32>
    %cst_8 = arith.constant dense<0xFF800000> : vector<16xf32>
    %11 = vector.multi_reduction <maximumf>, %10, %cst_8 [1] : vector<16x16xf32> to vector<16xf32>
    %12 = vector.shape_cast %11 : vector<16xf32> to vector<16x1xf32>
    %13 = vector.broadcast %12 : vector<16x1xf32> to vector<16x16xf32>
    %14 = arith.subf %10, %13 : vector<16x16xf32>
    %15 = math.exp %14 : vector<16x16xf32>
    %cst_9 = arith.constant dense<0.000000e+00> : vector<16xf32>
    %16 = vector.multi_reduction <add>, %15, %cst_9 [1] : vector<16x16xf32> to vector<16xf32>
    %17 = vector.shape_cast %16 : vector<16xf32> to vector<16x1xf32>
    %18 = tpu.reciprocal %17 {approx = true} : vector<16x1xf32> -> vector<16x1xf32>
    %19 = vector.broadcast %18 : vector<16x1xf32> to vector<16x16xf32>
    %20 = arith.mulf %15, %19 : vector<16x16xf32>
    %21 = arith.truncf %20 : vector<16x16xf32> to vector<16x16xbf16>
    %22 = vector.extract_strided_slice %3 {offsets = [0, 0], sizes = [16, 32], strides = [1, 1]} : vector<16x128xbf16> to vector<16x32xbf16>
    %cst_10 = arith.constant dense<0.000000e+00> : vector<16x32xf32>
    %23 = tpu.matmul %21, %22, %cst_10 {dimension_numbers = #tpu.dot_dimension_numbers<[1], [0], [0], [1], [0, 0, 1, 1], [], []>} : vector<16x16xbf16>, vector<16x32xbf16>, vector<16x32xf32> -> vector<16x32xf32>
    %24 = vector.extract_strided_slice %5 {offsets = [0, 32], sizes = [16, 32], strides = [1, 1]} : vector<16x128xbf16> to vector<16x32xbf16>
    %25 = vector.extract_strided_slice %1 {offsets = [0, 32], sizes = [16, 32], strides = [1, 1]} : vector<16x128xbf16> to vector<16x32xbf16>
    %cst_11 = arith.constant dense<0.000000e+00> : vector<16x16xf32>
    %26 = tpu.matmul %24, %25, %cst_11 {dimension_numbers = #tpu.dot_dimension_numbers<[1], [1], [0], [0], [0, 0, 1, 0], [], []>} : vector<16x32xbf16>, vector<16x32xbf16>, vector<16x16xf32> -> vector<16x16xf32>
    %cst_12 = arith.constant 0.176776692 : f32
    %27 = vector.broadcast %cst_12 : f32 to vector<16x16xf32>
    %28 = arith.mulf %26, %27 : vector<16x16xf32>
    %cst_13 = arith.constant dense<0xFF800000> : vector<16xf32>
    %29 = vector.multi_reduction <maximumf>, %28, %cst_13 [1] : vector<16x16xf32> to vector<16xf32>
    %30 = vector.shape_cast %29 : vector<16xf32> to vector<16x1xf32>
    %31 = vector.broadcast %30 : vector<16x1xf32> to vector<16x16xf32>
    %32 = arith.subf %28, %31 : vector<16x16xf32>
    %33 = math.exp %32 : vector<16x16xf32>
    %cst_14 = arith.constant dense<0.000000e+00> : vector<16xf32>
    %34 = vector.multi_reduction <add>, %33, %cst_14 [1] : vector<16x16xf32> to vector<16xf32>
    %35 = vector.shape_cast %34 : vector<16xf32> to vector<16x1xf32>
    %36 = tpu.reciprocal %35 {approx = true} : vector<16x1xf32> -> vector<16x1xf32>
    %37 = vector.broadcast %36 : vector<16x1xf32> to vector<16x16xf32>
    %38 = arith.mulf %33, %37 : vector<16x16xf32>
    %39 = arith.truncf %38 : vector<16x16xf32> to vector<16x16xbf16>
    %40 = vector.extract_strided_slice %3 {offsets = [0, 32], sizes = [16, 32], strides = [1, 1]} : vector<16x128xbf16> to vector<16x32xbf16>
    %cst_15 = arith.constant dense<0.000000e+00> : vector<16x32xf32>
    %41 = tpu.matmul %39, %40, %cst_15 {dimension_numbers = #tpu.dot_dimension_numbers<[1], [0], [0], [1], [0, 0, 1, 1], [], []>} : vector<16x16xbf16>, vector<16x32xbf16>, vector<16x32xf32> -> vector<16x32xf32>
    %42 = vector.extract_strided_slice %5 {offsets = [0, 64], sizes = [16, 32], strides = [1, 1]} : vector<16x128xbf16> to vector<16x32xbf16>
    %43 = vector.extract_strided_slice %1 {offsets = [0, 64], sizes = [16, 32], strides = [1, 1]} : vector<16x128xbf16> to vector<16x32xbf16>
    %cst_16 = arith.constant dense<0.000000e+00> : vector<16x16xf32>
    %44 = tpu.matmul %42, %43, %cst_16 {dimension_numbers = #tpu.dot_dimension_numbers<[1], [1], [0], [0], [0, 0, 1, 0], [], []>} : vector<16x32xbf16>, vector<16x32xbf16>, vector<16x16xf32> -> vector<16x16xf32>
    %cst_17 = arith.constant 0.176776692 : f32
    %45 = vector.broadcast %cst_17 : f32 to vector<16x16xf32>
    %46 = arith.mulf %44, %45 : vector<16x16xf32>
    %cst_18 = arith.constant dense<0xFF800000> : vector<16xf32>
    %47 = vector.multi_reduction <maximumf>, %46, %cst_18 [1] : vector<16x16xf32> to vector<16xf32>
    %48 = vector.shape_cast %47 : vector<16xf32> to vector<16x1xf32>
    %49 = vector.broadcast %48 : vector<16x1xf32> to vector<16x16xf32>
    %50 = arith.subf %46, %49 : vector<16x16xf32>
    %51 = math.exp %50 : vector<16x16xf32>
    %cst_19 = arith.constant dense<0.000000e+00> : vector<16xf32>
    %52 = vector.multi_reduction <add>, %51, %cst_19 [1] : vector<16x16xf32> to vector<16xf32>
    %53 = vector.shape_cast %52 : vector<16xf32> to vector<16x1xf32>
    %54 = tpu.reciprocal %53 {approx = true} : vector<16x1xf32> -> vector<16x1xf32>
    %55 = vector.broadcast %54 : vector<16x1xf32> to vector<16x16xf32>
    %56 = arith.mulf %51, %55 : vector<16x16xf32>
    %57 = arith.truncf %56 : vector<16x16xf32> to vector<16x16xbf16>
    %58 = vector.extract_strided_slice %3 {offsets = [0, 64], sizes = [16, 32], strides = [1, 1]} : vector<16x128xbf16> to vector<16x32xbf16>
    %cst_20 = arith.constant dense<0.000000e+00> : vector<16x32xf32>
    %59 = tpu.matmul %57, %58, %cst_20 {dimension_numbers = #tpu.dot_dimension_numbers<[1], [0], [0], [1], [0, 0, 1, 1], [], []>} : vector<16x16xbf16>, vector<16x32xbf16>, vector<16x32xf32> -> vector<16x32xf32>
    %60 = vector.extract_strided_slice %5 {offsets = [0, 96], sizes = [16, 32], strides = [1, 1]} : vector<16x128xbf16> to vector<16x32xbf16>
    %61 = vector.extract_strided_slice %1 {offsets = [0, 96], sizes = [16, 32], strides = [1, 1]} : vector<16x128xbf16> to vector<16x32xbf16>
    %cst_21 = arith.constant dense<0.000000e+00> : vector<16x16xf32>
    %62 = tpu.matmul %60, %61, %cst_21 {dimension_numbers = #tpu.dot_dimension_numbers<[1], [1], [0], [0], [0, 0, 1, 0], [], []>} : vector<16x32xbf16>, vector<16x32xbf16>, vector<16x16xf32> -> vector<16x16xf32>
    %cst_22 = arith.constant 0.176776692 : f32
    %63 = vector.broadcast %cst_22 : f32 to vector<16x16xf32>
    %64 = arith.mulf %62, %63 : vector<16x16xf32>
    %cst_23 = arith.constant dense<0xFF800000> : vector<16xf32>
    %65 = vector.multi_reduction <maximumf>, %64, %cst_23 [1] : vector<16x16xf32> to vector<16xf32>
    %66 = vector.shape_cast %65 : vector<16xf32> to vector<16x1xf32>
    %67 = vector.broadcast %66 : vector<16x1xf32> to vector<16x16xf32>
    %68 = arith.subf %64, %67 : vector<16x16xf32>
    %69 = math.exp %68 : vector<16x16xf32>
    %cst_24 = arith.constant dense<0.000000e+00> : vector<16xf32>
    %70 = vector.multi_reduction <add>, %69, %cst_24 [1] : vector<16x16xf32> to vector<16xf32>
    %71 = vector.shape_cast %70 : vector<16xf32> to vector<16x1xf32>
    %72 = tpu.reciprocal %71 {approx = true} : vector<16x1xf32> -> vector<16x1xf32>
    %73 = vector.broadcast %72 : vector<16x1xf32> to vector<16x16xf32>
    %74 = arith.mulf %69, %73 : vector<16x16xf32>
    %75 = arith.truncf %74 : vector<16x16xf32> to vector<16x16xbf16>
    %76 = vector.extract_strided_slice %3 {offsets = [0, 96], sizes = [16, 32], strides = [1, 1]} : vector<16x128xbf16> to vector<16x32xbf16>
    %cst_25 = arith.constant dense<0.000000e+00> : vector<16x32xf32>
    %77 = tpu.matmul %75, %76, %cst_25 {dimension_numbers = #tpu.dot_dimension_numbers<[1], [0], [0], [1], [0, 0, 1, 1], [], []>} : vector<16x16xbf16>, vector<16x32xbf16>, vector<16x32xf32> -> vector<16x32xf32>
    %78 = tpu.concatenate %23, %41, %59, %77 in 1 : vector<16x32xf32>, vector<16x32xf32>, vector<16x32xf32>, vector<16x32xf32> -> vector<16x128xf32>
    %79 = arith.truncf %78 : vector<16x128xf32> to vector<16x128xbf16>
    %c0_26 = arith.constant 0 : index
    %c0_27 = arith.constant 0 : index
    %c0_28 = arith.constant 0 : index
    %80 = vector.load %arg3[%c0_26, %c0_27, %c0_28] : memref<1x16x128xbf16, #tpu.memory_space<vmem>>, vector<1x16x128xbf16>
    %81 = vector.shape_cast %80 : vector<1x16x128xbf16> to vector<16x128xbf16>
    %82 = vector.shape_cast %79 : vector<16x128xbf16> to vector<1x16x128xbf16>
    tpu.vector_store %arg3[%c0_26, %c0_27, %c0_28], %82 {strides = array<i32>} : memref<1x16x128xbf16, #tpu.memory_space<vmem>>, vector<1x16x128xbf16>,
    return
  }
  func.func @transform_0(%arg0: i32) -> (i32, i32, i32) {
    %c0_i32 = arith.constant 0 : i32
    %c0_i32_0 = arith.constant 0 : i32
    %c0_i32_1 = arith.constant 0 : i32
    return %arg0, %c0_i32, %c0_i32_0 : i32, i32, i32
  }
  func.func @transform_1(%arg0: i32) -> (i32, i32, i32) {
    %c0_i32 = arith.constant 0 : i32
    %c0_i32_0 = arith.constant 0 : i32
    %c0_i32_1 = arith.constant 0 : i32
    return %arg0, %c0_i32, %c0_i32_0 : i32, i32, i32
  }
  func.func @transform_2(%arg0: i32) -> (i32, i32, i32) {
    %c0_i32 = arith.constant 0 : i32
    %c0_i32_0 = arith.constant 0 : i32
    %c0_i32_1 = arith.constant 0 : i32
    return %arg0, %c0_i32, %c0_i32_0 : i32, i32, i32
  }
}

module attributes {stable_mosaic.version = 11 : i64} {
  func.func @_self_attn_kernel(%arg0: i32, %arg1: memref<1x16x384xbf16, #tpu.memory_space<vmem>>, %arg2: memref<1x16x128xbf16, #tpu.memory_space<vmem>>) attributes {dimension_semantics = [#tpu.dimension_semantics<parallel>], iteration_bounds = array<i64: 2>, scalar_prefetch = 0 : i64, scratch_operands = 0 : i64, tpu.core_type = #tpu.core_type<tc>, window_params = [{transform_indices = @transform_0, window_bounds = array<i64: 1, 16, 384>}, {transform_indices = @transform_1, window_bounds = array<i64: 1, 16, 128>}]} {
    %c0 = arith.constant 0 : index
    %c0_0 = arith.constant 0 : index
    %c0_1 = arith.constant 0 : index
    %0 = vector.load %arg1[%c0, %c0_0, %c0_1] : memref<1x16x384xbf16, #tpu.memory_space<vmem>>, vector<1x16x128xbf16>
    %1 = vector.shape_cast %0 : vector<1x16x128xbf16> to vector<16x128xbf16>
    %c0_2 = arith.constant 0 : index
    %c0_3 = arith.constant 0 : index
    %c128 = arith.constant 128 : index
    %2 = vector.load %arg1[%c0_2, %c0_3, %c128] : memref<1x16x384xbf16, #tpu.memory_space<vmem>>, vector<1x16x128xbf16>
    %3 = vector.shape_cast %2 : vector<1x16x128xbf16> to vector<16x128xbf16>
    %c0_4 = arith.constant 0 : index
    %c0_5 = arith.constant 0 : index
    %c256 = arith.constant 256 : index
    %4 = vector.load %arg1[%c0_4, %c0_5, %c256] : memref<1x16x384xbf16, #tpu.memory_space<vmem>>, vector<1x16x128xbf16>
    %5 = vector.shape_cast %4 : vector<1x16x128xbf16> to vector<16x128xbf16>
    %6 = vector.extract_strided_slice %1 {offsets = [0, 0], sizes = [16, 32], strides = [1, 1]} : vector<16x128xbf16> to vector<16x32xbf16>
    %7 = vector.extract_strided_slice %3 {offsets = [0, 0], sizes = [16, 32], strides = [1, 1]} : vector<16x128xbf16> to vector<16x32xbf16>
    %cst = arith.constant dense<0.000000e+00> : vector<16x16xf32>
    %8 = tpu.matmul %6, %7, %cst {dimension_numbers = #tpu.dot_dimension_numbers<[1], [1], [0], [0], [0, 0, 1, 0], [], []>} : vector<16x32xbf16>, vector<16x32xbf16>, vector<16x16xf32> -> vector<16x16xf32>
    %cst_6 = arith.constant 0.176776692 : f32
    %9 = vector.broadcast %cst_6 : f32 to vector<16x16xf32>
    %10 = arith.mulf %8, %9 : vector<16x16xf32>
    %11 = tpu.iota {dimensions = array<i32: 0>} : vector<16x16xi32>
    %12 = tpu.iota {dimensions = array<i32: 1>} : vector<16x16xi32>
    %13 = arith.cmpi sge, %11, %12 : vector<16x16xi32>
    %cst_7 = arith.constant -1.000000e+30 : f32
    %14 = vector.broadcast %cst_7 : f32 to vector<16x16xf32>
    %15 = arith.select %13, %10, %14 : vector<16x16xi1>, vector<16x16xf32>
    %cst_8 = arith.constant dense<0xFF800000> : vector<16xf32>
    %16 = vector.multi_reduction <maximumf>, %15, %cst_8 [1] : vector<16x16xf32> to vector<16xf32>
    %17 = vector.shape_cast %16 : vector<16xf32> to vector<16x1xf32>
    %18 = vector.broadcast %17 : vector<16x1xf32> to vector<16x16xf32>
    %19 = arith.subf %15, %18 : vector<16x16xf32>
    %20 = math.exp %19 : vector<16x16xf32>
    %cst_9 = arith.constant dense<0.000000e+00> : vector<16xf32>
    %21 = vector.multi_reduction <add>, %20, %cst_9 [1] : vector<16x16xf32> to vector<16xf32>
    %22 = vector.shape_cast %21 : vector<16xf32> to vector<16x1xf32>
    %23 = tpu.reciprocal %22 {approx = true} : vector<16x1xf32> -> vector<16x1xf32>
    %24 = vector.broadcast %23 : vector<16x1xf32> to vector<16x16xf32>
    %25 = arith.mulf %20, %24 : vector<16x16xf32>
    %26 = arith.truncf %25 : vector<16x16xf32> to vector<16x16xbf16>
    %27 = vector.extract_strided_slice %5 {offsets = [0, 0], sizes = [16, 32], strides = [1, 1]} : vector<16x128xbf16> to vector<16x32xbf16>
    %cst_10 = arith.constant dense<0.000000e+00> : vector<16x32xf32>
    %28 = tpu.matmul %26, %27, %cst_10 {dimension_numbers = #tpu.dot_dimension_numbers<[1], [0], [0], [1], [0, 0, 1, 1], [], []>} : vector<16x16xbf16>, vector<16x32xbf16>, vector<16x32xf32> -> vector<16x32xf32>
    %29 = vector.extract_strided_slice %1 {offsets = [0, 32], sizes = [16, 32], strides = [1, 1]} : vector<16x128xbf16> to vector<16x32xbf16>
    %30 = vector.extract_strided_slice %3 {offsets = [0, 32], sizes = [16, 32], strides = [1, 1]} : vector<16x128xbf16> to vector<16x32xbf16>
    %cst_11 = arith.constant dense<0.000000e+00> : vector<16x16xf32>
    %31 = tpu.matmul %29, %30, %cst_11 {dimension_numbers = #tpu.dot_dimension_numbers<[1], [1], [0], [0], [0, 0, 1, 0], [], []>} : vector<16x32xbf16>, vector<16x32xbf16>, vector<16x16xf32> -> vector<16x16xf32>
    %cst_12 = arith.constant 0.176776692 : f32
    %32 = vector.broadcast %cst_12 : f32 to vector<16x16xf32>
    %33 = arith.mulf %31, %32 : vector<16x16xf32>
    %34 = tpu.iota {dimensions = array<i32: 0>} : vector<16x16xi32>
    %35 = tpu.iota {dimensions = array<i32: 1>} : vector<16x16xi32>
    %36 = arith.cmpi sge, %34, %35 : vector<16x16xi32>
    %cst_13 = arith.constant -1.000000e+30 : f32
    %37 = vector.broadcast %cst_13 : f32 to vector<16x16xf32>
    %38 = arith.select %36, %33, %37 : vector<16x16xi1>, vector<16x16xf32>
    %cst_14 = arith.constant dense<0xFF800000> : vector<16xf32>
    %39 = vector.multi_reduction <maximumf>, %38, %cst_14 [1] : vector<16x16xf32> to vector<16xf32>
    %40 = vector.shape_cast %39 : vector<16xf32> to vector<16x1xf32>
    %41 = vector.broadcast %40 : vector<16x1xf32> to vector<16x16xf32>
    %42 = arith.subf %38, %41 : vector<16x16xf32>
    %43 = math.exp %42 : vector<16x16xf32>
    %cst_15 = arith.constant dense<0.000000e+00> : vector<16xf32>
    %44 = vector.multi_reduction <add>, %43, %cst_15 [1] : vector<16x16xf32> to vector<16xf32>
    %45 = vector.shape_cast %44 : vector<16xf32> to vector<16x1xf32>
    %46 = tpu.reciprocal %45 {approx = true} : vector<16x1xf32> -> vector<16x1xf32>
    %47 = vector.broadcast %46 : vector<16x1xf32> to vector<16x16xf32>
    %48 = arith.mulf %43, %47 : vector<16x16xf32>
    %49 = arith.truncf %48 : vector<16x16xf32> to vector<16x16xbf16>
    %50 = vector.extract_strided_slice %5 {offsets = [0, 32], sizes = [16, 32], strides = [1, 1]} : vector<16x128xbf16> to vector<16x32xbf16>
    %cst_16 = arith.constant dense<0.000000e+00> : vector<16x32xf32>
    %51 = tpu.matmul %49, %50, %cst_16 {dimension_numbers = #tpu.dot_dimension_numbers<[1], [0], [0], [1], [0, 0, 1, 1], [], []>} : vector<16x16xbf16>, vector<16x32xbf16>, vector<16x32xf32> -> vector<16x32xf32>
    %52 = vector.extract_strided_slice %1 {offsets = [0, 64], sizes = [16, 32], strides = [1, 1]} : vector<16x128xbf16> to vector<16x32xbf16>
    %53 = vector.extract_strided_slice %3 {offsets = [0, 64], sizes = [16, 32], strides = [1, 1]} : vector<16x128xbf16> to vector<16x32xbf16>
    %cst_17 = arith.constant dense<0.000000e+00> : vector<16x16xf32>
    %54 = tpu.matmul %52, %53, %cst_17 {dimension_numbers = #tpu.dot_dimension_numbers<[1], [1], [0], [0], [0, 0, 1, 0], [], []>} : vector<16x32xbf16>, vector<16x32xbf16>, vector<16x16xf32> -> vector<16x16xf32>
    %cst_18 = arith.constant 0.176776692 : f32
    %55 = vector.broadcast %cst_18 : f32 to vector<16x16xf32>
    %56 = arith.mulf %54, %55 : vector<16x16xf32>
    %57 = tpu.iota {dimensions = array<i32: 0>} : vector<16x16xi32>
    %58 = tpu.iota {dimensions = array<i32: 1>} : vector<16x16xi32>
    %59 = arith.cmpi sge, %57, %58 : vector<16x16xi32>
    %cst_19 = arith.constant -1.000000e+30 : f32
    %60 = vector.broadcast %cst_19 : f32 to vector<16x16xf32>
    %61 = arith.select %59, %56, %60 : vector<16x16xi1>, vector<16x16xf32>
    %cst_20 = arith.constant dense<0xFF800000> : vector<16xf32>
    %62 = vector.multi_reduction <maximumf>, %61, %cst_20 [1] : vector<16x16xf32> to vector<16xf32>
    %63 = vector.shape_cast %62 : vector<16xf32> to vector<16x1xf32>
    %64 = vector.broadcast %63 : vector<16x1xf32> to vector<16x16xf32>
    %65 = arith.subf %61, %64 : vector<16x16xf32>
    %66 = math.exp %65 : vector<16x16xf32>
    %cst_21 = arith.constant dense<0.000000e+00> : vector<16xf32>
    %67 = vector.multi_reduction <add>, %66, %cst_21 [1] : vector<16x16xf32> to vector<16xf32>
    %68 = vector.shape_cast %67 : vector<16xf32> to vector<16x1xf32>
    %69 = tpu.reciprocal %68 {approx = true} : vector<16x1xf32> -> vector<16x1xf32>
    %70 = vector.broadcast %69 : vector<16x1xf32> to vector<16x16xf32>
    %71 = arith.mulf %66, %70 : vector<16x16xf32>
    %72 = arith.truncf %71 : vector<16x16xf32> to vector<16x16xbf16>
    %73 = vector.extract_strided_slice %5 {offsets = [0, 64], sizes = [16, 32], strides = [1, 1]} : vector<16x128xbf16> to vector<16x32xbf16>
    %cst_22 = arith.constant dense<0.000000e+00> : vector<16x32xf32>
    %74 = tpu.matmul %72, %73, %cst_22 {dimension_numbers = #tpu.dot_dimension_numbers<[1], [0], [0], [1], [0, 0, 1, 1], [], []>} : vector<16x16xbf16>, vector<16x32xbf16>, vector<16x32xf32> -> vector<16x32xf32>
    %75 = vector.extract_strided_slice %1 {offsets = [0, 96], sizes = [16, 32], strides = [1, 1]} : vector<16x128xbf16> to vector<16x32xbf16>
    %76 = vector.extract_strided_slice %3 {offsets = [0, 96], sizes = [16, 32], strides = [1, 1]} : vector<16x128xbf16> to vector<16x32xbf16>
    %cst_23 = arith.constant dense<0.000000e+00> : vector<16x16xf32>
    %77 = tpu.matmul %75, %76, %cst_23 {dimension_numbers = #tpu.dot_dimension_numbers<[1], [1], [0], [0], [0, 0, 1, 0], [], []>} : vector<16x32xbf16>, vector<16x32xbf16>, vector<16x16xf32> -> vector<16x16xf32>
    %cst_24 = arith.constant 0.176776692 : f32
    %78 = vector.broadcast %cst_24 : f32 to vector<16x16xf32>
    %79 = arith.mulf %77, %78 : vector<16x16xf32>
    %80 = tpu.iota {dimensions = array<i32: 0>} : vector<16x16xi32>
    %81 = tpu.iota {dimensions = array<i32: 1>} : vector<16x16xi32>
    %82 = arith.cmpi sge, %80, %81 : vector<16x16xi32>
    %cst_25 = arith.constant -1.000000e+30 : f32
    %83 = vector.broadcast %cst_25 : f32 to vector<16x16xf32>
    %84 = arith.select %82, %79, %83 : vector<16x16xi1>, vector<16x16xf32>
    %cst_26 = arith.constant dense<0xFF800000> : vector<16xf32>
    %85 = vector.multi_reduction <maximumf>, %84, %cst_26 [1] : vector<16x16xf32> to vector<16xf32>
    %86 = vector.shape_cast %85 : vector<16xf32> to vector<16x1xf32>
    %87 = vector.broadcast %86 : vector<16x1xf32> to vector<16x16xf32>
    %88 = arith.subf %84, %87 : vector<16x16xf32>
    %89 = math.exp %88 : vector<16x16xf32>
    %cst_27 = arith.constant dense<0.000000e+00> : vector<16xf32>
    %90 = vector.multi_reduction <add>, %89, %cst_27 [1] : vector<16x16xf32> to vector<16xf32>
    %91 = vector.shape_cast %90 : vector<16xf32> to vector<16x1xf32>
    %92 = tpu.reciprocal %91 {approx = true} : vector<16x1xf32> -> vector<16x1xf32>
    %93 = vector.broadcast %92 : vector<16x1xf32> to vector<16x16xf32>
    %94 = arith.mulf %89, %93 : vector<16x16xf32>
    %95 = arith.truncf %94 : vector<16x16xf32> to vector<16x16xbf16>
    %96 = vector.extract_strided_slice %5 {offsets = [0, 96], sizes = [16, 32], strides = [1, 1]} : vector<16x128xbf16> to vector<16x32xbf16>
    %cst_28 = arith.constant dense<0.000000e+00> : vector<16x32xf32>
    %97 = tpu.matmul %95, %96, %cst_28 {dimension_numbers = #tpu.dot_dimension_numbers<[1], [0], [0], [1], [0, 0, 1, 1], [], []>} : vector<16x16xbf16>, vector<16x32xbf16>, vector<16x32xf32> -> vector<16x32xf32>
    %98 = tpu.concatenate %28, %51, %74, %97 in 1 : vector<16x32xf32>, vector<16x32xf32>, vector<16x32xf32>, vector<16x32xf32> -> vector<16x128xf32>
    %99 = arith.truncf %98 : vector<16x128xf32> to vector<16x128xbf16>
    %c0_29 = arith.constant 0 : index
    %c0_30 = arith.constant 0 : index
    %c0_31 = arith.constant 0 : index
    %100 = vector.load %arg2[%c0_29, %c0_30, %c0_31] : memref<1x16x128xbf16, #tpu.memory_space<vmem>>, vector<1x16x128xbf16>
    %101 = vector.shape_cast %100 : vector<1x16x128xbf16> to vector<16x128xbf16>
    %102 = vector.shape_cast %99 : vector<16x128xbf16> to vector<1x16x128xbf16>
    tpu.vector_store %arg2[%c0_29, %c0_30, %c0_31], %102 {strides = array<i32>} : memref<1x16x128xbf16, #tpu.memory_space<vmem>>, vector<1x16x128xbf16>,
    return
  }
  func.func @transform_0(%arg0: i32) -> (i32, i32, i32) {
    %c0_i32 = arith.constant 0 : i32
    %c0_i32_0 = arith.constant 0 : i32
    %c0_i32_1 = arith.constant 0 : i32
    return %arg0, %c0_i32, %c0_i32_0 : i32, i32, i32
  }
  func.func @transform_1(%arg0: i32) -> (i32, i32, i32) {
    %c0_i32 = arith.constant 0 : i32
    %c0_i32_0 = arith.constant 0 : i32
    %c0_i32_1 = arith.constant 0 : i32
    return %arg0, %c0_i32, %c0_i32_0 : i32, i32, i32
  }
}

module attributes {stable_mosaic.version = 11 : i64} {
  func.func @_lm_head_kernel(%arg0: i32, %arg1: i32, %arg2: memref<32x128xbf16, #tpu.memory_space<vmem>>, %arg3: memref<512x128xbf16, #tpu.memory_space<vmem>>, %arg4: memref<32x128xbf16, #tpu.memory_space<vmem>>, %arg5: memref<32x1xf32, #tpu.memory_space<vmem>>, %arg6: memref<32x1xf32, #tpu.memory_space<vmem>>, %arg7: memref<32x128xf32, #tpu.memory_space<vmem>>) attributes {dimension_semantics = [#tpu.dimension_semantics<parallel>, #tpu.dimension_semantics<arbitrary>], iteration_bounds = array<i64: 1, 2>, scalar_prefetch = 0 : i64, scratch_operands = 3 : i64, tpu.core_type = #tpu.core_type<tc>, window_params = [{transform_indices = @transform_0, window_bounds = array<i64: 32, 128>}, {transform_indices = @transform_1, window_bounds = array<i64: 512, 128>}, {transform_indices = @transform_2, window_bounds = array<i64: 32, 128>}]} {
    %c0_i32 = arith.constant 0 : i32
    %0 = arith.cmpi eq, %arg1, %c0_i32 : i32
    %1 = arith.extui %0 : i1 to i32
    %c0_i32_0 = arith.constant 0 : i32
    %2 = arith.cmpi ne, %1, %c0_i32_0 : i32
    scf.if %2 {
      %cst_22 = arith.constant 0xFF800000 : f32
      %33 = vector.broadcast %cst_22 : f32 to vector<32x1xf32>
      %c0_23 = arith.constant 0 : index
      %c0_24 = arith.constant 0 : index
      %34 = vector.load %arg5[%c0_23, %c0_24] : memref<32x1xf32, #tpu.memory_space<vmem>>, vector<32x1xf32>
      tpu.vector_store %arg5[%c0_23, %c0_24], %33 {strides = array<i32>} : memref<32x1xf32, #tpu.memory_space<vmem>>, vector<32x1xf32>,
      %cst_25 = arith.constant 0.000000e+00 : f32
      %35 = vector.broadcast %cst_25 : f32 to vector<32x1xf32>
      %c0_26 = arith.constant 0 : index
      %c0_27 = arith.constant 0 : index
      %36 = vector.load %arg6[%c0_26, %c0_27] : memref<32x1xf32, #tpu.memory_space<vmem>>, vector<32x1xf32>
      tpu.vector_store %arg6[%c0_26, %c0_27], %35 {strides = array<i32>} : memref<32x1xf32, #tpu.memory_space<vmem>>, vector<32x1xf32>,
      %cst_28 = arith.constant 0.000000e+00 : f32
      %37 = vector.broadcast %cst_28 : f32 to vector<32x128xf32>
      %c0_29 = arith.constant 0 : index
      %c0_30 = arith.constant 0 : index
      %38 = vector.load %arg7[%c0_29, %c0_30] : memref<32x128xf32, #tpu.memory_space<vmem>>, vector<32x128xf32>
      tpu.vector_store %arg7[%c0_29, %c0_30], %37 {strides = array<i32>} : memref<32x128xf32, #tpu.memory_space<vmem>>, vector<32x128xf32>,
    } else {
    }
    %c0 = arith.constant 0 : index
    %c0_1 = arith.constant 0 : index
    %3 = vector.load %arg3[%c0, %c0_1] : memref<512x128xbf16, #tpu.memory_space<vmem>>, vector<512x128xbf16>
    %c0_2 = arith.constant 0 : index
    %c0_3 = arith.constant 0 : index
    %4 = vector.load %arg2[%c0_2, %c0_3] : memref<32x128xbf16, #tpu.memory_space<vmem>>, vector<32x128xbf16>
    %cst = arith.constant dense<0.000000e+00> : vector<32x512xf32>
    %5 = tpu.matmul %4, %3, %cst {dimension_numbers = #tpu.dot_dimension_numbers<[1], [1], [0], [0], [0, 0, 1, 0], [], []>} : vector<32x128xbf16>, vector<512x128xbf16>, vector<32x512xf32> -> vector<32x512xf32>
    %c0_4 = arith.constant 0 : index
    %c0_5 = arith.constant 0 : index
    %6 = vector.load %arg5[%c0_4, %c0_5] : memref<32x1xf32, #tpu.memory_space<vmem>>, vector<32x1xf32>
    %cst_6 = arith.constant dense<0xFF800000> : vector<32xf32>
    %7 = vector.multi_reduction <maximumf>, %5, %cst_6 [1] : vector<32x512xf32> to vector<32xf32>
    %8 = vector.shape_cast %7 : vector<32xf32> to vector<32x1xf32>
    %9 = arith.maximumf %6, %8 : vector<32x1xf32>
    %c0_7 = arith.constant 0 : index
    %c0_8 = arith.constant 0 : index
    %10 = vector.load %arg5[%c0_7, %c0_8] : memref<32x1xf32, #tpu.memory_space<vmem>>, vector<32x1xf32>
    %11 = arith.subf %10, %9 : vector<32x1xf32>
    %12 = math.exp %11 : vector<32x1xf32>
    %13 = vector.broadcast %9 : vector<32x1xf32> to vector<32x512xf32>
    %14 = arith.subf %5, %13 : vector<32x512xf32>
    %15 = math.exp %14 : vector<32x512xf32>
    %c0_9 = arith.constant 0 : index
    %c0_10 = arith.constant 0 : index
    %16 = vector.load %arg6[%c0_9, %c0_10] : memref<32x1xf32, #tpu.memory_space<vmem>>, vector<32x1xf32>
    %17 = arith.mulf %12, %16 : vector<32x1xf32>
    %cst_11 = arith.constant dense<0.000000e+00> : vector<32xf32>
    %18 = vector.multi_reduction <add>, %15, %cst_11 [1] : vector<32x512xf32> to vector<32xf32>
    %19 = vector.shape_cast %18 : vector<32xf32> to vector<32x1xf32>
    %20 = arith.addf %17, %19 : vector<32x1xf32>
    %c0_12 = arith.constant 0 : index
    %c0_13 = arith.constant 0 : index
    %21 = vector.load %arg6[%c0_12, %c0_13] : memref<32x1xf32, #tpu.memory_space<vmem>>, vector<32x1xf32>
    tpu.vector_store %arg6[%c0_12, %c0_13], %20 {strides = array<i32>} : memref<32x1xf32, #tpu.memory_space<vmem>>, vector<32x1xf32>,
    %c0_14 = arith.constant 0 : index
    %c0_15 = arith.constant 0 : index
    %22 = vector.load %arg7[%c0_14, %c0_15] : memref<32x128xf32, #tpu.memory_space<vmem>>, vector<32x128xf32>
    %23 = vector.broadcast %12 : vector<32x1xf32> to vector<32x128xf32>
    %24 = arith.mulf %23, %22 : vector<32x128xf32>
    %25 = arith.truncf %15 : vector<32x512xf32> to vector<32x512xbf16>
    %cst_16 = arith.constant dense<0.000000e+00> : vector<32x128xf32>
    %26 = tpu.matmul %25, %3, %cst_16 {dimension_numbers = #tpu.dot_dimension_numbers<[1], [0], [0], [1], [0, 0, 1, 1], [], []>} : vector<32x512xbf16>, vector<512x128xbf16>, vector<32x128xf32> -> vector<32x128xf32>
    %27 = arith.addf %24, %26 : vector<32x128xf32>
    %c0_17 = arith.constant 0 : index
    %c0_18 = arith.constant 0 : index
    %28 = vector.load %arg7[%c0_17, %c0_18] : memref<32x128xf32, #tpu.memory_space<vmem>>, vector<32x128xf32>
    tpu.vector_store %arg7[%c0_17, %c0_18], %27 {strides = array<i32>} : memref<32x128xf32, #tpu.memory_space<vmem>>, vector<32x128xf32>,
    %c0_19 = arith.constant 0 : index
    %c0_20 = arith.constant 0 : index
    %29 = vector.load %arg5[%c0_19, %c0_20] : memref<32x1xf32, #tpu.memory_space<vmem>>, vector<32x1xf32>
    tpu.vector_store %arg5[%c0_19, %c0_20], %9 {strides = array<i32>} : memref<32x1xf32, #tpu.memory_space<vmem>>, vector<32x1xf32>,
    %c1_i32 = arith.constant 1 : i32
    %30 = arith.cmpi eq, %arg1, %c1_i32 : i32
    %31 = arith.extui %30 : i1 to i32
    %c0_i32_21 = arith.constant 0 : i32
    %32 = arith.cmpi ne, %31, %c0_i32_21 : i32
    scf.if %32 {
      %c0_22 = arith.constant 0 : index
      %c0_23 = arith.constant 0 : index
      %33 = vector.load %arg7[%c0_22, %c0_23] : memref<32x128xf32, #tpu.memory_space<vmem>>, vector<32x128xf32>
      %c0_24 = arith.constant 0 : index
      %c0_25 = arith.constant 0 : index
      %34 = vector.load %arg6[%c0_24, %c0_25] : memref<32x1xf32, #tpu.memory_space<vmem>>, vector<32x1xf32>
      %35 = tpu.reciprocal %34 {approx = true} : vector<32x1xf32> -> vector<32x1xf32>
      %36 = vector.broadcast %35 : vector<32x1xf32> to vector<32x128xf32>
      %37 = arith.mulf %33, %36 : vector<32x128xf32>
      %38 = arith.truncf %37 : vector<32x128xf32> to vector<32x128xbf16>
      %c0_26 = arith.constant 0 : index
      %c0_27 = arith.constant 0 : index
      %39 = vector.load %arg4[%c0_26, %c0_27] : memref<32x128xbf16, #tpu.memory_space<vmem>>, vector<32x128xbf16>
      tpu.vector_store %arg4[%c0_26, %c0_27], %38 {strides = array<i32>} : memref<32x128xbf16, #tpu.memory_space<vmem>>, vector<32x128xbf16>,
    } else {
    }
    return
  }
  func.func @transform_0(%arg0: i32, %arg1: i32) -> (i32, i32) {
    %c0_i32 = arith.constant 0 : i32
    %c0_i32_0 = arith.constant 0 : i32
    return %arg0, %c0_i32 : i32, i32
  }
  func.func @transform_1(%arg0: i32, %arg1: i32) -> (i32, i32) {
    %c0_i32 = arith.constant 0 : i32
    %c0_i32_0 = arith.constant 0 : i32
    return %arg1, %c0_i32 : i32, i32
  }
  func.func @transform_2(%arg0: i32, %arg1: i32) -> (i32, i32) {
    %c0_i32 = arith.constant 0 : i32
    %c0_i32_0 = arith.constant 0 : i32
    return %arg0, %c0_i32 : i32, i32
  }
}

</mosaic_0001>

<bundles_post_ra>
// kernel: forward.44
= control target key start
LH: loop header
LB: loop body
LE: loop exit
PB: predicated region body
PF: predicated region fallthrough
CT: control target
= control target key end

     0   :  { %v293_v6 = vmov 1966171168   ;;  %v66_v8 = vlaneseq  ;;  %v294_v26 = vmov 0.0   ;;  %s372_s1 = inlined_call_operand.vmem [shape: bf16[256,128], index: 1, kind: input, shape index: {}]   ;;  %s373_s0 = inlined_call_operand.vmem [shape: bf16[2,256], index: 0, kind: input, shape index: {}]   ;;  %s374_s2 = inlined_call_operand.vmem [shape: f32[1,128], index: 2, kind: input, shape index: {}]   ;;  %s375_s3 = inlined_call_operand.vmem [shape: bf16[2,128], index: 3, kind: output, shape index: {}]  }
   0x1   :  { %v277_v0 = vld [vmem:[%s372_s1 + $0x40] sm:$0xff]   ;;  %v279_v2 = vld [vmem:[%s372_s1 + $0x48] sm:$0xff]   ;;  %v281_v4 = vld [vmem:[%s372_s1 + $0x50] sm:$0xff]   ;;  %v64_v7 = vunpack.c.l.s4 %v293_v6  ;;  %19 = vst [vmem:[#allocation2] sm:$0x3] %v294_v26 }
   0x2   :  { %v278_v1 = vld [vmem:[%s372_s1] sm:$0xff]   ;;  %253 = vmatprep.subr.bf16.mxu0 %v277_v0  ;;  %v280_v3 = vld [vmem:[%s372_s1 + $0x8] sm:$0xff]   ;;  %v282_v5 = vld [vmem:[%s372_s1 + $0x10] sm:$0xff]   ;;  %v67_v12 = vshrl.u32 %v66_v8, 7 }
   0x3   :  { %254 = vmatpush3.bf16.msra.mxu0 %v278_v1  ;;  %v283_v9 = vld [vmem:[%s372_s1 + $0x58] sm:$0xff]   ;;  %v65_v11 = vunpack.c.0.s8 %v64_v7  ;;  %v285_v13 = vld [vmem:[%s372_s1 + $0x60] sm:$0xff]   ;;  %v287_v16 = vld [vmem:[%s372_s1 + $0x68] sm:$0xff]  }
   0x4   :  { %255 = vmatprep.subr.bf16.mxu0 %v279_v2  ;;  %v284_v10 = vld [vmem:[%s372_s1 + $0x18] sm:$0xff]   ;;  %v286_v14 = vld [vmem:[%s372_s1 + $0x20] sm:$0xff]   ;;  %v288_v19 = vld [vmem:[%s372_s1 + $0x28] sm:$0xff]  }
   0x5   :  { %v68_v15 = vsub.s32 %v65_v11, %v67_v12  ;;  %v235_v17 = vld.sshfl [vmem:[%s373_s0] sm:$0x11 pattern:$0x75316420]  ;;  %v289_v21 = vld [vmem:[%s372_s1 + $0x70] sm:$0xff]   ;;  %v291_v23 = vld [vmem:[%s372_s1 + $0x78] sm:$0xff]  }
   0x6   :  { %v62_v18 = vcombine.high %v235_v17, %v235_v17  ;;  %v290_v22 = vld [vmem:[%s372_s1 + $0x30] sm:$0xff]   ;;  %v292_v24 = vld [vmem:[%s372_s1 + $0x38] sm:$0xff]   ;;  %v252_v34 = vld [vmem:[%s374_s2] ss:$0 sm:$0xff] }
   0x7   :  { %256 = vmatpush3.bf16.msra.mxu0 %v280_v3  ;;  %v69_v25 = vrot.slane %v235_v17, %v68_v15 }
   0x8   :  { %257 = vmatprep.subr.bf16.mxu0 %v281_v4  ;;  %v76_v20 = vrot.slane %v62_v18, %v68_v15  ;;  %v20_v28 = vld [vmem:[#allocation2] sm:$0x3] }
   0xa   :  { %207 = vmatprep.mubr.bf16.mxu0 %v76_v20 }
   0xb   :  { %258 = vmatpush3.bf16.msra.mxu0 %v282_v5 }
   0xc   :  { %259 = vmatprep.subr.bf16.mxu0 %v283_v9 }
   0xf   :  { %260 = vmatpush3.bf16.msra.mxu0 %v284_v10 }
  0x10   :  { %261 = vmatprep.subr.bf16.mxu0 %v285_v13 }
  0x13   :  { %262 = vmatpush3.bf16.msra.mxu0 %v286_v14 }
  0x14   :  { %263 = vmatprep.subr.bf16.mxu0 %v287_v16 }
  0x17   :  { %264 = vmatpush3.bf16.msra.mxu0 %v288_v19 }
  0x18   :  { %265 = vmatprep.subr.bf16.mxu0 %v289_v21 }
  0x1b   :  { %266 = vmatpush3.bf16.msra.mxu0 %v290_v22 }
  0x1c   :  { %267 = vmatprep.subr.bf16.mxu0 %v291_v23 }
  0x1f   :  { %268 = vmatpush3.bf16.msra.mxu0 %v292_v24 }
  0x22   :  { %208 = vmatmul.mubr.bf16.vlgmr.msra.gmra.mrb[0].mxu0 %v69_v25 }
  0xf5   :  { %v269_v27 = vpop.f32.mrb[0].mxu0 }
  0xf6   :  { %v270_v29 = vpop.f32.mrb[1].mxu0 }
  0xf7   :  { %v271_v30 = vadd.f32 %v270_v29, %v269_v27  ;;  %v272_v31 = vpop.f32.mrb[2].mxu0 }
  0xf8   :  { %v273_v32 = vpop.f32.mrb[3].mxu0 }
  0xf9   :  { %v215_v33 = vadd.f32 %v271_v30, %v20_v28 }
  0xfb   :  { %216 = vst [vmem:[#allocation2] sm:$0x3] %v215_v33 }
 0x102   :  { %v220_v35 = vld [vmem:[#allocation2] sm:$0x3] }
 0x103   :  { %v228_v36 = vadd.f32 %v252_v34, %v220_v35 }
 0x105   :  { %v229_v37 = vpack.c.bf16 %v228_v36, %v228_v36 }
 0x107   :  { %230 = vst [vmem:[%s375_s3] sm:$0x1] %v229_v37 }

// kernel: forward.43
= control target key start
LH: loop header
LB: loop body
LE: loop exit
PB: predicated region body
PF: predicated region fallthrough
CT: control target
= control target key end

     0   :  { %v227_v1 = vmov 0   ;;  %vm70_vm0 = vcmask 523264   ;;  %v228_v10 = vmov 0.0   ;;  %v229_v11 = vmov 1983009808   ;;  %s284_s1 = inlined_call_operand.vmem [shape: bf16[64,256], index: 1, kind: input, shape index: {}]   ;;  %s285_s0 = inlined_call_operand.vmem [shape: bf16[2,64], index: 0, kind: input, shape index: {}]   ;;  %s286_s2 = inlined_call_operand.vmem [shape: f32[1,256], index: 2, kind: input, shape index: {}]   ;;  %s287_s3 = inlined_call_operand.vmem [shape: bf16[2,256], index: 3, kind: output, shape index: {}]  }
   0x1   :  { %v211_v0 = vld [vmem:[%s284_s1 + $0x4] ss:$8 sps:$4 sm:$0xff]   ;;  %106 = vmatprep.mubr.bf16.mxu0 %v227_v1  ;;  %v213_v2 = vld [vmem:[%s284_s1] ss:$8 sps:$4 sm:$0xff]   ;;  %v214_v3 = vld [vmem:[%s284_s1 + $0x14] ss:$8 sps:$4 sm:$0xff]   ;;  %v119_v12 = vunpack.c.l.s4 %v229_v11  ;;  %v121_v13 = vlaneseq }
   0x2   :  { %74 = vmatprep.subr.bf16.mxu0 %v211_v0  ;;  %v216_v4 = vld [vmem:[%s284_s1 + $0x10] ss:$8 sps:$4 sm:$0xff]   ;;  %v217_v5 = vld [vmem:[%s284_s1 + $0x24] ss:$8 sps:$4 sm:$0xff]   ;;  %v219_v6 = vld [vmem:[%s284_s1 + $0x20] ss:$8 sps:$4 sm:$0xff]  }
   0x3   :  { %75 = vmatpush1.bf16.msra.mxu0 %v213_v2  ;;  %v220_v7 = vld [vmem:[%s284_s1 + $0x34] ss:$8 sps:$4 sm:$0xff]   ;;  %v222_v8 = vld [vmem:[%s284_s1 + $0x30] ss:$8 sps:$4 sm:$0xff]   ;;  %v21_v9 = vld [vmem:[%s285_s0] sm:$0x1]  ;;  %v120_v14 = vunpack.c.0.s8 %v119_v12 }
   0x4   :  { %76 = vmatprep.subr.bf16.mxu0 %v214_v3  ;;  %19 = vst [vmem:[#allocation2] sm:$0xf] %v228_v10  ;;  %v122_v15 = vshrl.u32 %v121_v13, 7  ;;  %v132_v21 = vld [vmem:[%s286_s2] sm:$0x3] }
   0x5   :  { %v230_v37 = vmov 1966171168  }
   0x6   :  { %v123_v17 = vsub.s32 %v120_v14, %v122_v15  ;;  %v136_v18 = vsub.s32 0, %v122_v15  ;;  %v140_v19 = vsub.s32 1, %v122_v15  ;;  %v176_v38 = vunpack.c.l.s4 %v230_v37 }
   0x7   :  { %77 = vmatpush1.bf16.msra.mxu0 %v216_v4 }
   0x8   :  { %78 = vmatprep.subr.bf16.mxu0 %v217_v5  ;;  %v137_v27 = vrot.slane %v132_v21, %v136_v18  ;;  %v141_v28 = vrot.slane %v132_v21, %v140_v19  ;;  %v177_v41 = vunpack.c.0.s8 %v176_v38 }
   0xa   :  { %v142_v30 = vcombine.low %v137_v27, %v141_v28  ;;  %v180_v44 = vsub.s32 %v177_v41, %v122_v15 }
   0xb   :  { %79 = vmatpush1.bf16.msra.mxu0 %v219_v6  ;;  %v20_v24 = vld [vmem:[#allocation2] sm:$0xf] }
   0xc   :  { %80 = vmatprep.subr.bf16.mxu0 %v220_v7  ;;  %v149_v31 = vrot.slane %v142_v30, %v123_v17 }
   0xf   :  { %81 = vmatpush1.bf16.msra.mxu0 %v222_v8 }
  0x12   :  { %203 = vmatmul.mubr.msk.bf16.vlgmr.msra.gmra.mrb[0].mxu0 %vm70_vm0, %v21_v9 }
  0xe5   :  { %v108_v16 = vpop.f32.mrb[0].mxu0 }
  0xe6   :  { %v110_v20 = vpop.f32.mrb[1].mxu0 }
  0xe7   :  { %v117_v22 = vcombine.low %v108_v16, %v110_v20  ;;  %v112_v23 = vpop.f32.mrb[2].mxu0 }
  0xe8   :  { %v113_v25 = vpop.f32.mrb[3].mxu0 }
  0xe9   :  { %v124_v26 = vrot.slane %v117_v22, %v123_v17 }
  0xeb   :  { %v126_v29 = vadd.f32 %v124_v26, %v20_v24 }
  0xed   :  { %127 = vst [vmem:[#allocation2] sm:$0xf] %v126_v29 }
  0xf4   :  { %v131_v32 = vld [vmem:[#allocation2] sm:$0xf] }
  0xf5   :  { %v151_v33 = vadd.f32 %v149_v31, %v131_v32 }
  0xf7   :  { %v204_v34 = vmul.f32 -1.442695, %v151_v33 }
  0xf9   :  { %223 = vpow2.f32 %v204_v34 }
 0x103   :  { %v224_v35 = vpop.eup %223 }
 0x104   :  { %v155_v36 = vadd.f32 1.0, %v224_v35 }
 0x106   :  { %225 = vrcp.f32 %v155_v36 }
 0x110   :  { %v226_v39 = vpop.eup %225 }
 0x111   :  { %v158_v40 = vmul.f32 %v226_v39, %v151_v33 }
 0x113   :  { %v166_v42 = vrot.slane %v158_v40, %v123_v17 }
 0x115   :  { %v167_v43 = vcombine.high %v166_v42, %v166_v42 }
 0x117   :  { %v205_v45 = vpack.c.bf16 %v167_v43, %v166_v42 }
 0x119   :  { %v181_v46 = vrot.slane %v205_v45, %v180_v44 }
 0x11b   :  { %206 = vst.sshfl [vmem:[%s287_s3] sm:$0x5 pattern:$0x73625140] %v181_v46 }

// kernel: forward.45
= control target key start
LH: loop header
LB: loop body
LE: loop exit
PB: predicated region body
PF: predicated region fallthrough
CT: control target
= control target key end

     0   :  { %s224_s0 = inlined_call_operand.vmem [shape: bf16[32,128], index: 0, kind: input, shape index: {}]   ;;  %s225_s1 = inlined_call_operand.vmem [shape: bf16[32,128], index: 1, kind: input, shape index: {}]   ;;  %s226_s2 = inlined_call_operand.vmem [shape: f32[1,128], index: 2, kind: input, shape index: {}]   ;;  %s227_s3 = inlined_call_operand.vmem [shape: f32[1,128], index: 3, kind: input, shape index: {}]   ;;  %s228_s4 = inlined_call_operand.vmem [shape: bf16[32,128], index: 4, kind: output, shape index: {}]  }
   0x1   :  { %v139_v0 = vld [vmem:[%s224_s0] sm:$0xff]   ;;  %v164_v2 = vld [vmem:[%s224_s0 + $0x8] sm:$0xff]  }
   0x2   :  { %v147_v1 = vld [vmem:[%s225_s1] sm:$0xff]   ;;  %v140_v3 = vunpack.c.l.bf16 %v139_v0  ;;  %v144_v5 = vunpack.c.l.bf16 %v164_v2  ;;  %v165_v6 = vld [vmem:[%s225_s1 + $0x8] sm:$0xff]   ;;  %v141_v7 = vunpack.c.h.bf16 %v139_v0  ;;  %v145_v10 = vunpack.c.h.bf16 %v164_v2 }
   0x3   :  { %v148_v4 = vunpack.c.l.bf16 %v147_v1  ;;  %v152_v8 = vunpack.c.l.bf16 %v165_v6  ;;  %v149_v9 = vunpack.c.h.bf16 %v147_v1  ;;  %v153_v11 = vunpack.c.h.bf16 %v165_v6  ;;  %v128_v46 = vld [vmem:[%s226_s2] ss:$0 sm:$0xff] }
   0x4   :  { %v129_v51 = vld [vmem:[%s227_s3] ss:$0 sm:$0xff] }
   0x5   :  { %v33_v12 = vadd.f32 %v148_v4, %v140_v3  ;;  %v35_v13 = vadd.f32 %v152_v8, %v144_v5  ;;  %v34_v14 = vadd.f32 %v149_v9, %v141_v7  ;;  %v36_v15 = vadd.f32 %v153_v11, %v145_v10 }
   0x7   :  { %37 = vadd.xlane.f32.xlu0 %v33_v12  ;;  %41 = vadd.xlane.f32.xlu1 %v35_v13 }
   0xb   :  { %39 = vadd.xlane.f32.xlu0 %v34_v14  ;;  %43 = vadd.xlane.f32.xlu1 %v36_v15 }
  0x94   :  { %v38_v16 = vpop.xlane.xlu0 %37  ;;  %v42_v18 = vpop.xlane.xlu1 %41 }
  0x95   :  { %v46_v17 = vmul.f32 0.0078125, %v38_v16  ;;  %v48_v19 = vmul.f32 0.0078125, %v42_v18 }
  0x97   :  { %v50_v20 = vsub.f32 %v33_v12, %v46_v17  ;;  %v52_v21 = vsub.f32 %v35_v13, %v48_v19 }
  0x98   :  { %v40_v22 = vpop.xlane.xlu0 %39  ;;  %v44_v25 = vpop.xlane.xlu1 %43 }
  0x99   :  { %v47_v23 = vmul.f32 0.0078125, %v40_v22  ;;  %v54_v24 = vmul.f32 %v50_v20, %v50_v20  ;;  %v49_v26 = vmul.f32 0.0078125, %v44_v25  ;;  %v56_v28 = vmul.f32 %v52_v21, %v52_v21 }
  0x9b   :  { %v51_v27 = vsub.f32 %v34_v14, %v47_v23  ;;  %58 = vadd.xlane.f32.xlu0 %v54_v24  ;;  %v53_v29 = vsub.f32 %v36_v15, %v49_v26 }
  0x9d   :  { %v55_v30 = vmul.f32 %v51_v27, %v51_v27  ;;  %v57_v31 = vmul.f32 %v53_v29, %v53_v29 }
  0x9f   :  { %62 = vadd.xlane.f32.xlu0 %v56_v28  ;;  %60 = vadd.xlane.f32.xlu1 %v55_v30 }
  0xa3   :  { %64 = vadd.xlane.f32.xlu1 %v57_v31 }
 0x128   :  { %v59_v32 = vpop.xlane.xlu0 %58 }
 0x129   :  { %v66_v33 = vmul.f32 0.0078125, %v59_v32 }
 0x12b   :  { %v70_v34 = vadd.f32 1e-05, %v66_v33 }
 0x12c   :  { %v61_v35 = vpop.xlane.xlu1 %60  ;;  %v63_v36 = vpop.xlane.xlu0 %62 }
 0x12d   :  { %167 = vrsqrt.f32 %v70_v34  ;;  %v67_v37 = vmul.f32 0.0078125, %v61_v35  ;;  %v68_v38 = vmul.f32 0.0078125, %v63_v36 }
 0x12f   :  { %v71_v39 = vadd.f32 1e-05, %v67_v37  ;;  %v72_v40 = vadd.f32 1e-05, %v68_v38 }
 0x130   :  { %v65_v41 = vpop.xlane.xlu1 %64 }
 0x131   :  { %169 = vrsqrt.f32 %v71_v39  ;;  %v69_v42 = vmul.f32 0.0078125, %v65_v41 }
 0x132   :  { %171 = vrsqrt.f32 %v72_v40 }
 0x133   :  { %v73_v43 = vadd.f32 1e-05, %v69_v42 }
 0x135   :  { %173 = vrsqrt.f32 %v73_v43 }
 0x137   :  { %v168_v44 = vpop.eup %167 }
 0x138   :  { %v78_v45 = vmul.f32 %v168_v44, %v50_v20 }
 0x13a   :  { %v89_v49 = vmul.f32 %v128_v46, %v78_v45 }
 0x13b   :  { %v170_v47 = vpop.eup %169 }
 0x13c   :  { %v172_v48 = vpop.eup %171  ;;  %v79_v50 = vmul.f32 %v170_v47, %v51_v27  ;;  %v100_v55 = vadd.f32 %v129_v51, %v89_v49 }
 0x13d   :  { %v80_v52 = vmul.f32 %v172_v48, %v52_v21 }
 0x13e   :  { %v90_v53 = vmul.f32 %v128_v46, %v79_v50 }
 0x13f   :  { %v174_v54 = vpop.eup %173  ;;  %v91_v57 = vmul.f32 %v128_v46, %v80_v52 }
 0x140   :  { %v101_v56 = vadd.f32 %v129_v51, %v90_v53  ;;  %v81_v58 = vmul.f32 %v174_v54, %v53_v29 }
 0x141   :  { %v102_v61 = vadd.f32 %v129_v51, %v91_v57 }
 0x142   :  { %v157_v59 = vpack.c.bf16 %v101_v56, %v100_v55  ;;  %v92_v60 = vmul.f32 %v128_v46, %v81_v58 }
 0x144   :  { %158 = vst [vmem:[%s228_s4] sm:$0xff] %v157_v59   ;;  %v103_v62 = vadd.f32 %v129_v51, %v92_v60 }
 0x146   :  { %v162_v63 = vpack.c.bf16 %v103_v62, %v102_v61 }
 0x148   :  { %166 = vst [vmem:[%s228_s4 + $0x8] sm:$0xff] %v162_v63  }

// kernel: forward.47
= control target key start
LH: loop header
LB: loop body
LE: loop exit
PB: predicated region body
PF: predicated region fallthrough
CT: control target
= control target key end

     0   :  { %s875_s12 = smov 0   ;;  %s877_s13 = smov 0   ;;  %s980_s0 = inlined_call_operand.vmem [shape: bf16[32,128], index: 0, kind: input, shape index: {}]   ;;  %s981_s1 = inlined_call_operand.vmem [shape: bf16[128,384], index: 1, kind: input, shape index: {}]   ;;  %s982_s2 = inlined_call_operand.vmem [shape: f32[1,384], index: 2, kind: input, shape index: {}]   ;;  %s983_s3 = inlined_call_operand.vmem [shape: bf16[32,384], index: 3, kind: output, shape index: {}]  }
   0x1   :  { %s879_s14 = smov 0   ;;  %s881_s15 = smov 0  }
   0x2   :  { %s883_s16 = smov 0  }
   0x3 LB: > { %s28_s17 = sadd.s32 1, %s849_s15  ;;  %s691_s18 = sadd.s32 4294967295, %s853_s16   ;;  %s853_s16 = sphi %s883_s16, %s13_s16   ;;  %s849_s15 = sphi %s881_s15, %s988_s15   ;;  %s845_s14 = sphi %s879_s14, %s987_s14   ;;  %s841_s13 = sphi %s877_s13, %s986_s13   ;;  %s837_s12 = sphi %s875_s12, %s985_s12  }
   0x4   : > { %p30_p0 = scmp.ge.s32.totalorder %s28_s17, 3  ;;  %p76_p1 = scmp.ne.s32.totalorder %s841_s13, %s837_s12 }
   0x5   : > { %p77_p2 = scmp.eq.s32.totalorder %s853_s16, 0  ;;  %p134_p4 = scmp.eq.s32.totalorder %s691_s18, 2 }
   0x6   : > { %s990_s17 = smov (%p30_p0, %s28_s17), 0  ;;  %s69_s20 = sadd.s32 1, %s841_s13 }
   0x7   : > { %p78_p3 = por %p77_p2, %p76_p1  ;;  %s65_s19 = ssub.s32 %s849_s15, %s990_s17 }
   0x8   : > { %p67_p5 = scmp.eq.s32.totalorder %s65_s19, 0  ;;  %p910_p6 = por %p134_p4, %p76_p1 }
   0x9   : > { %p695_p7 = scmp.ge.s32.totalorder %s853_s16, 3 }
   0xa   : > { %s915_s22 = scalar_select %p67_p5, %s841_s13, %s69_s20  }
   0xb   : > { %168 = sbr.rel (%p695_p7) target bundleno = 32 (0x20), region = 20 }
  0x12   : > { %171 = sbr.rel (!%p78_p3) target bundleno = 32 (0x20), region = 24  ;;  %s173_s23 = sand.u32 (%p78_p3), 1, %s841_s13  }
  0x13   : > { %s697_s24 = sshll.u32 (%p78_p3), %s849_s15, 2  ;;  %s696_s25 = sshll.u32 (%p78_p3), %s173_s23, 6 }
  0x14   : > { %s923_s28 = scalar_lea.vmem (%p78_p3), %s981_s1, %s697_s24  ;;  %s175_s29 = scalar_lea.vmem (%p78_p3), [#allocation3], %s696_s25 }
  0x15   : > { %v196_v0 = vld [vmem:[%s923_s28] sm:$0xf] (%p78_p3)  ;;  %v198_v1 = vld [vmem:[%s923_s28 + $0xc] sm:$0xf] (%p78_p3)  ;;  %v200_v2 = vld [vmem:[%s923_s28 + $0x18] sm:$0xf] (%p78_p3) }
  0x16   : > { %197 = vst [vmem:[%s175_s29] sm:$0xf] (%p78_p3), %v196_v0  ;;  %199 = vst [vmem:[%s175_s29 + $0x4] sm:$0xf] (%p78_p3), %v198_v1  ;;  %v202_v3 = vld [vmem:[%s923_s28 + $0x24] sm:$0xf] (%p78_p3) }
  0x17   : > { %v204_v4 = vld [vmem:[%s923_s28 + $0x30] sm:$0xf] (%p78_p3)  ;;  %201 = vst [vmem:[%s175_s29 + $0x8] sm:$0xf] (%p78_p3), %v200_v2  ;;  %203 = vst [vmem:[%s175_s29 + $0xc] sm:$0xf] (%p78_p3), %v202_v3 }
  0x18   : > { %205 = vst [vmem:[%s175_s29 + $0x10] sm:$0xf] (%p78_p3), %v204_v4  ;;  %v206_v5 = vld [vmem:[%s923_s28 + $0x3c] sm:$0xf] (%p78_p3)  ;;  %v208_v6 = vld [vmem:[%s923_s28 + $0x48] sm:$0xf] (%p78_p3) }
  0x19   : > { %v210_v7 = vld [vmem:[%s923_s28 + $0x54] sm:$0xf]  ;;  %207 = vst [vmem:[%s175_s29 + $0x14] sm:$0xf] %v206_v5  ;;  %209 = vst [vmem:[%s175_s29 + $0x18] sm:$0xf] %v208_v6 }
  0x1a   : > { %211 = vst [vmem:[%s175_s29 + $0x1c] sm:$0xf] %v210_v7  ;;  %v212_v8 = vld [vmem:[%s923_s28 + $0x60] sm:$0xf]  ;;  %v214_v9 = vld [vmem:[%s923_s28 + $0x6c] sm:$0xf] }
  0x1b   : > { %v216_v10 = vld [vmem:[%s923_s28 + $0x78] sm:$0xf]  ;;  %213 = vst [vmem:[%s175_s29 + $0x20] sm:$0xf] %v212_v8  ;;  %215 = vst [vmem:[%s175_s29 + $0x24] sm:$0xf] %v214_v9 }
  0x1c   : > { %217 = vst [vmem:[%s175_s29 + $0x28] sm:$0xf] %v216_v10  ;;  %v218_v11 = vld [vmem:[%s923_s28 + $0x84] sm:$0xf]  ;;  %v220_v12 = vld [vmem:[%s923_s28 + $0x90] sm:$0xf] }
  0x1d   : > { %v222_v13 = vld [vmem:[%s923_s28 + $0x9c] sm:$0xf]  ;;  %219 = vst [vmem:[%s175_s29 + $0x2c] sm:$0xf] %v218_v11  ;;  %221 = vst [vmem:[%s175_s29 + $0x30] sm:$0xf] %v220_v12 }
  0x1e   : > { %223 = vst [vmem:[%s175_s29 + $0x34] sm:$0xf] %v222_v13  ;;  %v224_v14 = vld [vmem:[%s923_s28 + $0xa8] sm:$0xf]  ;;  %v226_v15 = vld [vmem:[%s923_s28 + $0xb4] sm:$0xf] }
  0x1f   : > { %225 = vst [vmem:[%s175_s29 + $0x38] sm:$0xf] %v224_v14  ;;  %227 = vst [vmem:[%s175_s29 + $0x3c] sm:$0xf] %v226_v15 }
  0x20 PF: > { %p698_p8 = scmp.ge.s32.totalorder %s853_s16, 1  ;;  %p287_p9 = scmp.lt.s32.totalorder %s853_s16, 4 }
  0x22   : > { %p288_p10 = pnand %p698_p8, %p287_p9 }
  0x23   : > { %s294_s30 = sand.u32 (!%p288_p10), 1, %s837_s12   ;;  %v813_v16 = vld [vmem:[%s980_s0] sm:$0xff] (!%p288_p10)   ;;  %v814_v25 = vld [vmem:[%s980_s0 + $0x8] sm:$0xff] (!%p288_p10)   ;;  %p337_p11 = scmp.lt.s32.totalorder (!%p288_p10), %s845_s14, 2 }
  0x24   : > { %291 = sbr.rel (%p288_p10) target bundleno = 300 (0x12c), region = 69  ;;  %s699_s6 = sshll.u32 (!%p288_p10), %s294_s30, 6  ;;  %761 = vmatprep.mubr.bf16.mxu0 (!%p288_p10), %v813_v16 }
  0x25   : > { %s296_s7 = scalar_lea.vmem (!%p288_p10), [#allocation3], %s699_s6  ;;  %s700_s20 = sshll.u32 (!%p288_p10), %s294_s30, 4 }
  0x26   : > { %v805_v17 = vld [vmem:[%s296_s7] sm:$0xff] (!%p288_p10)   ;;  %v806_v18 = vld [vmem:[%s296_s7 + $0x8] sm:$0xff] (!%p288_p10)   ;;  %v807_v19 = vld [vmem:[%s296_s7 + $0x10] sm:$0xff] (!%p288_p10)   ;;  %s326_s23 = scalar_lea.vmem (!%p288_p10), [#allocation4], %s700_s20 }
  0x27   : > { %745 = vmatprep.subr.bf16.mxu0 (!%p288_p10), %v805_v17  ;;  %v808_v20 = vld [vmem:[%s296_s7 + $0x18] sm:$0xff] (!%p288_p10)   ;;  %v809_v21 = vld [vmem:[%s296_s7 + $0x20] sm:$0xff] (!%p288_p10)   ;;  %v810_v22 = vld [vmem:[%s296_s7 + $0x28] sm:$0xff] (!%p288_p10)  }
  0x28   : > { %746 = vmatpush3.bf16.msra.mxu0 (!%p288_p10), %v805_v17  ;;  %v811_v23 = vld [vmem:[%s296_s7 + $0x30] sm:$0xff] (!%p288_p10)   ;;  %v812_v24 = vld [vmem:[%s296_s7 + $0x38] sm:$0xff] (!%p288_p10)  }
  0x29   : > { %747 = vmatprep.subr.bf16.mxu0 (!%p288_p10), %v806_v18 }
  0x2b   : > { %s338_s10 = scalar_select %p337_p11, %s845_s14, 2 }
  0x2c   : > { %748 = vmatpush3.bf16.msra.mxu0 %v806_v18  ;;  %s717_s24 = sshll.u32 (%p910_p6), %s845_s14, 2 }
  0x2d   : > { %749 = vmatprep.subr.bf16.mxu0 %v807_v19  ;;  %s339_s19 = scalar_lea.vmem %s982_s2, %s338_s10  ;;  %s540_s26 = scalar_lea.vmem (%p910_p6), %s983_s3, %s717_s24 }
  0x2e   : > { %v711_v27 = vld [vmem:[%s339_s19] ss:$0 sm:$0xff] }
  0x30   : > { %750 = vmatpush3.bf16.msra.mxu0 %v807_v19 }
  0x31   : > { %751 = vmatprep.subr.bf16.mxu0 %v808_v20 }
  0x34   : > { %752 = vmatpush3.bf16.msra.mxu0 %v808_v20 }
  0x35   : > { %753 = vmatprep.subr.bf16.mxu0 %v809_v21 }
  0x38   : > { %754 = vmatpush3.bf16.msra.mxu0 %v809_v21 }
  0x39   : > { %755 = vmatprep.subr.bf16.mxu0 %v810_v22 }
  0x3c   : > { %756 = vmatpush3.bf16.msra.mxu0 %v810_v22 }
  0x3d   : > { %757 = vmatprep.subr.bf16.mxu0 %v811_v23 }
  0x40   : > { %758 = vmatpush3.bf16.msra.mxu0 %v811_v23 }
  0x41   : > { %759 = vmatprep.subr.bf16.mxu0 %v812_v24 }
  0x44   : > { %760 = vmatpush3.bf16.msra.mxu0 %v812_v24 }
  0x47   : > { %762 = vmatmul.mubr.bf16.vlgmr.msra.gmra.mrb[0].mxu0 %v814_v25 }
 0x11a   : > { %v763_v26 = vpop.f32.mrb[0].mxu0 }
 0x11b   : > { %v468_v28 = vpop.f32.mrb[1].mxu0  ;;  %v507_v30 = vadd.f32 %v763_v26, %v711_v27 }
 0x11c   : > { %v764_v29 = vpop.f32.mrb[2].mxu0  ;;  %v505_v33 = vadd.f32 %v711_v27, %v468_v28  ;;  %535 = sbr.rel (!%p910_p6) target bundleno = 300 (0x12c), region = 85 }
 0x11d   : > { %v508_v31 = vadd.f32 %v764_v29, %v711_v27  ;;  %v471_v32 = vpop.f32.mrb[3].mxu0 }
 0x11e   : > { %v506_v34 = vadd.f32 %v711_v27, %v471_v32 }
 0x11f   : > { %v732_v35 = vpack.c.bf16 %v508_v31, %v507_v30 }
 0x120   : > { %v727_v36 = vpack.c.bf16 %v506_v34, %v505_v33 }
 0x121   : > { %734 = vst [vmem:[%s326_s23 + $0x8] sm:$0xff] %v732_v35  }
 0x122   : > { %728 = vst [vmem:[%s326_s23] sm:$0xff] %v727_v36  }
 0x128   : > { %v560_v39 = vld [vmem:[%s326_s23 + $0x8] sm:$0xf]  ;;  %v562_v40 = vld [vmem:[%s326_s23 + $0xc] sm:$0xf] }
 0x129   : > { %v556_v37 = vld [vmem:[%s326_s23] sm:$0xf]  ;;  %v558_v38 = vld [vmem:[%s326_s23 + $0x4] sm:$0xf]  ;;  %561 = vst [vmem:[%s540_s26 + $0x18] sm:$0xf] %v560_v39 }
 0x12a   : > { %557 = vst [vmem:[%s540_s26] sm:$0xf] %v556_v37  ;;  %559 = vst [vmem:[%s540_s26 + $0xc] sm:$0xf] %v558_v38 }
 0x12b   : > { %563 = vst [vmem:[%s540_s26 + $0x24] sm:$0xf] %v562_v40 }
 0x12c PF: > { %s13_s16 = sadd.s32 1, %s853_s16   ;;  %s985_s12 = smov %s841_s13 }
 0x12d   : > { %p10_p12 = scmp.ge.s32.totalorder %s13_s16, 5   ;;  %s986_s13 = smov %s915_s22 }
 0x12e   : > { %s987_s14 = smov %s849_s15  ;;  %s988_s15 = smov %s990_s17 }
 0x12f   :  { %12 = sbr.rel (!%p10_p12) target bundleno = 3 (0x3), region = 163 }

// kernel: forward.49
= control target key start
LH: loop header
LB: loop body
LE: loop exit
PB: predicated region body
PF: predicated region fallthrough
CT: control target
= control target key end

     0   :  { %s335_s1 = inlined_call_operand.vmem [shape: bf16[128,128], index: 1, kind: input, shape index: {}]   ;;  %s336_s0 = inlined_call_operand.vmem [shape: bf16[32,128], index: 0, kind: input, shape index: {}]   ;;  %s337_s2 = inlined_call_operand.vmem [shape: f32[1,128], index: 2, kind: input, shape index: {}]   ;;  %s338_s3 = inlined_call_operand.vmem [shape: bf16[32,128], index: 3, kind: output, shape index: {}]  }
   0x1   :  { %v266_v0 = vld [vmem:[%s335_s1] sm:$0xff]   ;;  %v267_v1 = vld [vmem:[%s335_s1 + $0x8] sm:$0xff]   ;;  %v268_v2 = vld [vmem:[%s335_s1 + $0x10] sm:$0xff]  }
   0x2   :  { %246 = vmatprep.subr.bf16.mxu0 %v266_v0  ;;  %v269_v3 = vld [vmem:[%s335_s1 + $0x18] sm:$0xff]   ;;  %v274_v4 = vld [vmem:[%s336_s0] sm:$0xff]   ;;  %v271_v6 = vld [vmem:[%s335_s1 + $0x28] sm:$0xff]  }
   0x3   :  { %247 = vmatpush3.bf16.msra.mxu0 %v266_v0  ;;  %262 = vmatprep.mubr.bf16.mxu0 %v274_v4  ;;  %v270_v5 = vld [vmem:[%s335_s1 + $0x20] sm:$0xff]   ;;  %v272_v7 = vld [vmem:[%s335_s1 + $0x30] sm:$0xff]   ;;  %v273_v8 = vld [vmem:[%s335_s1 + $0x38] sm:$0xff]  }
   0x4   :  { %248 = vmatprep.subr.bf16.mxu0 %v267_v1  ;;  %v275_v9 = vld [vmem:[%s336_s0 + $0x8] sm:$0xff]   ;;  %v216_v11 = vld [vmem:[%s337_s2] ss:$0 sm:$0xff] }
   0x7   :  { %249 = vmatpush3.bf16.msra.mxu0 %v267_v1 }
   0x8   :  { %250 = vmatprep.subr.bf16.mxu0 %v268_v2 }
   0xb   :  { %251 = vmatpush3.bf16.msra.mxu0 %v268_v2 }
   0xc   :  { %252 = vmatprep.subr.bf16.mxu0 %v269_v3 }
   0xf   :  { %253 = vmatpush3.bf16.msra.mxu0 %v269_v3 }
  0x10   :  { %254 = vmatprep.subr.bf16.mxu0 %v270_v5 }
  0x13   :  { %255 = vmatpush3.bf16.msra.mxu0 %v270_v5 }
  0x14   :  { %256 = vmatprep.subr.bf16.mxu0 %v271_v6 }
  0x17   :  { %257 = vmatpush3.bf16.msra.mxu0 %v271_v6 }
  0x18   :  { %258 = vmatprep.subr.bf16.mxu0 %v272_v7 }
  0x1b   :  { %259 = vmatpush3.bf16.msra.mxu0 %v272_v7 }
  0x1c   :  { %260 = vmatprep.subr.bf16.mxu0 %v273_v8 }
  0x1f   :  { %261 = vmatpush3.bf16.msra.mxu0 %v273_v8 }
  0x22   :  { %263 = vmatmul.mubr.bf16.vlgmr.msra.gmra.mrb[0].mxu0 %v275_v9 }
  0xf5   :  { %v264_v10 = vpop.f32.mrb[0].mxu0 }
  0xf6   :  { %v141_v12 = vpop.f32.mrb[1].mxu0  ;;  %v180_v14 = vadd.f32 %v264_v10, %v216_v11 }
  0xf7   :  { %v265_v13 = vpop.f32.mrb[2].mxu0  ;;  %v178_v17 = vadd.f32 %v216_v11, %v141_v12 }
  0xf8   :  { %v181_v15 = vadd.f32 %v265_v13, %v216_v11  ;;  %v144_v16 = vpop.f32.mrb[3].mxu0 }
  0xf9   :  { %v179_v18 = vadd.f32 %v216_v11, %v144_v16 }
  0xfa   :  { %v233_v19 = vpack.c.bf16 %v181_v15, %v180_v14 }
  0xfb   :  { %v228_v20 = vpack.c.bf16 %v179_v18, %v178_v17 }
  0xfc   :  { %235 = vst [vmem:[%s338_s3 + $0x8] sm:$0xff] %v233_v19  }
  0xfd   :  { %229 = vst [vmem:[%s338_s3] sm:$0xff] %v228_v20  }

// kernel: forward.52
= control target key start
LH: loop header
LB: loop body
LE: loop exit
PB: predicated region body
PF: predicated region fallthrough
CT: control target
= control target key end

     0   :  { %s898_s12 = smov 0   ;;  %s900_s13 = smov 0   ;;  %s998_s0 = inlined_call_operand.vmem [shape: bf16[32,512], index: 0, kind: input, shape index: {}]   ;;  %s999_s1 = inlined_call_operand.vmem [shape: bf16[512,128], index: 1, kind: input, shape index: {}]   ;;  %s1000_s2 = inlined_call_operand.vmem [shape: f32[1,128], index: 2, kind: input, shape index: {}]   ;;  %s1001_s3 = inlined_call_operand.vmem [shape: bf16[32,128], index: 3, kind: output, shape index: {}]  }
   0x1   :  { %s902_s14 = smov 0   ;;  %s904_s15 = smov 0  }
   0x2   :  { %s906_s16 = smov 0  }
   0x3 LB: > { %s25_s17 = sadd.s32 1, %s871_s15  ;;  %p48_p1 = scmp.ne.s32.totalorder %s863_s13, %s859_s12  ;;  %s875_s16 = sphi %s906_s16, %s13_s16   ;;  %s871_s15 = sphi %s904_s15, %s1005_s15   ;;  %s867_s14 = sphi %s902_s14, %s1004_s14   ;;  %s863_s13 = sphi %s900_s13, %s1003_s13   ;;  %s859_s12 = sphi %s898_s12, %s1002_s12  }
   0x4   : > { %p26_p0 = scmp.ge.s32.totalorder %s25_s17, 2  ;;  %p49_p2 = scmp.eq.s32.totalorder %s875_s16, 0 }
   0x5   : > { %s41_s19 = sadd.s32 1, %s863_s13  ;;  %p675_p5 = scmp.ge.s32.totalorder %s875_s16, 2 }
   0x6   : > { %s1007_s17 = smov (%p26_p0, %s25_s17), 0  ;;  %p50_p3 = por %p49_p2, %p48_p1 }
   0x7   : > { %s37_s18 = ssub.s32 %s871_s15, %s1007_s17  ;;  %162 = sbr.rel (%p675_p5) target bundleno = 21 (0x15), region = 20 }
   0x8   : > { %p39_p4 = scmp.eq.s32.totalorder %s37_s18, 0 }
   0xa   : > { %s933_s20 = scalar_select %p39_p4, %s863_s13, %s41_s19  }
   0xe   : > { %165 = sbr.rel (!%p50_p3) target bundleno = 21 (0x15), region = 24  ;;  %s167_s21 = sand.u32 (%p50_p3), 1, %s863_s13  }
   0xf   : > { %s714_s22 = sshll.u32 (%p50_p3), %s871_s15, 3  ;;  %s676_s23 = sshll.u32 (%p50_p3), %s167_s21, 5 }
  0x10   : > { %s175_s26 = scalar_lea.vmem (%p50_p3), %s998_s0, %s714_s22  ;;  %s169_s27 = scalar_lea.vmem (%p50_p3), [#allocation3], %s676_s23 }
  0x11   : > { %v209_v0 = vld [vmem:[%s175_s26] sm:$0xff] (%p50_p3)  ;;  %v211_v1 = vld [vmem:[%s175_s26 + $0x10] sm:$0xff] (%p50_p3) }
  0x12   : > { %v213_v2 = vld [vmem:[%s175_s26 + $0x20] sm:$0xff] (%p50_p3)  ;;  %210 = vst [vmem:[%s169_s27] sm:$0xff] (%p50_p3), %v209_v0  ;;  %212 = vst [vmem:[%s169_s27 + $0x8] sm:$0xff] (%p50_p3), %v211_v1  ;;  %v215_v3 = vld [vmem:[%s175_s26 + $0x30] sm:$0xff] (%p50_p3) }
  0x13   : > { %214 = vst [vmem:[%s169_s27 + $0x10] sm:$0xff] (%p50_p3), %v213_v2  ;;  %216 = vst [vmem:[%s169_s27 + $0x18] sm:$0xff] (%p50_p3), %v215_v3 }
  0x15 PF: > { %p679_p6 = scmp.ge.s32.totalorder %s875_s16, 1  ;;  %p233_p7 = scmp.lt.s32.totalorder %s875_s16, 3 }
  0x17   : > { %p234_p8 = pnand %p679_p6, %p233_p7 }
  0x18   : > { %s240_s28 = sand.u32 (!%p234_p8), 1, %s859_s12   ;;  %s681_s29 = sshll.u32 (!%p234_p8), %s867_s14, 5 }
  0x19   : > { %237 = sbr.rel (%p234_p8) target bundleno = 304 (0x130), region = 66  ;;  %s680_s30 = sshll.u32 (!%p234_p8), %s240_s28, 5 }
  0x1a   : > { %p280_p9 = scmp.lt.s32.totalorder (!%p234_p8), %s681_s29, 63  ;;  %s950_s8 = scalar_lea.vmem (!%p234_p8), [#allocation3], %s680_s30 }
  0x1b   : > { %p683_p10 = scmp.ne.s32.totalorder (!%p234_p8), %s867_s14, 0 }
  0x20   : > { %s1009_s29 = smov (!%p280_p9, %s681_s29), 63  ;;  %304 = sbr.rel (%p683_p10) target bundleno = 39 (0x27), region = 74 }
  0x21   : > { %s682_s4 = sshll.u32 %s1009_s29, 2  ;;  %v877_v4 = vmov (!%p683_p10), 0.0  }
  0x22   : > { %s948_s7 = scalar_lea.vmem %s999_s1, %s682_s4  ;;  %305 = vst [vmem:[#allocation2] sm:$0xff] (!%p683_p10), %v877_v4  ;;  %306 = vst [vmem:[#allocation2 + $0x8] sm:$0xff] (!%p683_p10), %v877_v4 }
  0x23   : > { %307 = vst [vmem:[#allocation2 + $0x10] sm:$0xff] (!%p683_p10), %v877_v4  ;;  %308 = vst [vmem:[#allocation2 + $0x18] sm:$0xff] (!%p683_p10), %v877_v4 }
  0x27 PF: > { %v815_v5 = vld [vmem:[%s948_s7 + $0x40] sm:$0xff]   ;;  %v817_v7 = vld [vmem:[%s948_s7 + $0x48] sm:$0xff]   ;;  %v819_v9 = vld [vmem:[%s948_s7 + $0x50] sm:$0xff]   ;;  %p704_p11 = scmp.ne.s32.totalorder %s867_s14, 1 }
  0x28   : > { %v816_v6 = vld [vmem:[%s948_s7] sm:$0xff]   ;;  %730 = vmatprep.subr.bf16.mxu0 %v815_v5  ;;  %758 = vmatprep.subr.bf16.mxu1 %v815_v5  ;;  %v818_v8 = vld [vmem:[%s948_s7 + $0x8] sm:$0xff]   ;;  %v820_v10 = vld [vmem:[%s948_s7 + $0x10] sm:$0xff]  }
  0x29   : > { %731 = vmatpush3.bf16.msra.mxu0 %v816_v6  ;;  %766 = vmatpush3.bf16.msra.mxu1 %v816_v6  ;;  %v821_v11 = vld [vmem:[%s948_s7 + $0x58] sm:$0xff]   ;;  %v823_v13 = vld [vmem:[%s948_s7 + $0x60] sm:$0xff]   ;;  %v825_v15 = vld [vmem:[%s948_s7 + $0x68] sm:$0xff]  }
  0x2a   : > { %732 = vmatprep.subr.bf16.mxu0 %v817_v7  ;;  %759 = vmatprep.subr.bf16.mxu1 %v817_v7  ;;  %v822_v12 = vld [vmem:[%s948_s7 + $0x18] sm:$0xff]   ;;  %v824_v14 = vld [vmem:[%s948_s7 + $0x20] sm:$0xff]   ;;  %v826_v18 = vld [vmem:[%s948_s7 + $0x28] sm:$0xff]  }
  0x2b   : > { %v833_v16 = vld [vmem:[%s950_s8 + $0x4] ss:$8 sps:$4 sm:$0xff]   ;;  %v836_v17 = vld [vmem:[%s950_s8 + $0x14] ss:$8 sps:$4 sm:$0xff]   ;;  %v831_v23 = vld [vmem:[%s950_s8] ss:$8 sps:$4 sm:$0xff]  }
  0x2c   : > { %v827_v19 = vld [vmem:[%s948_s7 + $0x70] sm:$0xff]   ;;  %497 = vmatprep.mubr.bf16.mxu0 %v833_v16  ;;  %505 = vmatprep.mubr.bf16.mxu1 %v836_v17  ;;  %v829_v21 = vld [vmem:[%s948_s7 + $0x78] sm:$0xff]   ;;  %v309_v27 = vld [vmem:[#allocation2] sm:$0xff] }
  0x2d   : > { %733 = vmatpush3.bf16.msra.mxu0 %v818_v8  ;;  %767 = vmatpush3.bf16.msra.mxu1 %v818_v8  ;;  %v828_v20 = vld [vmem:[%s948_s7 + $0x30] sm:$0xff]   ;;  %v830_v22 = vld [vmem:[%s948_s7 + $0x38] sm:$0xff]   ;;  %v310_v35 = vld [vmem:[#allocation2 + $0x8] sm:$0xff] }
  0x2e   : > { %734 = vmatprep.subr.bf16.mxu0 %v819_v9  ;;  %760 = vmatprep.subr.bf16.mxu1 %v819_v9  ;;  %v834_v24 = vld [vmem:[%s950_s8 + $0x10] ss:$8 sps:$4 sm:$0xff]   ;;  %v705_v47 = vld [vmem:[%s1000_s2] ss:$0 sm:$0xff] (!%p704_p11) }
  0x2f   : > { %v311_v29 = vld [vmem:[#allocation2 + $0x10] sm:$0xff]  ;;  %v312_v37 = vld [vmem:[#allocation2 + $0x18] sm:$0xff] }
  0x31   : > { %735 = vmatpush3.bf16.msra.mxu0 %v820_v10  ;;  %768 = vmatpush3.bf16.msra.mxu1 %v820_v10 }
  0x32   : > { %736 = vmatprep.subr.bf16.mxu0 %v821_v11  ;;  %761 = vmatprep.subr.bf16.mxu1 %v821_v11 }
  0x35   : > { %737 = vmatpush3.bf16.msra.mxu0 %v822_v12  ;;  %769 = vmatpush3.bf16.msra.mxu1 %v822_v12 }
  0x36   : > { %738 = vmatprep.subr.bf16.mxu0 %v823_v13  ;;  %762 = vmatprep.subr.bf16.mxu1 %v823_v13 }
  0x39   : > { %739 = vmatpush3.bf16.msra.mxu0 %v824_v14  ;;  %770 = vmatpush3.bf16.msra.mxu1 %v824_v14 }
  0x3a   : > { %740 = vmatprep.subr.bf16.mxu0 %v825_v15  ;;  %763 = vmatprep.subr.bf16.mxu1 %v825_v15 }
  0x3d   : > { %741 = vmatpush3.bf16.msra.mxu0 %v826_v18  ;;  %771 = vmatpush3.bf16.msra.mxu1 %v826_v18 }
  0x3e   : > { %742 = vmatprep.subr.bf16.mxu0 %v827_v19  ;;  %764 = vmatprep.subr.bf16.mxu1 %v827_v19 }
  0x41   : > { %743 = vmatpush3.bf16.msra.mxu0 %v828_v20  ;;  %772 = vmatpush3.bf16.msra.mxu1 %v828_v20 }
  0x42   : > { %744 = vmatprep.subr.bf16.mxu0 %v829_v21  ;;  %765 = vmatprep.subr.bf16.mxu1 %v829_v21 }
  0x45   : > { %745 = vmatpush3.bf16.msra.mxu0 %v830_v22  ;;  %773 = vmatpush3.bf16.msra.mxu1 %v830_v22 }
  0x48   : > { %498 = vmatmul.mubr.bf16.vlgmr.msra.gmra.mrb[0].mxu0 %v831_v23  ;;  %506 = vmatmul.mubr.bf16.vlgmr.msra.gmra.mrb[0].mxu1 %v834_v24 }
 0x11b   : > { %v746_v25 = vpop.f32.mrb[0].mxu0  ;;  %v752_v26 = vpop.f32.mrb[0].mxu1 }
 0x11c   : > { %v747_v28 = vpop.f32.mrb[1].mxu0  ;;  %v753_v30 = vpop.f32.mrb[1].mxu1 }
 0x11d   : > { %v748_v31 = vadd.f32 %v747_v28, %v746_v25  ;;  %v754_v32 = vadd.f32 %v753_v30, %v752_v26  ;;  %v749_v33 = vpop.f32.mrb[2].mxu0  ;;  %v755_v34 = vpop.f32.mrb[2].mxu1  ;;  %525 = sbr.rel (%p704_p11) target bundleno = 304 (0x130), region = 78 }
 0x11e   : > { %v750_v36 = vpop.f32.mrb[3].mxu0  ;;  %v756_v38 = vpop.f32.mrb[3].mxu1 }
 0x11f   : > { %v514_v39 = vadd.f32 %v748_v31, %v309_v27  ;;  %v516_v40 = vadd.f32 %v754_v32, %v311_v29  ;;  %v751_v41 = vadd.f32 %v750_v36, %v749_v33  ;;  %v757_v42 = vadd.f32 %v756_v38, %v755_v34 }
 0x121   : > { %518 = vst [vmem:[#allocation2] sm:$0xff] %v514_v39  ;;  %520 = vst [vmem:[#allocation2 + $0x10] sm:$0xff] %v516_v40  ;;  %v515_v43 = vadd.f32 %v751_v41, %v310_v35  ;;  %v517_v44 = vadd.f32 %v757_v42, %v312_v37 }
 0x123   : > { %519 = vst [vmem:[#allocation2 + $0x8] sm:$0xff] %v515_v43  ;;  %521 = vst [vmem:[#allocation2 + $0x18] sm:$0xff] %v517_v44 }
 0x128   : > { %v526_v45 = vld [vmem:[#allocation2] sm:$0xff]  ;;  %v528_v50 = vld [vmem:[#allocation2 + $0x10] sm:$0xff] }
 0x129   : > { %v537_v48 = vadd.f32 %v705_v47, %v526_v45  ;;  %v539_v52 = vadd.f32 %v705_v47, %v528_v50 }
 0x12a   : > { %v527_v46 = vld [vmem:[#allocation2 + $0x8] sm:$0xff]  ;;  %v529_v51 = vld [vmem:[#allocation2 + $0x18] sm:$0xff] }
 0x12b   : > { %v538_v49 = vadd.f32 %v705_v47, %v527_v46  ;;  %v540_v53 = vadd.f32 %v705_v47, %v529_v51 }
 0x12d   : > { %v722_v54 = vpack.c.bf16 %v538_v49, %v537_v48  ;;  %v727_v55 = vpack.c.bf16 %v540_v53, %v539_v52 }
 0x12f   : > { %723 = vst [vmem:[%s1001_s3] sm:$0xff] %v722_v54   ;;  %729 = vst [vmem:[%s1001_s3 + $0x8] sm:$0xff] %v727_v55  }
 0x130 PF: > { %s13_s16 = sadd.s32 1, %s875_s16   ;;  %s1002_s12 = smov %s863_s13 }
 0x131   : > { %p10_p12 = scmp.ge.s32.totalorder %s13_s16, 4   ;;  %s1003_s13 = smov %s933_s20 }
 0x132   : > { %s1004_s14 = smov %s871_s15  ;;  %s1005_s15 = smov %s1007_s17 }
 0x133   :  { %12 = sbr.rel (!%p10_p12) target bundleno = 3 (0x3), region = 119 }

// kernel: forward.51
= control target key start
LH: loop header
LB: loop body
LE: loop exit
PB: predicated region body
PF: predicated region fallthrough
CT: control target
= control target key end

     0   :  { %s958_s12 = smov 0   ;;  %s960_s13 = smov 0   ;;  %s1080_s0 = inlined_call_operand.vmem [shape: bf16[32,128], index: 0, kind: input, shape index: {}]   ;;  %s1081_s1 = inlined_call_operand.vmem [shape: bf16[128,512], index: 1, kind: input, shape index: {}]   ;;  %s1082_s2 = inlined_call_operand.vmem [shape: f32[1,512], index: 2, kind: input, shape index: {}]   ;;  %s1083_s3 = inlined_call_operand.vmem [shape: bf16[32,512], index: 3, kind: output, shape index: {}]  }
   0x1   :  { %s962_s14 = smov 0   ;;  %s964_s15 = smov 0  }
   0x2   :  { %s966_s16 = smov 0  }
   0x3 LB: > { %s28_s17 = sadd.s32 1, %s931_s15  ;;  %s769_s18 = sadd.s32 4294967295, %s935_s16   ;;  %s935_s16 = sphi %s966_s16, %s13_s16   ;;  %s931_s15 = sphi %s964_s15, %s1088_s15   ;;  %s927_s14 = sphi %s962_s14, %s1087_s14   ;;  %s923_s13 = sphi %s960_s13, %s1086_s13   ;;  %s919_s12 = sphi %s958_s12, %s1085_s12  }
   0x4   : > { %p30_p0 = scmp.ge.s32.totalorder %s28_s17, 2  ;;  %p76_p1 = scmp.ne.s32.totalorder %s923_s13, %s919_s12 }
   0x5   : > { %p77_p2 = scmp.eq.s32.totalorder %s935_s16, 0  ;;  %p134_p4 = scmp.eq.s32.totalorder %s769_s18, 1 }
   0x6   : > { %s1090_s17 = smov (%p30_p0, %s28_s17), 0  ;;  %s69_s20 = sadd.s32 1, %s923_s13 }
   0x7   : > { %p78_p3 = por %p77_p2, %p76_p1  ;;  %s65_s19 = ssub.s32 %s931_s15, %s1090_s17 }
   0x8   : > { %p67_p5 = scmp.eq.s32.totalorder %s65_s19, 0  ;;  %p993_p6 = por %p134_p4, %p76_p1 }
   0x9   : > { %p773_p7 = scmp.ge.s32.totalorder %s935_s16, 2 }
   0xa   : > { %s998_s22 = scalar_select %p67_p5, %s923_s13, %s69_s20  }
   0xb   : > { %168 = sbr.rel (%p773_p7) target bundleno = 30 (0x1e), region = 20 }
  0x12   : > { %171 = sbr.rel (!%p78_p3) target bundleno = 30 (0x1e), region = 24  ;;  %s173_s23 = sand.u32 (%p78_p3), 1, %s923_s13  }
  0x13   : > { %s808_s24 = sshll.u32 (%p78_p3), %s931_s15, 3  ;;  %s774_s25 = sshll.u32 (%p78_p3), %s173_s23, 7 }
  0x14   : > { %s1006_s28 = scalar_lea.vmem (%p78_p3), %s1081_s1, %s808_s24  ;;  %s175_s29 = scalar_lea.vmem (%p78_p3), [#allocation3], %s774_s25 }
  0x15   : > { %v239_v0 = vld [vmem:[%s1006_s28] sm:$0xff] (%p78_p3)  ;;  %v241_v1 = vld [vmem:[%s1006_s28 + $0x10] sm:$0xff] (%p78_p3) }
  0x16   : > { %v243_v2 = vld [vmem:[%s1006_s28 + $0x20] sm:$0xff] (%p78_p3)  ;;  %240 = vst [vmem:[%s175_s29] sm:$0xff] (%p78_p3), %v239_v0  ;;  %242 = vst [vmem:[%s175_s29 + $0x8] sm:$0xff] (%p78_p3), %v241_v1  ;;  %v245_v3 = vld [vmem:[%s1006_s28 + $0x30] sm:$0xff] (%p78_p3) }
  0x17   : > { %244 = vst [vmem:[%s175_s29 + $0x10] sm:$0xff] (%p78_p3), %v243_v2  ;;  %v247_v4 = vld [vmem:[%s1006_s28 + $0x40] sm:$0xff] (%p78_p3)  ;;  %v249_v5 = vld [vmem:[%s1006_s28 + $0x50] sm:$0xff] (%p78_p3)  ;;  %246 = vst [vmem:[%s175_s29 + $0x18] sm:$0xff] (%p78_p3), %v245_v3 }
  0x18   : > { %248 = vst [vmem:[%s175_s29 + $0x20] sm:$0xff] (%p78_p3), %v247_v4  ;;  %250 = vst [vmem:[%s175_s29 + $0x28] sm:$0xff] (%p78_p3), %v249_v5  ;;  %v251_v6 = vld [vmem:[%s1006_s28 + $0x60] sm:$0xff] (%p78_p3)  ;;  %v253_v7 = vld [vmem:[%s1006_s28 + $0x70] sm:$0xff] (%p78_p3) }
  0x19   : > { %v255_v8 = vld [vmem:[%s1006_s28 + $0x80] sm:$0xff]  ;;  %252 = vst [vmem:[%s175_s29 + $0x30] sm:$0xff] %v251_v6  ;;  %254 = vst [vmem:[%s175_s29 + $0x38] sm:$0xff] %v253_v7  ;;  %v257_v9 = vld [vmem:[%s1006_s28 + $0x90] sm:$0xff] }
  0x1a   : > { %256 = vst [vmem:[%s175_s29 + $0x40] sm:$0xff] %v255_v8  ;;  %v259_v10 = vld [vmem:[%s1006_s28 + $0xa0] sm:$0xff]  ;;  %v261_v11 = vld [vmem:[%s1006_s28 + $0xb0] sm:$0xff]  ;;  %258 = vst [vmem:[%s175_s29 + $0x48] sm:$0xff] %v257_v9 }
  0x1b   : > { %260 = vst [vmem:[%s175_s29 + $0x50] sm:$0xff] %v259_v10  ;;  %262 = vst [vmem:[%s175_s29 + $0x58] sm:$0xff] %v261_v11  ;;  %v263_v12 = vld [vmem:[%s1006_s28 + $0xc0] sm:$0xff]  ;;  %v265_v13 = vld [vmem:[%s1006_s28 + $0xd0] sm:$0xff] }
  0x1c   : > { %v267_v14 = vld [vmem:[%s1006_s28 + $0xe0] sm:$0xff]  ;;  %264 = vst [vmem:[%s175_s29 + $0x60] sm:$0xff] %v263_v12  ;;  %266 = vst [vmem:[%s175_s29 + $0x68] sm:$0xff] %v265_v13  ;;  %v269_v15 = vld [vmem:[%s1006_s28 + $0xf0] sm:$0xff] }
  0x1d   : > { %268 = vst [vmem:[%s175_s29 + $0x70] sm:$0xff] %v267_v14  ;;  %270 = vst [vmem:[%s175_s29 + $0x78] sm:$0xff] %v269_v15 }
  0x1e PF: > { %p777_p8 = scmp.ge.s32.totalorder %s935_s16, 1  ;;  %p283_p9 = scmp.lt.s32.totalorder %s935_s16, 3 }
  0x20   : > { %p284_p10 = pnand %p777_p8, %p283_p9 }
  0x21   : > { %s290_s30 = sand.u32 (!%p284_p10), 1, %s919_s12   ;;  %v937_v16 = vmov (!%p284_p10), 0   ;;  %v895_v33 = vld [vmem:[%s1080_s0] sm:$0xff] (!%p284_p10)   ;;  %v896_v34 = vld [vmem:[%s1080_s0 + $0x8] sm:$0xff] (!%p284_p10)   ;;  %s780_s10 = sshll.u32 (!%p284_p10), %s927_s14, 1  ;;  %v557_v35 = vlaneseq (!%p284_p10) }
  0x22   : > { %287 = sbr.rel (%p284_p10) target bundleno = 299 (0x12b), region = 66  ;;  %s778_s4 = sshll.u32 (!%p284_p10), %s290_s30, 7  ;;  %507 = vmatprep.mubr.bf16.mxu0 (!%p284_p10), %v937_v16  ;;  %517 = vmatprep.mubr.bf16.mxu1 (!%p284_p10), %v937_v16 }
  0x23   : > { %s1029_s5 = scalar_lea.vmem (!%p284_p10), [#allocation3], %s778_s4  ;;  %p336_p11 = scmp.lt.s32.totalorder (!%p284_p10), %s780_s10, 3  ;;  %v558_v36 = vshrl.u32 (!%p284_p10), %v557_v35, 7 }
  0x24   : > { %v871_v17 = vld [vmem:[%s1029_s5 + $0x4] ss:$8 sps:$4 sm:$0xff] (!%p284_p10)   ;;  %v873_v18 = vld [vmem:[%s1029_s5] ss:$8 sps:$4 sm:$0xff] (!%p284_p10)   ;;  %v874_v19 = vld [vmem:[%s1029_s5 + $0x14] ss:$8 sps:$4 sm:$0xff] (!%p284_p10)  }
  0x25   : > { %475 = vmatprep.subr.bf16.mxu0 (!%p284_p10), %v871_v17  ;;  %814 = vmatprep.subr.bf16.mxu1 (!%p284_p10), %v871_v17  ;;  %v876_v20 = vld [vmem:[%s1029_s5 + $0x10] ss:$8 sps:$4 sm:$0xff] (!%p284_p10)   ;;  %v877_v21 = vld [vmem:[%s1029_s5 + $0x24] ss:$8 sps:$4 sm:$0xff] (!%p284_p10)   ;;  %v879_v22 = vld [vmem:[%s1029_s5 + $0x20] ss:$8 sps:$4 sm:$0xff] (!%p284_p10)  }
  0x26   : > { %476 = vmatpush1.bf16.msra.mxu0 (!%p284_p10), %v873_v18  ;;  %822 = vmatpush1.bf16.msra.mxu1 (!%p284_p10), %v873_v18  ;;  %v880_v23 = vld [vmem:[%s1029_s5 + $0x34] ss:$8 sps:$4 sm:$0xff] (!%p284_p10)   ;;  %v882_v24 = vld [vmem:[%s1029_s5 + $0x30] ss:$8 sps:$4 sm:$0xff] (!%p284_p10)   ;;  %v883_v25 = vld [vmem:[%s1029_s5 + $0x44] ss:$8 sps:$4 sm:$0xff] (!%p284_p10)  }
  0x27   : > { %477 = vmatprep.subr.bf16.mxu0 (!%p284_p10), %v874_v19  ;;  %815 = vmatprep.subr.bf16.mxu1 (!%p284_p10), %v874_v19  ;;  %v885_v26 = vld [vmem:[%s1029_s5 + $0x40] ss:$8 sps:$4 sm:$0xff] (!%p284_p10)   ;;  %v886_v27 = vld [vmem:[%s1029_s5 + $0x54] ss:$8 sps:$4 sm:$0xff] (!%p284_p10)   ;;  %v888_v28 = vld [vmem:[%s1029_s5 + $0x50] ss:$8 sps:$4 sm:$0xff] (!%p284_p10)  }
  0x28   : > { %v889_v29 = vld [vmem:[%s1029_s5 + $0x64] ss:$8 sps:$4 sm:$0xff] (!%p284_p10)   ;;  %v891_v30 = vld [vmem:[%s1029_s5 + $0x60] ss:$8 sps:$4 sm:$0xff] (!%p284_p10)   ;;  %v892_v31 = vld [vmem:[%s1029_s5 + $0x74] ss:$8 sps:$4 sm:$0xff] (!%p284_p10)  }
  0x29   : > { %v894_v32 = vld [vmem:[%s1029_s5 + $0x70] ss:$8 sps:$4 sm:$0xff]   ;;  %s1092_s10 = smov (!%p336_p11, %s780_s10), 3  ;;  %v559_v37 = vsub.s32 0, %v558_v36  ;;  %v563_v39 = vsub.s32 1, %v558_v36  ;;  %s779_s20 = sshll.u32 %s290_s30, 5 }
  0x2a   : > { %478 = vmatpush1.bf16.msra.mxu0 %v876_v20  ;;  %823 = vmatpush1.bf16.msra.mxu1 %v876_v20  ;;  %s338_s19 = scalar_lea.vmem %s1082_s2, %s1092_s10  ;;  %s323_s12 = scalar_lea.vmem [#allocation4], %s779_s20 }
  0x2b   : > { %479 = vmatprep.subr.bf16.mxu0 %v877_v21  ;;  %816 = vmatprep.subr.bf16.mxu1 %v877_v21  ;;  %v555_v38 = vld [vmem:[%s338_s19] sm:$0x3]  ;;  %s813_s23 = sshll.u32 (%p993_p6), %s927_s14, 3 }
  0x2c   : > { %v560_v40 = vrot.slane %v555_v38, %v559_v37  ;;  %v564_v41 = vrot.slane %v555_v38, %v563_v39  ;;  %s623_s26 = scalar_lea.vmem (%p993_p6), %s1083_s3, %s813_s23 }
  0x2e   : > { %480 = vmatpush1.bf16.msra.mxu0 %v879_v22  ;;  %824 = vmatpush1.bf16.msra.mxu1 %v879_v22 }
  0x2f   : > { %481 = vmatprep.subr.bf16.mxu0 %v880_v23  ;;  %817 = vmatprep.subr.bf16.mxu1 %v880_v23 }
  0x32   : > { %482 = vmatpush1.bf16.msra.mxu0 %v882_v24  ;;  %825 = vmatpush1.bf16.msra.mxu1 %v882_v24 }
  0x33   : > { %483 = vmatprep.subr.bf16.mxu0 %v883_v25  ;;  %818 = vmatprep.subr.bf16.mxu1 %v883_v25 }
  0x36   : > { %484 = vmatpush1.bf16.msra.mxu0 %v885_v26  ;;  %826 = vmatpush1.bf16.msra.mxu1 %v885_v26 }
  0x37   : > { %485 = vmatprep.subr.bf16.mxu0 %v886_v27  ;;  %819 = vmatprep.subr.bf16.mxu1 %v886_v27 }
  0x3a   : > { %486 = vmatpush1.bf16.msra.mxu0 %v888_v28  ;;  %827 = vmatpush1.bf16.msra.mxu1 %v888_v28 }
  0x3b   : > { %487 = vmatprep.subr.bf16.mxu0 %v889_v29  ;;  %820 = vmatprep.subr.bf16.mxu1 %v889_v29 }
  0x3e   : > { %488 = vmatpush1.bf16.msra.mxu0 %v891_v30  ;;  %828 = vmatpush1.bf16.msra.mxu1 %v891_v30 }
  0x3f   : > { %489 = vmatprep.subr.bf16.mxu0 %v892_v31  ;;  %821 = vmatprep.subr.bf16.mxu1 %v892_v31 }
  0x42   : > { %490 = vmatpush1.bf16.msra.mxu0 %v894_v32  ;;  %829 = vmatpush1.bf16.msra.mxu1 %v894_v32 }
  0x45   : > { %508 = vmatmul.mubr.bf16.vlgmr.msra.gmra.mrb[0].mxu0 %v895_v33  ;;  %518 = vmatmul.mubr.bf16.vlgmr.msra.gmra.mrb[0].mxu1 %v896_v34 }
 0x118   : > { %v509_v42 = vpop.f32.mrb[0].mxu0  ;;  %v519_v43 = vpop.f32.mrb[0].mxu1 }
 0x119   : > { %v567_v44 = vadd.f32 %v560_v40, %v509_v42  ;;  %v571_v45 = vadd.f32 %v560_v40, %v519_v43  ;;  %v511_v46 = vpop.f32.mrb[1].mxu0  ;;  %v521_v47 = vpop.f32.mrb[1].mxu1 }
 0x11a   : > { %v568_v48 = vadd.f32 %v564_v41, %v511_v46  ;;  %v572_v49 = vadd.f32 %v564_v41, %v521_v47  ;;  %v513_v50 = vpop.f32.mrb[2].mxu0  ;;  %v523_v51 = vpop.f32.mrb[2].mxu1 }
 0x11b   : > { %v575_v52 = vmax.f32 %v567_v44, 0.0  ;;  %v579_v53 = vmax.f32 %v571_v45, 0.0  ;;  %v569_v54 = vadd.f32 %v560_v40, %v513_v50  ;;  %v573_v55 = vadd.f32 %v560_v40, %v523_v51  ;;  %v515_v56 = vpop.f32.mrb[3].mxu0  ;;  %v525_v57 = vpop.f32.mrb[3].mxu1 }
 0x11c   : > { %v576_v58 = vmax.f32 %v568_v48, 0.0  ;;  %v580_v59 = vmax.f32 %v572_v49, 0.0  ;;  %v570_v60 = vadd.f32 %v564_v41, %v515_v56  ;;  %v574_v61 = vadd.f32 %v564_v41, %v525_v57  ;;  %617 = sbr.rel (!%p993_p6) target bundleno = 299 (0x12b), region = 82 }
 0x11d   : > { %v577_v62 = vmax.f32 %v569_v54, 0.0  ;;  %v581_v63 = vmax.f32 %v573_v55, 0.0 }
 0x11e   : > { %v809_v0 = vpack.c.bf16 %v576_v58, %v575_v52  ;;  %v811_v1 = vpack.c.bf16 %v580_v59, %v579_v53  ;;  %v578_v2 = vmax.f32 %v570_v60, 0.0  ;;  %v582_v3 = vmax.f32 %v574_v61, 0.0 }
 0x120   : > { %607 = vst [vmem:[%s323_s12] sm:$0xff] %v809_v0  ;;  %609 = vst [vmem:[%s323_s12 + $0x10] sm:$0xff] %v811_v1  ;;  %v810_v4 = vpack.c.bf16 %v578_v2, %v577_v62  ;;  %v812_v5 = vpack.c.bf16 %v582_v3, %v581_v63 }
 0x122   : > { %608 = vst [vmem:[%s323_s12 + $0x8] sm:$0xff] %v810_v4  ;;  %610 = vst [vmem:[%s323_s12 + $0x18] sm:$0xff] %v812_v5 }
 0x127   : > { %v657_v6 = vld [vmem:[%s323_s12] sm:$0xff]  ;;  %v661_v8 = vld [vmem:[%s323_s12 + $0x10] sm:$0xff] }
 0x128   : > { %658 = vst [vmem:[%s623_s26] sm:$0xff] %v657_v6  ;;  %662 = vst [vmem:[%s623_s26 + $0x20] sm:$0xff] %v661_v8 }
 0x129   : > { %v659_v7 = vld [vmem:[%s323_s12 + $0x8] sm:$0xff]  ;;  %v663_v9 = vld [vmem:[%s323_s12 + $0x18] sm:$0xff] }
 0x12a   : > { %660 = vst [vmem:[%s623_s26 + $0x10] sm:$0xff] %v659_v7  ;;  %664 = vst [vmem:[%s623_s26 + $0x30] sm:$0xff] %v663_v9 }
 0x12b PF: > { %s13_s16 = sadd.s32 1, %s935_s16   ;;  %s1085_s12 = smov %s923_s13 }
 0x12c   : > { %p10_p12 = scmp.ge.s32.totalorder %s13_s16, 4   ;;  %s1086_s13 = smov %s998_s22 }
 0x12d   : > { %s1087_s14 = smov %s931_s15  ;;  %s1088_s15 = smov %s1090_s17 }
 0x12e   :  { %12 = sbr.rel (!%p10_p12) target bundleno = 3 (0x3), region = 157 }

// kernel: forward.48
= control target key start
LH: loop header
LB: loop body
LE: loop exit
PB: predicated region body
PF: predicated region fallthrough
CT: control target
= control target key end

     0   :  { %s906_s6 = smov 0   ;;  %s1010_s0 = inlined_call_operand.vmem [shape: bf16[2,16,384], index: 0, kind: input, shape index: {}]   ;;  %s1011_s1 = inlined_call_operand.vmem [shape: bf16[2,16,128], index: 1, kind: output, shape index: {}]  }
   0x1 LB: > { %s724_s7 = sadd.s32 4294967295, %s889_s6   ;;  %p728_p0 = scmp.ge.s32.totalorder %s889_s6, 1  ;;  %s889_s6 = sphi %s906_s6, %s11_s6  }
   0x2   : > { %p87_p1 = scmp.lt.s32.totalorder %s889_s6, 3 }
   0x4   : > { %p88_p2 = pnand %p728_p0, %p87_p1 }
   0x5   : > { %p107_p3 = scmp.lt.s32.totalorder (!%p88_p2), %s724_s7, 1  ;;  %v891_v0 = vmov (!%p88_p2), 0.0   ;;  %vm892_vm0 = vmmov (!%p88_p2), 0   ;;  %vm134_vm1 = vcmask (!%p88_p2), 261120   ;;  %vm184_vm2 = vcmask (!%p88_p2), 130048   ;;  %s893_s12 = smov (!%p88_p2), 96  }
   0x6   : > { %91 = sbr.rel (%p88_p2) target bundleno = 1500 (0x5dc), region = 24  ;;  %771 = vmatprep.subr.bf16.mxu0 (!%p88_p2), %v891_v0  ;;  %773 = vmatprep.mubr.msk.bf16.mxu0 (!%p88_p2), %vm892_vm0, %v891_v0  ;;  %s894_s13 = smov (!%p88_p2), 32   ;;  %vm653_vm3 = vcmask (!%p88_p2), 523264   ;;  %vm656_vm4 = vcmask (!%p88_p2), 785408  }
   0x7   : > { %777 = vmatprep.subr.bf16.mxu1 (!%p88_p2), %v891_v0  ;;  %779 = vmatprep.mubr.msk.bf16.mxu1 (!%p88_p2), %vm892_vm0, %v891_v0  ;;  %s895_s14 = smov (!%p88_p2), 64  }
   0xd   : > { %s1013_s7 = smov (!%p107_p3, %s724_s7), 1 }
   0xe   : > { %s819_s8 = smul.u32 24, %s1013_s7  ;;  %s747_s15 = sshll.u32 %s1013_s7, 3 }
   0xf   : > { %s116_s18 = scalar_lea.vmem %s1011_s1, %s747_s15 }
  0x10   : > { %s926_s11 = scalar_lea.vmem %s1010_s0, %s819_s8 }
  0x11   : > { %v848_v1 = vld [vmem:[%s926_s11 + $0x4] ss:$12 sps:$4 sm:$0xff]   ;;  %v849_v3 = vld [vmem:[%s926_s11] ss:$12 sps:$4 sm:$0xff]   ;;  %v942_v22 = vld [vmem:[%s926_s11 + $0x8] ss:$12 sps:$4 sm:$0xff]  }
  0x12   : > { %v139_v2 = vsel %vm134_vm1, %v848_v1, 0  ;;  %778 = vmatpush3.bf16.msra.mxu1 %v942_v22 }
  0x13   : > { %772 = vmatpush3.bf16.xpose.msra.mxu0 %v139_v2  ;;  %783 = vmatprep.subr.bf16.mxu1 %v891_v0 }
  0x14   : > { %789 = vmatprep.subr.bf16.mxu0 %v891_v0 }
  0x1a   : > { %774 = vmatmul.mubr.msk.bf16.vlgmr.msra.gmra.mrb[0].mxu0 %vm134_vm1, %v849_v3 }
  0x1b   : > { %791 = vmatprep.mubr.msk.bf16.mxu0 %vm892_vm0, %v891_v0 }
  0xed   : > { %v175_v4 = vpop.f32.mrb[0].mxu0 }
  0xee   : > { %v182_v5 = vmul.f32 0.17677669, %v175_v4  ;;  %v775_v6 = vpop.f32.mrb[1].mxu0 }
  0xef   : > { %v178_v7 = vpop.f32.mrb[2].mxu0 }
  0xf0   : > { %v183_v8 = vmul.f32 0.17677669, %v178_v7  ;;  %v776_v9 = vpop.f32.mrb[3].mxu0  ;;  %v185_v10 = vsel %vm184_vm2, %v182_v5, -inf }
  0xf1   : > { %186 = vmax.xlane.f32.xlu0 %v185_v10 }
  0xf2   : > { %v188_v11 = vsel %vm184_vm2, %v183_v8, -inf }
  0xf5   : > { %189 = vmax.xlane.f32.xlu0 %v188_v11 }
 0x10b   : > { %260 = vrot.lane.b32.xlu0 %v848_v1, %s893_s12 }
 0x10f   : > { %506 = vrot.lane.b32.xlu0 %v848_v1, %s894_s13 }
 0x17e   : > { %v187_v12 = vpop.xlane.xlu0 %186 }
 0x17f   : > { %v191_v13 = vsub.f32 %v182_v5, %v187_v12 }
 0x181   : > { %v193_v14 = vmul.f32 1.442695, %v191_v13 }
 0x182   : > { %v190_v15 = vpop.xlane.xlu0 %189 }
 0x183   : > { %851 = vpow2.f32 %v193_v14  ;;  %v192_v16 = vsub.f32 %v183_v8, %v190_v15 }
 0x185   : > { %v195_v17 = vmul.f32 1.442695, %v192_v16 }
 0x186   : > { %v261_v27 = vpop.permute.xlu0 %260 }
 0x187   : > { %853 = vpow2.f32 %v195_v17  ;;  %v266_v31 = vsel %vm134_vm1, %v261_v27, 0 }
 0x18a   : > { %v507_v35 = vpop.permute.xlu0 %506 }
 0x18b   : > { %v512_v37 = vsel %vm134_vm1, %v507_v35, 0 }
 0x18d   : > { %v852_v18 = vpop.eup %851 }
 0x18e   : > { %v197_v19 = vsel %vm184_vm2, %v852_v18, 0.0 }
 0x18f   : > { %198 = vadd.xlane.f32.xlu1 %v197_v19 }
 0x191   : > { %v854_v20 = vpop.eup %853 }
 0x192   : > { %v200_v21 = vsel %vm184_vm2, %v854_v20, 0.0 }
 0x193   : > { %201 = vadd.xlane.f32.xlu1 %v200_v21 }
 0x1a4   : > { %258 = vrot.lane.b32.xlu1 %v849_v3, %s893_s12 }
 0x1a8   : > { %383 = vrot.lane.b32.xlu1 %v848_v1, %s895_s14 }
 0x1ac   : > { %381 = vrot.lane.b32.xlu1 %v849_v3, %s895_s14 }
 0x1b0   : > { %504 = vrot.lane.b32.xlu1 %v849_v3, %s894_s13 }
 0x21c   : > { %v199_v23 = vpop.xlane.xlu1 %198 }
 0x21d   : > { %855 = vrcp.f32 %v199_v23 }
 0x220   : > { %v202_v24 = vpop.xlane.xlu1 %201 }
 0x221   : > { %857 = vrcp.f32 %v202_v24 }
 0x224   : > { %v259_v30 = vpop.permute.xlu1 %258 }
 0x227   : > { %v856_v25 = vpop.eup %855 }
 0x228   : > { %v205_v28 = vmul.f32 %v856_v25, %v852_v18  ;;  %v384_v33 = vpop.permute.xlu1 %383 }
 0x229   : > { %v389_v34 = vsel %vm134_vm1, %v384_v33, 0 }
 0x22b   : > { %v858_v26 = vpop.eup %857 }
 0x22c   : > { %v206_v29 = vmul.f32 %v858_v26, %v854_v20  ;;  %v382_v36 = vpop.permute.xlu1 %381 }
 0x22e   : > { %v207_v32 = vpack.c.bf16 %v206_v29, %v205_v28 }
 0x230   : > { %780 = vmatmul.mubr.msk.bf16.vlgmr.msra.gmra.mrb[0].mxu1 %vm184_vm2, %v207_v32  ;;  %v505_v38 = vpop.permute.xlu1 %504 }
 0x231   : > { %784 = vmatpush3.bf16.xpose.msra.mxu1 %v266_v31  ;;  %785 = vmatprep.mubr.msk.bf16.mxu1 %vm892_vm0, %v891_v0 }
 0x232   : > { %795 = vmatprep.subr.bf16.mxu1 %v891_v0 }
 0x238   : > { %786 = vmatmul.mubr.msk.bf16.vlgmr.msra.gmra.mrb[4].mxu1 %vm134_vm1, %v259_v30 }
 0x239   : > { %796 = vmatpush3.bf16.xpose.msra.mxu1 %v389_v34  ;;  %797 = vmatprep.mubr.msk.bf16.mxu1 %vm892_vm0, %v891_v0 }
 0x23a   : > { %807 = vmatprep.subr.bf16.mxu1 %v891_v0 }
 0x240   : > { %798 = vmatmul.mubr.msk.bf16.vlgmr.msra.gmra.mrb[8].mxu1 %vm134_vm1, %v382_v36 }
 0x241   : > { %808 = vmatpush3.bf16.xpose.msra.mxu1 %v512_v37  ;;  %809 = vmatprep.mubr.msk.bf16.mxu1 %vm892_vm0, %v891_v0 }
 0x248   : > { %810 = vmatmul.mubr.msk.bf16.vlgmr.msra.gmra.mrb[12].mxu1 %vm134_vm1, %v505_v38 }
 0x303   : > { %v965_v39 = vpop.f32.mrb[0].mxu1 }
 0x304   : > { %v781_v40 = vpop.f32.mrb[1].mxu1 }
 0x305   : > { %v967_v41 = vpop.f32.mrb[2].mxu1 }
 0x306   : > { %v782_v42 = vpop.f32.mrb[3].mxu1 }
 0x30b   : > { %v302_v43 = vpop.f32.mrb[4].mxu1 }
 0x30c   : > { %v309_v44 = vmul.f32 0.17677669, %v302_v43  ;;  %v787_v45 = vpop.f32.mrb[5].mxu1 }
 0x30d   : > { %v305_v46 = vpop.f32.mrb[6].mxu1 }
 0x30e   : > { %v310_v47 = vmul.f32 0.17677669, %v305_v46  ;;  %v788_v48 = vpop.f32.mrb[7].mxu1  ;;  %v311_v49 = vsel %vm184_vm2, %v309_v44, -inf }
 0x30f   : > { %312 = vmax.xlane.f32.xlu0 %v311_v49 }
 0x310   : > { %v314_v50 = vsel %vm184_vm2, %v310_v47, -inf }
 0x311   : > { %315 = vmax.xlane.f32.xlu1 %v314_v50 }
 0x313   : > { %v425_v51 = vpop.f32.mrb[8].mxu1 }
 0x314   : > { %v432_v52 = vmul.f32 0.17677669, %v425_v51  ;;  %v799_v53 = vpop.f32.mrb[9].mxu1 }
 0x315   : > { %v428_v54 = vpop.f32.mrb[10].mxu1 }
 0x316   : > { %v433_v55 = vmul.f32 0.17677669, %v428_v54  ;;  %v800_v56 = vpop.f32.mrb[11].mxu1  ;;  %v434_v57 = vsel %vm184_vm2, %v432_v52, -inf }
 0x317   : > { %435 = vmax.xlane.f32.xlu0 %v434_v57 }
 0x318   : > { %v437_v58 = vsel %vm184_vm2, %v433_v55, -inf }
 0x31b   : > { %438 = vmax.xlane.f32.xlu0 %v437_v58  ;;  %v548_v59 = vpop.f32.mrb[12].mxu1 }
 0x31c   : > { %v555_v60 = vmul.f32 0.17677669, %v548_v59  ;;  %v811_v61 = vpop.f32.mrb[13].mxu1 }
 0x31d   : > { %v551_v62 = vpop.f32.mrb[14].mxu1 }
 0x31e   : > { %v556_v63 = vmul.f32 0.17677669, %v551_v62  ;;  %v557_v1 = vsel %vm184_vm2, %v555_v60, -inf  ;;  %v812_v2 = vpop.f32.mrb[15].mxu1 }
 0x31f   : > { %558 = vmax.xlane.f32.xlu0 %v557_v1 }
 0x320   : > { %v560_v3 = vsel %vm184_vm2, %v556_v63, -inf }
 0x321   : > { %561 = vmax.xlane.f32.xlu1 %v560_v3 }
 0x39c   : > { %v313_v4 = vpop.xlane.xlu0 %312 }
 0x39d   : > { %v317_v5 = vsub.f32 %v309_v44, %v313_v4 }
 0x39e   : > { %v316_v6 = vpop.xlane.xlu1 %315 }
 0x39f   : > { %v319_v7 = vmul.f32 1.442695, %v317_v5  ;;  %v318_v8 = vsub.f32 %v310_v47, %v316_v6 }
 0x3a1   : > { %859 = vpow2.f32 %v319_v7  ;;  %v321_v9 = vmul.f32 1.442695, %v318_v8 }
 0x3a3   : > { %861 = vpow2.f32 %v321_v9 }
 0x3a4   : > { %v436_v10 = vpop.xlane.xlu0 %435 }
 0x3a5   : > { %v440_v11 = vsub.f32 %v432_v52, %v436_v10 }
 0x3a7   : > { %v442_v12 = vmul.f32 1.442695, %v440_v11 }
 0x3a8   : > { %v439_v13 = vpop.xlane.xlu0 %438 }
 0x3a9   : > { %863 = vpow2.f32 %v442_v12  ;;  %v441_v14 = vsub.f32 %v433_v55, %v439_v13 }
 0x3ab   : > { %v860_v15 = vpop.eup %859  ;;  %v444_v16 = vmul.f32 1.442695, %v441_v14 }
 0x3ac   : > { %v559_v17 = vpop.xlane.xlu0 %558  ;;  %v323_v18 = vsel %vm184_vm2, %v860_v15, 0.0 }
 0x3ad   : > { %v862_v19 = vpop.eup %861  ;;  %865 = vpow2.f32 %v444_v16  ;;  %v563_v20 = vsub.f32 %v555_v60, %v559_v17  ;;  %324 = vadd.xlane.f32.xlu0 %v323_v18 }
 0x3ae   : > { %v326_v21 = vsel %vm184_vm2, %v862_v19, 0.0  ;;  %v562_v30 = vpop.xlane.xlu1 %561 }
 0x3af   : > { %v565_v23 = vmul.f32 1.442695, %v563_v20  ;;  %327 = vadd.xlane.f32.xlu1 %v326_v21  ;;  %v564_v31 = vsub.f32 %v556_v63, %v562_v30 }
 0x3b1   : > { %867 = vpow2.f32 %v565_v23  ;;  %v567_v32 = vmul.f32 1.442695, %v564_v31 }
 0x3b3   : > { %v864_v24 = vpop.eup %863  ;;  %869 = vpow2.f32 %v567_v32 }
 0x3b4   : > { %v446_v25 = vsel %vm184_vm2, %v864_v24, 0.0 }
 0x3b5   : > { %447 = vadd.xlane.f32.xlu0 %v446_v25 }
 0x3b7   : > { %v866_v26 = vpop.eup %865 }
 0x3b8   : > { %v449_v27 = vsel %vm184_vm2, %v866_v26, 0.0 }
 0x3b9   : > { %450 = vadd.xlane.f32.xlu1 %v449_v27 }
 0x3bb   : > { %v868_v28 = vpop.eup %867 }
 0x3bc   : > { %v569_v29 = vsel %vm184_vm2, %v868_v28, 0.0 }
 0x3bd   : > { %570 = vadd.xlane.f32.xlu0 %v569_v29  ;;  %v870_v33 = vpop.eup %869 }
 0x3be   : > { %v572_v34 = vsel %vm184_vm2, %v870_v33, 0.0 }
 0x3ca   : > { %457 = vrot.lane.b32.xlu1 %v942_v22, %s895_s14 }
 0x3d3   : > { %334 = vrot.lane.b32.xlu0 %v942_v22, %s893_s12 }
 0x3ee   : > { %573 = vadd.xlane.f32.xlu1 %v572_v34 }
 0x3ff   : > { %580 = vrot.lane.b32.xlu1 %v942_v22, %s894_s13 }
 0x43a   : > { %v325_v36 = vpop.xlane.xlu0 %324 }
 0x43c   : > { %v328_v35 = vpop.xlane.xlu1 %327 }
 0x43d   : > { %871 = vrcp.f32 %v328_v35 }
 0x43e   : > { %873 = vrcp.f32 %v325_v36 }
 0x442   : > { %v448_v37 = vpop.xlane.xlu0 %447 }
 0x446   : > { %v451_v38 = vpop.xlane.xlu1 %450 }
 0x447   : > { %875 = vrcp.f32 %v451_v38  ;;  %v872_v40 = vpop.eup %871 }
 0x448   : > { %877 = vrcp.f32 %v448_v37  ;;  %v874_v43 = vpop.eup %873  ;;  %v332_v44 = vmul.f32 %v872_v40, %v862_v19 }
 0x449   : > { %v331_v45 = vmul.f32 %v874_v43, %v860_v15 }
 0x44a   : > { %v571_v42 = vpop.xlane.xlu0 %570  ;;  %v458_v22 = vpop.permute.xlu1 %457 }
 0x44b   : > { %v333_v47 = vpack.c.bf16 %v332_v44, %v331_v45  ;;  %879 = vrcp.f32 %v571_v42 }
 0x44e   : > { %v335_v46 = vpop.permute.xlu0 %334 }
 0x44f   : > { %790 = vmatpush3.bf16.msra.mxu0 %v335_v46 }
 0x450   : > { %801 = vmatprep.subr.bf16.mxu0 %v891_v0 }
 0x451   : > { %v876_v48 = vpop.eup %875 }
 0x452   : > { %792 = vmatmul.mubr.msk.bf16.vlgmr.msra.gmra.mrb[4].mxu0 %vm184_vm2, %v333_v47  ;;  %v878_v49 = vpop.eup %877  ;;  %v455_v50 = vmul.f32 %v876_v48, %v866_v26 }
 0x453   : > { %802 = vmatpush3.bf16.msra.mxu0 %v458_v22  ;;  %803 = vmatprep.mubr.msk.bf16.mxu0 %vm892_vm0, %v891_v0  ;;  %v454_v51 = vmul.f32 %v878_v49, %v864_v24 }
 0x454   : > { %813 = vmatprep.subr.bf16.mxu0 %v891_v0 }
 0x455   : > { %v456_v52 = vpack.c.bf16 %v455_v50, %v454_v51  ;;  %v880_v55 = vpop.eup %879 }
 0x456   : > { %v577_v57 = vmul.f32 %v880_v55, %v868_v28 }
 0x45a   : > { %804 = vmatmul.mubr.msk.bf16.vlgmr.msra.gmra.mrb[8].mxu0 %vm184_vm2, %v456_v52 }
 0x45b   : > { %815 = vmatprep.mubr.msk.bf16.mxu0 %vm892_vm0, %v891_v0 }
 0x47b   : > { %v574_v53 = vpop.xlane.xlu1 %573 }
 0x47c   : > { %881 = vrcp.f32 %v574_v53 }
 0x47f   : > { %v581_v54 = vpop.permute.xlu1 %580 }
 0x480   : > { %814 = vmatpush3.bf16.msra.mxu0 %v581_v54 }
 0x486   : > { %v882_v56 = vpop.eup %881 }
 0x487   : > { %v578_v58 = vmul.f32 %v882_v56, %v870_v33 }
 0x489   : > { %v579_v59 = vpack.c.bf16 %v578_v58, %v577_v57 }
 0x48b   : > { %816 = vmatmul.mubr.msk.bf16.vlgmr.msra.gmra.mrb[12].mxu0 %vm184_vm2, %v579_v59 }
 0x525   : > { %v374_v60 = vpop.f32.mrb[4].mxu0 }
 0x526   : > { %v793_v61 = vpop.f32.mrb[5].mxu0 }
 0x527   : > { %v377_v62 = vpop.f32.mrb[6].mxu0 }
 0x528   : > { %v833_v63 = vpack.i.bf16 %v377_v62, %v374_v60  ;;  %v794_v1 = vpop.f32.mrb[7].mxu0 }
 0x52a   : > { %834 = vrot.lane.b32.xlu1 %v833_v63, %s894_s13 }
 0x52d   : > { %v497_v0 = vpop.f32.mrb[8].mxu0 }
 0x52e   : > { %v805_v2 = vpop.f32.mrb[9].mxu0 }
 0x52f   : > { %v500_v3 = vpop.f32.mrb[10].mxu0 }
 0x530   : > { %v838_v4 = vpack.i.bf16 %v500_v3, %v497_v0  ;;  %v806_v5 = vpop.f32.mrb[11].mxu0 }
 0x532   : > { %839 = vrot.lane.b32.xlu0 %v838_v4, %s895_s14 }
 0x55e   : > { %v620_v6 = vpop.f32.mrb[12].mxu0 }
 0x55f   : > { %v817_v7 = vpop.f32.mrb[13].mxu0 }
 0x560   : > { %v623_v8 = vpop.f32.mrb[14].mxu0 }
 0x561   : > { %v843_v9 = vpack.i.bf16 %v623_v8, %v620_v6  ;;  %v818_v10 = vpop.f32.mrb[15].mxu0 }
 0x563   : > { %844 = vrot.lane.b32.xlu1 %v843_v9, %s893_s12 }
 0x59c   : > { %v835_v11 = vpop.permute.xlu1 %834 }
 0x59d   : > { %v837_v13 = vunpack.i.h.bf16 %v835_v11  ;;  %v836_v14 = vunpack.i.l.bf16 %v835_v11 }
 0x59f   : > { %v652_v18 = vsel %vm134_vm1, %v967_v41, %v837_v13  ;;  %v651_v19 = vsel %vm134_vm1, %v965_v39, %v836_v14 }
 0x5a4   : > { %v840_v12 = vpop.permute.xlu0 %839 }
 0x5a5   : > { %v842_v15 = vunpack.i.h.bf16 %v840_v12  ;;  %v841_v16 = vunpack.i.l.bf16 %v840_v12 }
 0x5a7   : > { %v655_v23 = vsel %vm653_vm3, %v652_v18, %v842_v15  ;;  %v654_v24 = vsel %vm653_vm3, %v651_v19, %v841_v16 }
 0x5d5   : > { %v845_v17 = vpop.permute.xlu1 %844 }
 0x5d6   : > { %v847_v20 = vunpack.i.h.bf16 %v845_v17  ;;  %v846_v21 = vunpack.i.l.bf16 %v845_v17 }
 0x5d8   : > { %v658_v25 = vsel %vm656_vm4, %v655_v23, %v847_v20  ;;  %v657_v26 = vsel %vm656_vm4, %v654_v24, %v846_v21 }
 0x5d9   : > { %v753_v27 = vpack.c.bf16 %v658_v25, %v657_v26 }
 0x5db   : > { %754 = vst [vmem:[%s116_s18] sm:$0xff] %v753_v27  }
 0x5dc PF: > { %s11_s6 = sadd.s32 1, %s889_s6  }
 0x5dd   : > { %p8_p4 = scmp.ge.s32.totalorder %s11_s6, 4  }
 0x5df   :  { %10 = sbr.rel (!%p8_p4) target bundleno = 1 (0x1), region = 54 }

// kernel: forward.66
= control target key start
LH: loop header
LB: loop body
LE: loop exit
PB: predicated region body
PF: predicated region fallthrough
CT: control target
= control target key end

     0   :  { %v348_v1 = vmov 0   ;;  %v229_v19 = vlaneseq  ;;  %s438_s1 = inlined_call_operand.vmem [shape: bf16[128,256], index: 1, kind: input, shape index: {}]   ;;  %s439_s0 = inlined_call_operand.vmem [shape: bf16[32,128], index: 0, kind: input, shape index: {}]   ;;  %s440_s2 = inlined_call_operand.vmem [shape: f32[1,256], index: 2, kind: input, shape index: {}]   ;;  %s441_s3 = inlined_call_operand.vmem [shape: bf16[32,256], index: 3, kind: output, shape index: {}]  }
   0x1   :  { %v322_v0 = vld [vmem:[%s438_s1 + $0x4] ss:$8 sps:$4 sm:$0xff]   ;;  %179 = vmatprep.mubr.bf16.mxu0 %v348_v1  ;;  %189 = vmatprep.mubr.bf16.mxu1 %v348_v1  ;;  %v324_v2 = vld [vmem:[%s438_s1] ss:$8 sps:$4 sm:$0xff]   ;;  %v325_v3 = vld [vmem:[%s438_s1 + $0x14] ss:$8 sps:$4 sm:$0xff]  }
   0x2   :  { %147 = vmatprep.subr.bf16.mxu0 %v322_v0  ;;  %305 = vmatprep.subr.bf16.mxu1 %v322_v0  ;;  %v327_v4 = vld [vmem:[%s438_s1 + $0x10] ss:$8 sps:$4 sm:$0xff]   ;;  %v328_v5 = vld [vmem:[%s438_s1 + $0x24] ss:$8 sps:$4 sm:$0xff]   ;;  %v330_v6 = vld [vmem:[%s438_s1 + $0x20] ss:$8 sps:$4 sm:$0xff]  }
   0x3   :  { %148 = vmatpush1.bf16.msra.mxu0 %v324_v2  ;;  %313 = vmatpush1.bf16.msra.mxu1 %v324_v2  ;;  %v331_v7 = vld [vmem:[%s438_s1 + $0x34] ss:$8 sps:$4 sm:$0xff]   ;;  %v333_v8 = vld [vmem:[%s438_s1 + $0x30] ss:$8 sps:$4 sm:$0xff]   ;;  %v334_v9 = vld [vmem:[%s438_s1 + $0x44] ss:$8 sps:$4 sm:$0xff]  }
   0x4   :  { %149 = vmatprep.subr.bf16.mxu0 %v325_v3  ;;  %306 = vmatprep.subr.bf16.mxu1 %v325_v3  ;;  %v336_v10 = vld [vmem:[%s438_s1 + $0x40] ss:$8 sps:$4 sm:$0xff]   ;;  %v337_v11 = vld [vmem:[%s438_s1 + $0x54] ss:$8 sps:$4 sm:$0xff]   ;;  %v339_v12 = vld [vmem:[%s438_s1 + $0x50] ss:$8 sps:$4 sm:$0xff]  }
   0x5   :  { %v340_v13 = vld [vmem:[%s438_s1 + $0x64] ss:$8 sps:$4 sm:$0xff]   ;;  %v342_v14 = vld [vmem:[%s438_s1 + $0x60] ss:$8 sps:$4 sm:$0xff]   ;;  %v343_v15 = vld [vmem:[%s438_s1 + $0x74] ss:$8 sps:$4 sm:$0xff]  }
   0x6   :  { %v345_v16 = vld [vmem:[%s438_s1 + $0x70] ss:$8 sps:$4 sm:$0xff]   ;;  %v346_v17 = vld [vmem:[%s439_s0] sm:$0xff]   ;;  %v347_v18 = vld [vmem:[%s439_s0 + $0x8] sm:$0xff]   ;;  %v230_v20 = vshrl.u32 %v229_v19, 7 }
   0x7   :  { %150 = vmatpush1.bf16.msra.mxu0 %v327_v4  ;;  %314 = vmatpush1.bf16.msra.mxu1 %v327_v4  ;;  %v227_v22 = vld [vmem:[%s440_s2] sm:$0x3] }
   0x8   :  { %151 = vmatprep.subr.bf16.mxu0 %v328_v5  ;;  %307 = vmatprep.subr.bf16.mxu1 %v328_v5  ;;  %v231_v21 = vsub.s32 0, %v230_v20  ;;  %v235_v23 = vsub.s32 1, %v230_v20 }
   0xa   :  { %v232_v24 = vrot.slane %v227_v22, %v231_v21  ;;  %v236_v25 = vrot.slane %v227_v22, %v235_v23 }
   0xb   :  { %152 = vmatpush1.bf16.msra.mxu0 %v330_v6  ;;  %315 = vmatpush1.bf16.msra.mxu1 %v330_v6 }
   0xc   :  { %153 = vmatprep.subr.bf16.mxu0 %v331_v7  ;;  %308 = vmatprep.subr.bf16.mxu1 %v331_v7 }
   0xf   :  { %154 = vmatpush1.bf16.msra.mxu0 %v333_v8  ;;  %316 = vmatpush1.bf16.msra.mxu1 %v333_v8 }
  0x10   :  { %155 = vmatprep.subr.bf16.mxu0 %v334_v9  ;;  %309 = vmatprep.subr.bf16.mxu1 %v334_v9 }
  0x13   :  { %156 = vmatpush1.bf16.msra.mxu0 %v336_v10  ;;  %317 = vmatpush1.bf16.msra.mxu1 %v336_v10 }
  0x14   :  { %157 = vmatprep.subr.bf16.mxu0 %v337_v11  ;;  %310 = vmatprep.subr.bf16.mxu1 %v337_v11 }
  0x17   :  { %158 = vmatpush1.bf16.msra.mxu0 %v339_v12  ;;  %318 = vmatpush1.bf16.msra.mxu1 %v339_v12 }
  0x18   :  { %159 = vmatprep.subr.bf16.mxu0 %v340_v13  ;;  %311 = vmatprep.subr.bf16.mxu1 %v340_v13 }
  0x1b   :  { %160 = vmatpush1.bf16.msra.mxu0 %v342_v14  ;;  %319 = vmatpush1.bf16.msra.mxu1 %v342_v14 }
  0x1c   :  { %161 = vmatprep.subr.bf16.mxu0 %v343_v15  ;;  %312 = vmatprep.subr.bf16.mxu1 %v343_v15 }
  0x1f   :  { %162 = vmatpush1.bf16.msra.mxu0 %v345_v16  ;;  %320 = vmatpush1.bf16.msra.mxu1 %v345_v16 }
  0x22   :  { %180 = vmatmul.mubr.bf16.vlgmr.msra.gmra.mrb[0].mxu0 %v346_v17  ;;  %190 = vmatmul.mubr.bf16.vlgmr.msra.gmra.mrb[0].mxu1 %v347_v18 }
  0xf5   :  { %v181_v26 = vpop.f32.mrb[0].mxu0  ;;  %v191_v27 = vpop.f32.mrb[0].mxu1 }
  0xf6   :  { %v239_v28 = vadd.f32 %v232_v24, %v181_v26  ;;  %v243_v29 = vadd.f32 %v232_v24, %v191_v27  ;;  %v183_v30 = vpop.f32.mrb[1].mxu0  ;;  %v193_v31 = vpop.f32.mrb[1].mxu1 }
  0xf7   :  { %v240_v32 = vadd.f32 %v236_v25, %v183_v30  ;;  %v244_v33 = vadd.f32 %v236_v25, %v193_v31  ;;  %v185_v34 = vpop.f32.mrb[2].mxu0  ;;  %v195_v35 = vpop.f32.mrb[2].mxu1 }
  0xf8   :  { %v241_v36 = vadd.f32 %v232_v24, %v185_v34  ;;  %v245_v37 = vadd.f32 %v232_v24, %v195_v35  ;;  %v187_v38 = vpop.f32.mrb[3].mxu0  ;;  %v197_v39 = vpop.f32.mrb[3].mxu1 }
  0xf9   :  { %v301_v40 = vpack.c.bf16 %v240_v32, %v239_v28  ;;  %v303_v41 = vpack.c.bf16 %v244_v33, %v243_v29  ;;  %v242_v42 = vadd.f32 %v236_v25, %v187_v38  ;;  %v246_v43 = vadd.f32 %v236_v25, %v197_v39 }
  0xfb   :  { %271 = vst [vmem:[%s441_s3] sm:$0xff] %v301_v40  ;;  %273 = vst [vmem:[%s441_s3 + $0x10] sm:$0xff] %v303_v41  ;;  %v302_v44 = vpack.c.bf16 %v242_v42, %v241_v36  ;;  %v304_v45 = vpack.c.bf16 %v246_v43, %v245_v37 }
  0xfd   :  { %272 = vst [vmem:[%s441_s3 + $0x8] sm:$0xff] %v302_v44  ;;  %274 = vst [vmem:[%s441_s3 + $0x18] sm:$0xff] %v304_v45 }

// kernel: forward.46
= control target key start
LH: loop header
LB: loop body
LE: loop exit
PB: predicated region body
PF: predicated region fallthrough
CT: control target
= control target key end

     0   :  { %s1158_s12 = smov 0   ;;  %s1160_s13 = smov 0   ;;  %s1426_s0 = inlined_call_operand.vmem [shape: bf16[32,128], index: 0, kind: input, shape index: {}]   ;;  %s1427_s1 = inlined_call_operand.vmem [shape: bf16[1024,128], index: 1, kind: input, shape index: {}]   ;;  %s1428_s2 = inlined_call_operand.vmem [shape: f32[1,1024], index: 2, kind: input, shape index: {}]   ;;  %s1429_s3 = inlined_call_operand.vmem [shape: s32[32,128], index: 3, kind: output, shape index: {}]  }
   0x1   :  { %s1162_s14 = smov 0  }
   0x2 LB: > { %s22_s15 = sadd.s32 1, %s1129_s13  ;;  %p963_p0 = scmp.ge.s32.totalorder %s1133_s14, 1  ;;  %s1133_s14 = sphi %s1162_s14, %s13_s14   ;;  %s1129_s13 = sphi %s1160_s13, %s1431_s13   ;;  %s1125_s12 = sphi %s1158_s12, %s1430_s12  }
   0x3   : > { %p23_p1 = scmp.ge.s32.totalorder %s22_s15, 2  ;;  %p171_p2 = scmp.lt.s32.totalorder %s1133_s14, 3 }
   0x5   : > { %s1433_s15 = smov (%p23_p1, %s22_s15), 0  ;;  %p172_p3 = pnand %p963_p0, %p171_p2 }
   0x6   : > { %s964_s16 = sshll.u32 (!%p172_p3), %s1125_s12, 6  ;;  %s966_s17 = sshll.u32 (!%p172_p3), %s1125_s12, 2 }
   0x7   : > { %175 = sbr.rel (%p172_p3) target bundleno = 907 (0x38b), region = 32  ;;  %p211_p4 = scmp.lt.s32.totalorder (!%p172_p3), %s964_s16, 127 }
   0x8   : > { %p217_p5 = scmp.lt.s32.totalorder (!%p172_p3), %s966_s17, 7  ;;  %p967_p6 = scmp.ne.s32.totalorder (!%p172_p3), %s1125_s12, 0 }
   0xe   : > { %s1435_s16 = smov (!%p211_p4, %s964_s16), 127  ;;  %s1437_s17 = smov (!%p217_p5, %s966_s17), 7 }
   0xf   : > { %s965_s18 = sshll.u32 %s1435_s16, 2  ;;  %s219_s24 = scalar_lea.vmem %s1428_s2, %s1437_s17  ;;  %vm232_vm0 = vcmask (!%p967_p6), 7168   ;;  %v1135_v0 = vmov (!%p967_p6), inf   ;;  %v1136_v1 = vmov (!%p967_p6), 0  }
  0x10   : > { %s1185_s21 = scalar_lea.vmem %s1427_s1, %s965_s18  ;;  %231 = sbr.rel (%p967_p6) target bundleno = 23 (0x17), region = 36  ;;  %233 = vst.msk [vmem:[#allocation2] sm:$0xff] (!%p967_p6), %vm232_vm0, %v1135_v0  ;;  %234 = vst.msk [vmem:[#allocation2 + $0x8] sm:$0xff] (!%p967_p6), %vm232_vm0, %v1135_v0 }
  0x11   : > { %235 = vst.msk [vmem:[#allocation2 + $0x10] sm:$0xff] (!%p967_p6), %vm232_vm0, %v1135_v0  ;;  %236 = vst.msk [vmem:[#allocation2 + $0x18] sm:$0xff] (!%p967_p6), %vm232_vm0, %v1135_v0 }
  0x12   : > { %237 = vst.msk [vmem:[#allocation3] sm:$0xff] (!%p967_p6), %vm232_vm0, %v1136_v1  ;;  %238 = vst.msk [vmem:[#allocation3 + $0x8] sm:$0xff] (!%p967_p6), %vm232_vm0, %v1136_v1 }
  0x13   : > { %239 = vst.msk [vmem:[#allocation3 + $0x10] sm:$0xff] (!%p967_p6), %vm232_vm0, %v1136_v1  ;;  %240 = vst.msk [vmem:[#allocation3 + $0x18] sm:$0xff] (!%p967_p6), %vm232_vm0, %v1136_v1 }
  0x17 PF: > { %v1075_v2 = vld [vmem:[%s1185_s21 + $0x40] sm:$0xff]   ;;  %v1079_v6 = vld [vmem:[%s1185_s21 + $0x48] sm:$0xff]   ;;  %v1083_v10 = vld [vmem:[%s1185_s21 + $0x50] sm:$0xff]   ;;  %v637_v36 = vlaneseq  ;;  %s1002_s4 = sshll.u32 %s1125_s12, 9  ;;  %vm832_vm4 = vcmask 7168   ;;  %p1003_p7 = scmp.ne.s32.totalorder %s1125_s12, 1 }
  0x18   : > { %v1076_v3 = vld [vmem:[%s1185_s21 + $0xc0] sm:$0xff]   ;;  %1008 = vmatprep.subr.bf16.mxu0 %v1075_v2  ;;  %v1080_v7 = vld [vmem:[%s1185_s21 + $0xc8] sm:$0xff]   ;;  %v1084_v11 = vld [vmem:[%s1185_s21 + $0xd0] sm:$0xff]  }
  0x19   : > { %v1077_v4 = vld [vmem:[%s1185_s21] sm:$0xff]   ;;  %1028 = vmatprep.subr.bf16.mxu1 %v1076_v3  ;;  %v1081_v8 = vld [vmem:[%s1185_s21 + $0x8] sm:$0xff]   ;;  %v1085_v12 = vld [vmem:[%s1185_s21 + $0x10] sm:$0xff]   ;;  %v638_v37 = vshrl.u32 %v637_v36, 7 }
  0x1a   : > { %v1078_v5 = vld [vmem:[%s1185_s21 + $0x80] sm:$0xff]   ;;  %1009 = vmatpush3.bf16.xpose.msra.mxu0 %v1077_v4  ;;  %v1082_v9 = vld [vmem:[%s1185_s21 + $0x88] sm:$0xff]   ;;  %v1086_v13 = vld [vmem:[%s1185_s21 + $0x90] sm:$0xff]  }
  0x1b   : > { %1029 = vmatpush3.bf16.xpose.msra.mxu1 %v1078_v5  ;;  %1010 = vmatprep.subr.bf16.mxu0 %v1079_v6  ;;  %v1087_v14 = vld [vmem:[%s1185_s21 + $0x58] sm:$0xff]   ;;  %v1091_v18 = vld [vmem:[%s1185_s21 + $0x60] sm:$0xff]   ;;  %v1095_v23 = vld [vmem:[%s1185_s21 + $0x68] sm:$0xff]   ;;  %v639_v38 = vsub.s32 0, %v638_v37  ;;  %v647_v40 = vsub.s32 2, %v638_v37  ;;  %v643_v41 = vsub.s32 1, %v638_v37 }
  0x1c   : > { %1030 = vmatprep.subr.bf16.mxu1 %v1080_v7  ;;  %v1088_v15 = vld [vmem:[%s1185_s21 + $0xd8] sm:$0xff]   ;;  %v1092_v19 = vld [vmem:[%s1185_s21 + $0xe0] sm:$0xff]   ;;  %v1096_v24 = vld [vmem:[%s1185_s21 + $0xe8] sm:$0xff]   ;;  %v651_v43 = vsub.s32 3, %v638_v37 }
  0x1d   : > { %v1089_v16 = vld [vmem:[%s1185_s21 + $0x18] sm:$0xff]   ;;  %v1093_v20 = vld [vmem:[%s1185_s21 + $0x20] sm:$0xff]   ;;  %v1097_v25 = vld [vmem:[%s1185_s21 + $0x28] sm:$0xff]  }
  0x1e   : > { %v1090_v17 = vld [vmem:[%s1185_s21 + $0x98] sm:$0xff]   ;;  %v1094_v21 = vld [vmem:[%s1185_s21 + $0xa0] sm:$0xff]   ;;  %v1098_v26 = vld [vmem:[%s1185_s21 + $0xa8] sm:$0xff]  }
  0x1f   : > { %v1107_v22 = vld [vmem:[%s1426_s0] sm:$0xff]   ;;  %v1099_v27 = vld [vmem:[%s1185_s21 + $0x70] sm:$0xff]   ;;  %v1103_v31 = vld [vmem:[%s1185_s21 + $0x78] sm:$0xff]  }
  0x20   : > { %1024 = vmatprep.mubr.bf16.mxu0 %v1107_v22  ;;  %1044 = vmatprep.mubr.bf16.mxu1 %v1107_v22  ;;  %v1100_v28 = vld [vmem:[%s1185_s21 + $0xf0] sm:$0xff]   ;;  %v1104_v32 = vld [vmem:[%s1185_s21 + $0xf8] sm:$0xff]   ;;  %v1108_v35 = vld [vmem:[%s1426_s0 + $0x8] sm:$0xff]  }
  0x21   : > { %v1101_v29 = vld [vmem:[%s1185_s21 + $0x30] sm:$0xff]   ;;  %v1105_v33 = vld [vmem:[%s1185_s21 + $0x38] sm:$0xff]   ;;  %v619_v39 = vld [vmem:[%s219_s24] sm:$0xf] }
  0x22   : > { %1011 = vmatpush3.bf16.xpose.msra.mxu0 %v1081_v8  ;;  %v1102_v30 = vld [vmem:[%s1185_s21 + $0xb0] sm:$0xff]   ;;  %v1106_v34 = vld [vmem:[%s1185_s21 + $0xb8] sm:$0xff]   ;;  %v640_v42 = vrot.slane %v619_v39, %v639_v38  ;;  %v648_v45 = vrot.slane %v619_v39, %v647_v40  ;;  %v644_v46 = vrot.slane %v619_v39, %v643_v41  ;;  %v652_v59 = vrot.slane %v619_v39, %v651_v43 }
  0x23   : > { %1031 = vmatpush3.bf16.xpose.msra.mxu1 %v1082_v9  ;;  %1012 = vmatprep.subr.bf16.mxu0 %v1083_v10 }
  0x24   : > { %1032 = vmatprep.subr.bf16.mxu1 %v1084_v11 }
  0x2a   : > { %1013 = vmatpush3.bf16.xpose.msra.mxu0 %v1085_v12 }
  0x2b   : > { %1033 = vmatpush3.bf16.xpose.msra.mxu1 %v1086_v13  ;;  %1014 = vmatprep.subr.bf16.mxu0 %v1087_v14 }
  0x2c   : > { %1034 = vmatprep.subr.bf16.mxu1 %v1088_v15 }
  0x32   : > { %1015 = vmatpush3.bf16.xpose.msra.mxu0 %v1089_v16 }
  0x33   : > { %1035 = vmatpush3.bf16.xpose.msra.mxu1 %v1090_v17  ;;  %1016 = vmatprep.subr.bf16.mxu0 %v1091_v18 }
  0x34   : > { %1036 = vmatprep.subr.bf16.mxu1 %v1092_v19 }
  0x3a   : > { %1017 = vmatpush3.bf16.xpose.msra.mxu0 %v1093_v20 }
  0x3b   : > { %1037 = vmatpush3.bf16.xpose.msra.mxu1 %v1094_v21  ;;  %1018 = vmatprep.subr.bf16.mxu0 %v1095_v23 }
  0x3c   : > { %1038 = vmatprep.subr.bf16.mxu1 %v1096_v24 }
  0x42   : > { %1019 = vmatpush3.bf16.xpose.msra.mxu0 %v1097_v25 }
  0x43   : > { %1039 = vmatpush3.bf16.xpose.msra.mxu1 %v1098_v26  ;;  %1020 = vmatprep.subr.bf16.mxu0 %v1099_v27 }
  0x44   : > { %1040 = vmatprep.subr.bf16.mxu1 %v1100_v28 }
  0x4a   : > { %1021 = vmatpush3.bf16.xpose.msra.mxu0 %v1101_v29 }
  0x4b   : > { %1041 = vmatpush3.bf16.xpose.msra.mxu1 %v1102_v30  ;;  %1022 = vmatprep.subr.bf16.mxu0 %v1103_v31 }
  0x4c   : > { %1042 = vmatprep.subr.bf16.mxu1 %v1104_v32 }
  0x52   : > { %1023 = vmatpush3.bf16.xpose.msra.mxu0 %v1105_v33 }
  0x53   : > { %1043 = vmatpush3.bf16.xpose.msra.mxu1 %v1106_v34 }
  0x59   : > { %1025 = vmatmul.mubr.bf16.vlgmr.msra.gmra.mrb[0].mxu0 %v1107_v22 }
  0x5a   : > { %1045 = vmatmul.mubr.bf16.vlgmr.msra.gmra.mrb[0].mxu1 %v1107_v22  ;;  %1026 = vmatprep.mubr.bf16.mxu0 %v1108_v35 }
  0x5b   : > { %1046 = vmatprep.mubr.bf16.mxu1 %v1108_v35 }
  0x61   : > { %1027 = vmatmul.mubr.bf16.gmra.mrb[4].mxu0 %v1108_v35 }
  0x62   : > { %1047 = vmatmul.mubr.bf16.gmra.mrb[4].mxu1 %v1108_v35 }
 0x12c   : > { %v547_v44 = vpop.f32.mrb[0].mxu0 }
 0x12d   : > { %v620_v47 = vmul.f32 2.0, %v547_v44  ;;  %v600_v48 = vpop.f32.mrb[0].mxu1  ;;  %v549_v49 = vpop.f32.mrb[1].mxu0  ;;  %v694_v44 = vand.u32 127, %v637_v36 }
 0x12e   : > { %v622_v50 = vmul.f32 2.0, %v600_v48  ;;  %v621_v51 = vmul.f32 2.0, %v549_v49  ;;  %v602_v52 = vpop.f32.mrb[1].mxu1  ;;  %v551_v53 = vpop.f32.mrb[2].mxu0 }
 0x12f   : > { %v1236_v54 = vsub.f32 %v640_v42, %v620_v47  ;;  %v623_v55 = vmul.f32 2.0, %v602_v52  ;;  %v624_v56 = vmul.f32 2.0, %v551_v53  ;;  %v604_v57 = vpop.f32.mrb[2].mxu1  ;;  %v553_v58 = vpop.f32.mrb[3].mxu0  ;;  %v696_v47 = vadd.s32 256, %v694_v44  ;;  %v1292_v53 = vld [vmem:[#allocation2] sm:$0xff] }
 0x130   : > { %v1238_v60 = vsub.f32 %v648_v45, %v622_v50  ;;  %v1240_v61 = vsub.f32 %v644_v46, %v621_v51  ;;  %v626_v62 = vmul.f32 2.0, %v604_v57  ;;  %v625_v63 = vmul.f32 2.0, %v553_v58  ;;  %v606_v0 = vpop.f32.mrb[3].mxu1 }
 0x131   : > { %v1242_v1 = vsub.f32 %v640_v42, %v624_v56  ;;  %v627_v4 = vmul.f32 2.0, %v606_v0  ;;  %v1252_v8 = vsub.f32 %v652_v59, %v623_v55  ;;  %v697_v48 = vadd.s32 384, %v694_v44 }
 0x132   : > { %v1244_v2 = vsub.f32 %v644_v46, %v625_v63  ;;  %v673_v3 = vmin.f32 %v1236_v54, %v1240_v61  ;;  %v1248_v5 = vsub.f32 %v648_v45, %v626_v62 }
 0x133   : > { %v1257_v19 = vsub.f32 %v652_v59, %v627_v4 }
 0x134   : > { %v678_v6 = vmin.f32 %v1242_v1, %v1244_v2  ;;  %v557_v7 = vpop.f32.mrb[4].mxu0  ;;  %v674_v9 = vmin.f32 %v673_v3, %v1238_v60 }
 0x135   : > { %v628_v10 = vmul.f32 2.0, %v557_v7  ;;  %v610_v11 = vpop.f32.mrb[4].mxu1  ;;  %v559_v12 = vpop.f32.mrb[5].mxu0 }
 0x136   : > { %v630_v13 = vmul.f32 2.0, %v610_v11  ;;  %v629_v14 = vmul.f32 2.0, %v559_v12  ;;  %v612_v15 = vpop.f32.mrb[5].mxu1  ;;  %v561_v16 = vpop.f32.mrb[6].mxu0  ;;  %v675_v17 = vmin.f32 %v674_v9, %v1252_v8  ;;  %v679_v18 = vmin.f32 %v678_v6, %v1248_v5 }
 0x137   : > { %v1259_v20 = vsub.f32 %v640_v42, %v628_v10  ;;  %v631_v21 = vmul.f32 2.0, %v612_v15  ;;  %v632_v22 = vmul.f32 2.0, %v561_v16  ;;  %v614_v23 = vpop.f32.mrb[6].mxu1  ;;  %v563_v24 = vpop.f32.mrb[7].mxu0  ;;  %v1340_v10 = vld [vmem:[#allocation2 + $0x8] sm:$0xff] }
 0x138   : > { %v1261_v25 = vsub.f32 %v648_v45, %v630_v13  ;;  %v1263_v26 = vsub.f32 %v644_v46, %v629_v14  ;;  %v634_v27 = vmul.f32 2.0, %v614_v23  ;;  %v633_v28 = vmul.f32 2.0, %v563_v24  ;;  %v616_v29 = vpop.f32.mrb[7].mxu1  ;;  %676 = vmin.xlane.f32.xlu0 %v675_v17 }
 0x139   : > { %v1265_v30 = vsub.f32 %v640_v42, %v632_v22  ;;  %v680_v32 = vmin.f32 %v679_v18, %v1257_v19  ;;  %v635_v34 = vmul.f32 2.0, %v616_v29  ;;  %v1276_v38 = vsub.f32 %v652_v59, %v631_v21  ;;  %v1357_v21 = vld [vmem:[#allocation2 + $0x10] sm:$0xff]  ;;  %v1361_v22 = vld [vmem:[#allocation2 + $0x18] sm:$0xff] }
 0x13a   : > { %v1267_v31 = vsub.f32 %v644_v46, %v633_v28  ;;  %v683_v33 = vmin.f32 %v1259_v20, %v1263_v26  ;;  %v1272_v35 = vsub.f32 %v648_v45, %v634_v27  ;;  %v695_v45 = vadd.s32 128, %v694_v44 }
 0x13b   : > { %v1281_v42 = vsub.f32 %v652_v59, %v635_v34  ;;  %v699_v46 = vstv %s1002_s4 }
 0x13c   : > { %v688_v37 = vmin.f32 %v1265_v30, %v1267_v31  ;;  %681 = vmin.xlane.f32.xlu0 %v680_v32  ;;  %v684_v39 = vmin.f32 %v683_v33, %v1261_v25  ;;  %v700_v49 = vadd.s32 %v699_v46, %v694_v44  ;;  %v1286_v50 = vadd.s32 %v699_v46, %v695_v45 }
 0x13d   : > { %v1290_v52 = vadd.s32 %v699_v46, %v696_v47  ;;  %v1300_v36 = vadd.s32 %v699_v46, %v697_v48 }
 0x13e   : > { %v685_v40 = vmin.f32 %v684_v39, %v1276_v38  ;;  %v689_v41 = vmin.f32 %v688_v37, %v1272_v35 }
 0x140   : > { %686 = vmin.xlane.f32.xlu1 %v685_v40  ;;  %v690_v43 = vmin.f32 %v689_v41, %v1281_v42 }
 0x144   : > { %691 = vmin.xlane.f32.xlu1 %v690_v43 }
 0x1c5   : > { %v1288_v51 = vpop.xlane.xlu0 %676 }
 0x1c6   : > { %vm704_vm1 = vcmp.eq.f32.partialorder %v1236_v54, %v1288_v51  ;;  %vm705_vm2 = vcmp.eq.f32.partialorder %v1240_v61, %v1288_v51  ;;  %vm706_vm3 = vcmp.eq.f32.partialorder %v1238_v60, %v1288_v51  ;;  %vm707_vm5 = vcmp.eq.f32.partialorder %v1252_v8, %v1288_v51 }
 0x1c7   : > { %v720_v55 = vsel %vm704_vm1, %v700_v49, 1073741824  ;;  %v721_v56 = vsel %vm705_vm2, %v1286_v50, 1073741824  ;;  %vm820_vm7 = vcmp.lt.f32.partialorder %v1288_v51, %v1292_v53  ;;  %v722_v57 = vsel %vm706_vm3, %v1290_v52, 1073741824 }
 0x1c8   : > { %vm736_vm6 = vcmp.lt.s32.totalorder %v720_v55, %v721_v56  ;;  %v841_v59 = vsel %vm820_vm7, %v1288_v51, %v1292_v53  ;;  %v723_v60 = vsel %vm707_vm5, %v1300_v36, 1073741824 }
 0x1c9   : > { %v1307_v54 = vpop.xlane.xlu0 %681  ;;  %v737_v58 = vsel %vm736_vm6, %v720_v55, %v721_v56  ;;  %845 = vst.msk [vmem:[#allocation2] sm:$0xff] %vm832_vm4, %v841_v59 }
 0x1ca   : > { %vm738_vm8 = vcmp.lt.s32.totalorder %v737_v58, %v722_v57  ;;  %vm708_vm9 = vcmp.eq.f32.partialorder %v1242_v1, %v1307_v54  ;;  %vm709_vm10 = vcmp.eq.f32.partialorder %v1244_v2, %v1307_v54  ;;  %vm710_vm11 = vcmp.eq.f32.partialorder %v1248_v5, %v1307_v54 }
 0x1cb   : > { %v739_v61 = vsel %vm738_vm8, %v737_v58, %v722_v57  ;;  %v724_v62 = vsel %vm708_vm9, %v700_v49, 1073741824  ;;  %v725_v63 = vsel %vm709_vm10, %v1286_v50, 1073741824  ;;  %vm711_vm13 = vcmp.eq.f32.partialorder %v1257_v19, %v1307_v54 }
 0x1cc   : > { %vm740_vm12 = vcmp.lt.s32.totalorder %v739_v61, %v723_v60  ;;  %vm756_vm14 = vcmp.lt.s32.totalorder %v724_v62, %v725_v63  ;;  %v726_v2 = vsel %vm710_vm11, %v1290_v52, 1073741824  ;;  %v727_v5 = vsel %vm711_vm13, %v1300_v36, 1073741824 }
 0x1cd   : > { %v1326_v0 = vpop.xlane.xlu1 %686  ;;  %v1328_v1 = vsel %vm740_vm12, %v739_v61, %v723_v60  ;;  %v757_v3 = vsel %vm756_vm14, %v724_v62, %v725_v63  ;;  %vm821_vm12 = vcmp.lt.f32.partialorder %v1307_v54, %v1340_v10  ;;  %v824_v60 = vld [vmem:[#allocation3] sm:$0xff] }
 0x1ce   : > { %v743_v4 = vshra.s32 %v1328_v1, 16  ;;  %vm758_vm15 = vcmp.lt.s32.totalorder %v757_v3, %v726_v2  ;;  %vm712_vm0 = vcmp.eq.f32.partialorder %v1259_v20, %v1326_v0  ;;  %vm713_vm1 = vcmp.eq.f32.partialorder %v1263_v26, %v1326_v0 }
 0x1cf   : > { %v759_v6 = vsel %vm758_vm15, %v757_v3, %v726_v2  ;;  %vm714_vm2 = vcmp.eq.f32.partialorder %v1261_v25, %v1326_v0  ;;  %v728_v7 = vsel %vm712_vm0, %v700_v49, 1073741824  ;;  %v729_v9 = vsel %vm713_vm1, %v1286_v50, 1073741824 }
 0x1d0   : > { %v745_v8 = vcvt.s32.f32 %v743_v4  ;;  %vm760_vm3 = vcmp.lt.s32.totalorder %v759_v6, %v727_v5  ;;  %vm715_vm5 = vcmp.eq.f32.partialorder %v1276_v38, %v1326_v0  ;;  %v730_v13 = vsel %vm714_vm2, %v1290_v52, 1073741824  ;;  %v825_v4 = vld [vmem:[#allocation3 + $0x8] sm:$0xff] }
 0x1d1   : > { %v1342_v11 = vpop.xlane.xlu1 %691  ;;  %v761_v12 = vsel %vm760_vm3, %v759_v6, %v727_v5  ;;  %vm776_vm6 = vcmp.lt.s32.totalorder %v728_v7, %v729_v9  ;;  %v731_v18 = vsel %vm715_vm5, %v1300_v36, 1073741824  ;;  %v842_v26 = vsel %vm821_vm12, %v1307_v54, %v1340_v10 }
 0x1d2   : > { %746 = vmin.xlane.f32.xlu0 %v745_v8  ;;  %v763_v14 = vshra.s32 %v761_v12, 16  ;;  %v777_v15 = vsel %vm776_vm6, %v728_v7, %v729_v9  ;;  %vm716_vm8 = vcmp.eq.f32.partialorder %v1265_v30, %v1342_v11  ;;  %vm717_vm9 = vcmp.eq.f32.partialorder %v1267_v31, %v1342_v11  ;;  %846 = vst.msk [vmem:[#allocation2 + $0x8] sm:$0xff] %vm832_vm4, %v842_v26 }
 0x1d3   : > { %vm778_vm10 = vcmp.lt.s32.totalorder %v777_v15, %v730_v13  ;;  %vm718_vm11 = vcmp.eq.f32.partialorder %v1272_v35, %v1342_v11  ;;  %v732_v16 = vsel %vm716_vm8, %v700_v49, 1073741824  ;;  %v733_v20 = vsel %vm717_vm9, %v1286_v50, 1073741824 }
 0x1d4   : > { %v765_v17 = vcvt.s32.f32 %v763_v14  ;;  %v779_v19 = vsel %vm778_vm10, %v777_v15, %v730_v13  ;;  %vm719_vm14 = vcmp.eq.f32.partialorder %v1281_v42, %v1342_v11  ;;  %vm796_vm15 = vcmp.lt.s32.totalorder %v732_v16, %v733_v20  ;;  %v826_v13 = vld [vmem:[#allocation3 + $0x10] sm:$0xff] }
 0x1d5   : > { %vm780_vm13 = vcmp.lt.s32.totalorder %v779_v19, %v731_v18  ;;  %v734_v24 = vsel %vm718_vm11, %v1290_v52, 1073741824  ;;  %v797_v25 = vsel %vm796_vm15, %v732_v16, %v733_v20  ;;  %vm822_vm1 = vcmp.lt.f32.partialorder %v1326_v0, %v1357_v21 }
 0x1d6   : > { %766 = vmin.xlane.f32.xlu1 %v765_v17  ;;  %v781_v23 = vsel %vm780_vm13, %v779_v19, %v731_v18  ;;  %vm798_vm0 = vcmp.lt.s32.totalorder %v797_v25, %v734_v24  ;;  %v735_v28 = vsel %vm719_vm14, %v1300_v36, 1073741824  ;;  %v843_v30 = vsel %vm822_vm1, %v1326_v0, %v1357_v21 }
 0x1d7   : > { %v783_v27 = vshra.s32 %v781_v23, 16  ;;  %v799_v29 = vsel %vm798_vm0, %v797_v25, %v734_v24  ;;  %vm823_vm2 = vcmp.lt.f32.partialorder %v1342_v11, %v1361_v22  ;;  %847 = vst.msk [vmem:[#allocation2 + $0x10] sm:$0xff] %vm832_vm4, %v843_v30  ;;  %v742_v37 = vand.u32 65535, %v1328_v1 }
 0x1d8   : > { %vm800_vm3 = vcmp.lt.s32.totalorder %v799_v29, %v735_v28  ;;  %v844_v32 = vsel %vm823_vm2, %v1342_v11, %v1361_v22  ;;  %v762_v40 = vand.u32 65535, %v761_v12  ;;  %v782_v44 = vand.u32 65535, %v781_v23 }
 0x1d9   : > { %v785_v31 = vcvt.s32.f32 %v783_v27  ;;  %v801_v33 = vsel %vm800_vm3, %v799_v29, %v735_v28  ;;  %848 = vst.msk [vmem:[#allocation2 + $0x18] sm:$0xff] %vm832_vm4, %v844_v32  ;;  %v744_v39 = vcvt.s32.f32 %v742_v37  ;;  %v1137_v20 = vmov (!%p1003_p7), 0  }
 0x1da   : > { %v803_v34 = vshra.s32 %v801_v33, 16  ;;  %v764_v43 = vcvt.s32.f32 %v762_v40  ;;  %v784_v47 = vcvt.s32.f32 %v782_v44  ;;  %v802_v48 = vand.u32 65535, %v801_v33  ;;  %1110 = vset.pattern.permute.xlu1 (!%p1003_p7), %v1137_v20  ;;  %1109 = vset.pattern.permute.xlu0 (!%p1003_p7), %v1137_v20 }
 0x1db   : > { %786 = vmin.xlane.f32.xlu0 %v785_v31 }
 0x1dc   : > { %v805_v35 = vcvt.s32.f32 %v803_v34  ;;  %v804_v52 = vcvt.s32.f32 %v802_v48 }
 0x1de   : > { %806 = vmin.xlane.f32.xlu1 %v805_v35 }
 0x25f   : > { %v747_v38 = vpop.xlane.xlu0 %746 }
 0x260   : > { %vm748_vm5 = vcmp.eq.f32.partialorder %v745_v8, %v747_v38  ;;  %v753_v55 = vcvt.f32.s32 %v747_v38 }
 0x261   : > { %v749_v41 = vsel %vm748_vm5, %v744_v39, inf }
 0x262   : > { %750 = vmin.xlane.f32.xlu0 %v749_v41  ;;  %v754_v57 = vshll.u32 %v753_v55, 16 }
 0x263   : > { %v767_v42 = vpop.xlane.xlu1 %766 }
 0x264   : > { %vm768_vm6 = vcmp.eq.f32.partialorder %v765_v17, %v767_v42  ;;  %v773_v58 = vcvt.f32.s32 %v767_v42  ;;  %v827_v17 = vld [vmem:[#allocation3 + $0x18] sm:$0xff] }
 0x265   : > { %v769_v45 = vsel %vm768_vm6, %v764_v43, inf }
 0x266   : > { %770 = vmin.xlane.f32.xlu1 %v769_v45  ;;  %v774_v63 = vshll.u32 %v773_v58, 16 }
 0x268   : > { %v787_v46 = vpop.xlane.xlu0 %786 }
 0x269   : > { %vm788_vm8 = vcmp.eq.f32.partialorder %v785_v31, %v787_v46  ;;  %v793_v3 = vcvt.f32.s32 %v787_v46 }
 0x26a   : > { %v789_v49 = vsel %vm788_vm8, %v784_v47, inf }
 0x26b   : > { %790 = vmin.xlane.f32.xlu0 %v789_v49  ;;  %v807_v50 = vpop.xlane.xlu1 %806  ;;  %v794_v8 = vshll.u32 %v793_v3, 16 }
 0x26c   : > { %vm808_vm9 = vcmp.eq.f32.partialorder %v805_v35, %v807_v50  ;;  %v813_v9 = vcvt.f32.s32 %v807_v50 }
 0x26d   : > { %v809_v36 = vsel %vm808_vm9, %v804_v52, inf }
 0x26e   : > { %810 = vmin.xlane.f32.xlu1 %v809_v36  ;;  %v814_v53 = vshll.u32 %v813_v9, 16 }
 0x2ef   : > { %v751_v56 = vpop.xlane.xlu0 %750 }
 0x2f0   : > { %v752_v59 = vcvt.f32.s32 %v751_v56 }
 0x2f2   : > { %v755_v61 = vadd.s32 %v754_v57, %v752_v59 }
 0x2f3   : > { %v771_v62 = vpop.xlane.xlu1 %770 }
 0x2f4   : > { %v828_v1 = vsel %vm820_vm7, %v755_v61, %v824_v60  ;;  %v772_v2 = vcvt.f32.s32 %v771_v62 }
 0x2f5   : > { %833 = vst.msk [vmem:[#allocation3] sm:$0xff] %vm832_vm4, %v828_v1 }
 0x2f6   : > { %v775_v5 = vadd.s32 %v774_v63, %v772_v2 }
 0x2f8   : > { %v829_v6 = vsel %vm821_vm12, %v775_v5, %v825_v4  ;;  %v791_v7 = vpop.xlane.xlu0 %790 }
 0x2f9   : > { %834 = vst.msk [vmem:[#allocation3 + $0x8] sm:$0xff] %vm832_vm4, %v829_v6  ;;  %v792_v12 = vcvt.f32.s32 %v791_v7 }
 0x2fb   : > { %v795_v14 = vadd.s32 %v794_v8, %v792_v12  ;;  %v811_v51 = vpop.xlane.xlu1 %810  ;;  %852 = sbr.rel (%p1003_p7) target bundleno = 907 (0x38b), region = 40 }
 0x2fc   : > { %v812_v16 = vcvt.f32.s32 %v811_v51  ;;  %v853_v19 = vld [vmem:[#allocation3] sm:$0xff] (!%p1003_p7) }
 0x2fd   : > { %v830_v15 = vsel %vm822_vm1, %v795_v14, %v826_v13  ;;  %858 = vperm.xlu0 (!%p1003_p7), %1109, %v853_v19  }
 0x2fe   : > { %835 = vst.msk [vmem:[#allocation3 + $0x10] sm:$0xff] %vm832_vm4, %v830_v15  ;;  %v815_v54 = vadd.s32 %v814_v53, %v812_v16 }
 0x300   : > { %v831_v10 = vsel %vm823_vm2, %v815_v54, %v827_v17  ;;  %v854_v21 = vld [vmem:[#allocation3 + $0x8] sm:$0xff] (!%p1003_p7) }
 0x301   : > { %836 = vst.msk [vmem:[#allocation3 + $0x18] sm:$0xff] %vm832_vm4, %v831_v10  ;;  %861 = vperm.xlu0 (!%p1003_p7), %1109, %v854_v21  }
 0x305   : > { %v855_v18 = vld [vmem:[#allocation3 + $0x10] sm:$0xff] }
 0x306   : > { %864 = vperm.xlu1 %1110, %v855_v18  }
 0x308   : > { %v856_v0 = vld [vmem:[#allocation3 + $0x18] sm:$0xff] }
 0x30a   : > { %867 = vperm.xlu1 %1110, %v856_v0  }
 0x37c   : > { %v859_v24 = vpop.permute.xlu0 %858 }
 0x37d   : > { %869 = vst [vmem:[%s1429_s3] sm:$0xff] %v859_v24 }
 0x380   : > { %v862_v22 = vpop.permute.xlu0 %861 }
 0x381   : > { %870 = vst [vmem:[%s1429_s3 + $0x8] sm:$0xff] %v862_v22 }
 0x385   : > { %v865_v23 = vpop.permute.xlu1 %864 }
 0x386   : > { %871 = vst [vmem:[%s1429_s3 + $0x10] sm:$0xff] %v865_v23 }
 0x389   : > { %v868_v11 = vpop.permute.xlu1 %867 }
 0x38a   : > { %872 = vst [vmem:[%s1429_s3 + $0x18] sm:$0xff] %v868_v11 }
 0x38b PF: > { %s13_s14 = sadd.s32 1, %s1133_s14   ;;  %s1430_s12 = smov %s1129_s13 }
 0x38c   : > { %p10_p8 = scmp.ge.s32.totalorder %s13_s14, 4   ;;  %s1431_s13 = smov %s1433_s15 }
 0x38e   :  { %12 = sbr.rel (!%p10_p8) target bundleno = 2 (0x2), region = 76 }

// kernel: forward.67
= control target key start
LH: loop header
LB: loop body
LE: loop exit
PB: predicated region body
PF: predicated region fallthrough
CT: control target
= control target key end

     0   :  { %s974_s9 = smov 0   ;;  %s1084_s0 = inlined_call_operand.vmem [shape: bf16[2,16,128], index: 0, kind: input, shape index: {}]   ;;  %s1085_s1 = inlined_call_operand.vmem [shape: bf16[2,16,256], index: 1, kind: input, shape index: {}]   ;;  %s1086_s2 = inlined_call_operand.vmem [shape: bf16[2,16,128], index: 2, kind: output, shape index: {}]  }
   0x1 LB: > { %s783_s10 = sadd.s32 4294967295, %s952_s9   ;;  %p787_p0 = scmp.ge.s32.totalorder %s952_s9, 1  ;;  %s952_s9 = sphi %s974_s9, %s12_s9  }
   0x2   : > { %p122_p1 = scmp.lt.s32.totalorder %s952_s9, 3 }
   0x4   : > { %p123_p2 = pnand %p787_p0, %p122_p1 }
   0x5   : > { %p149_p3 = scmp.lt.s32.totalorder (!%p123_p2), %s783_s10, 1  ;;  %v954_v0 = vmov (!%p123_p2), 0.0   ;;  %vm955_vm0 = vmmov (!%p123_p2), 0   ;;  %vm181_vm1 = vcmask (!%p123_p2), 261120   ;;  %vm231_vm2 = vcmask (!%p123_p2), 130048   ;;  %s956_s19 = smov (!%p123_p2), 96  }
   0x6   : > { %126 = sbr.rel (%p123_p2) target bundleno = 1499 (0x5db), region = 28  ;;  %835 = vmatprep.subr.bf16.mxu0 (!%p123_p2), %v954_v0  ;;  %837 = vmatprep.mubr.msk.bf16.mxu0 (!%p123_p2), %vm955_vm0, %v954_v0  ;;  %s957_s20 = smov (!%p123_p2), 32   ;;  %vm700_vm3 = vcmask (!%p123_p2), 523264   ;;  %vm703_vm4 = vcmask (!%p123_p2), 785408  }
   0x7   : > { %841 = vmatprep.subr.bf16.mxu1 (!%p123_p2), %v954_v0  ;;  %843 = vmatprep.mubr.msk.bf16.mxu1 (!%p123_p2), %vm955_vm0, %v954_v0  ;;  %s958_s21 = smov (!%p123_p2), 64  }
   0xd   : > { %s1088_s10 = smov (!%p149_p3, %s783_s10), 1 }
   0xe   : > { %s810_s11 = sshll.u32 %s1088_s10, 4  ;;  %s809_s12 = sshll.u32 %s1088_s10, 3 }
   0xf   : > { %s995_s15 = scalar_lea.vmem %s1085_s1, %s810_s11  ;;  %s153_s18 = scalar_lea.vmem %s1084_s0, %s809_s12 }
  0x10   : > { %v911_v1 = vld [vmem:[%s995_s15] ss:$8 sps:$4 sm:$0xff]   ;;  %v1015_v22 = vld [vmem:[%s995_s15 + $0x4] ss:$8 sps:$4 sm:$0xff]   ;;  %s163_s24 = scalar_lea.vmem %s1086_s2, %s809_s12 }
  0x11   : > { %v186_v2 = vsel %vm181_vm1, %v911_v1, 0  ;;  %v912_v3 = vld [vmem:[%s153_s18] sm:$0xff]   ;;  %842 = vmatpush3.bf16.msra.mxu1 %v1015_v22 }
  0x12   : > { %836 = vmatpush3.bf16.xpose.msra.mxu0 %v186_v2  ;;  %847 = vmatprep.subr.bf16.mxu1 %v954_v0 }
  0x13   : > { %853 = vmatprep.subr.bf16.mxu0 %v954_v0 }
  0x19   : > { %838 = vmatmul.mubr.msk.bf16.vlgmr.msra.gmra.mrb[0].mxu0 %vm181_vm1, %v912_v3 }
  0x1a   : > { %855 = vmatprep.mubr.msk.bf16.mxu0 %vm955_vm0, %v954_v0 }
  0xec   : > { %v222_v4 = vpop.f32.mrb[0].mxu0 }
  0xed   : > { %v229_v5 = vmul.f32 0.17677669, %v222_v4  ;;  %v839_v6 = vpop.f32.mrb[1].mxu0 }
  0xee   : > { %v225_v7 = vpop.f32.mrb[2].mxu0 }
  0xef   : > { %v230_v8 = vmul.f32 0.17677669, %v225_v7  ;;  %v840_v9 = vpop.f32.mrb[3].mxu0  ;;  %v232_v10 = vsel %vm231_vm2, %v229_v5, -inf }
  0xf0   : > { %233 = vmax.xlane.f32.xlu0 %v232_v10 }
  0xf1   : > { %v235_v11 = vsel %vm231_vm2, %v230_v8, -inf }
  0xf4   : > { %236 = vmax.xlane.f32.xlu0 %v235_v11 }
 0x10a   : > { %307 = vrot.lane.b32.xlu0 %v911_v1, %s956_s19 }
 0x10e   : > { %553 = vrot.lane.b32.xlu0 %v911_v1, %s957_s20 }
 0x17d   : > { %v234_v12 = vpop.xlane.xlu0 %233 }
 0x17e   : > { %v238_v13 = vsub.f32 %v229_v5, %v234_v12 }
 0x180   : > { %v240_v14 = vmul.f32 1.442695, %v238_v13 }
 0x181   : > { %v237_v15 = vpop.xlane.xlu0 %236 }
 0x182   : > { %914 = vpow2.f32 %v240_v14  ;;  %v239_v16 = vsub.f32 %v230_v8, %v237_v15 }
 0x184   : > { %v242_v17 = vmul.f32 1.442695, %v239_v16 }
 0x185   : > { %v308_v27 = vpop.permute.xlu0 %307 }
 0x186   : > { %916 = vpow2.f32 %v242_v17  ;;  %v313_v31 = vsel %vm181_vm1, %v308_v27, 0 }
 0x189   : > { %v554_v35 = vpop.permute.xlu0 %553 }
 0x18a   : > { %v559_v37 = vsel %vm181_vm1, %v554_v35, 0 }
 0x18c   : > { %v915_v18 = vpop.eup %914 }
 0x18d   : > { %v244_v19 = vsel %vm231_vm2, %v915_v18, 0.0 }
 0x18e   : > { %245 = vadd.xlane.f32.xlu1 %v244_v19 }
 0x190   : > { %v917_v20 = vpop.eup %916 }
 0x191   : > { %v247_v21 = vsel %vm231_vm2, %v917_v20, 0.0 }
 0x192   : > { %248 = vadd.xlane.f32.xlu1 %v247_v21 }
 0x1a3   : > { %305 = vrot.lane.b32.xlu1 %v912_v3, %s956_s19 }
 0x1a7   : > { %430 = vrot.lane.b32.xlu1 %v911_v1, %s958_s21 }
 0x1ab   : > { %428 = vrot.lane.b32.xlu1 %v912_v3, %s958_s21 }
 0x1af   : > { %551 = vrot.lane.b32.xlu1 %v912_v3, %s957_s20 }
 0x21b   : > { %v246_v23 = vpop.xlane.xlu1 %245 }
 0x21c   : > { %918 = vrcp.f32 %v246_v23 }
 0x21f   : > { %v249_v24 = vpop.xlane.xlu1 %248 }
 0x220   : > { %920 = vrcp.f32 %v249_v24 }
 0x223   : > { %v306_v30 = vpop.permute.xlu1 %305 }
 0x226   : > { %v919_v25 = vpop.eup %918 }
 0x227   : > { %v252_v28 = vmul.f32 %v919_v25, %v915_v18  ;;  %v431_v33 = vpop.permute.xlu1 %430 }
 0x228   : > { %v436_v34 = vsel %vm181_vm1, %v431_v33, 0 }
 0x22a   : > { %v921_v26 = vpop.eup %920 }
 0x22b   : > { %v253_v29 = vmul.f32 %v921_v26, %v917_v20  ;;  %v429_v36 = vpop.permute.xlu1 %428 }
 0x22d   : > { %v254_v32 = vpack.c.bf16 %v253_v29, %v252_v28 }
 0x22f   : > { %844 = vmatmul.mubr.msk.bf16.vlgmr.msra.gmra.mrb[0].mxu1 %vm231_vm2, %v254_v32  ;;  %v552_v38 = vpop.permute.xlu1 %551 }
 0x230   : > { %848 = vmatpush3.bf16.xpose.msra.mxu1 %v313_v31  ;;  %849 = vmatprep.mubr.msk.bf16.mxu1 %vm955_vm0, %v954_v0 }
 0x231   : > { %859 = vmatprep.subr.bf16.mxu1 %v954_v0 }
 0x237   : > { %850 = vmatmul.mubr.msk.bf16.vlgmr.msra.gmra.mrb[4].mxu1 %vm181_vm1, %v306_v30 }
 0x238   : > { %860 = vmatpush3.bf16.xpose.msra.mxu1 %v436_v34  ;;  %861 = vmatprep.mubr.msk.bf16.mxu1 %vm955_vm0, %v954_v0 }
 0x239   : > { %871 = vmatprep.subr.bf16.mxu1 %v954_v0 }
 0x23f   : > { %862 = vmatmul.mubr.msk.bf16.vlgmr.msra.gmra.mrb[8].mxu1 %vm181_vm1, %v429_v36 }
 0x240   : > { %872 = vmatpush3.bf16.xpose.msra.mxu1 %v559_v37  ;;  %873 = vmatprep.mubr.msk.bf16.mxu1 %vm955_vm0, %v954_v0 }
 0x247   : > { %874 = vmatmul.mubr.msk.bf16.vlgmr.msra.gmra.mrb[12].mxu1 %vm181_vm1, %v552_v38 }
 0x302   : > { %v1038_v39 = vpop.f32.mrb[0].mxu1 }
 0x303   : > { %v845_v40 = vpop.f32.mrb[1].mxu1 }
 0x304   : > { %v1040_v41 = vpop.f32.mrb[2].mxu1 }
 0x305   : > { %v846_v42 = vpop.f32.mrb[3].mxu1 }
 0x30a   : > { %v349_v43 = vpop.f32.mrb[4].mxu1 }
 0x30b   : > { %v356_v44 = vmul.f32 0.17677669, %v349_v43  ;;  %v851_v45 = vpop.f32.mrb[5].mxu1 }
 0x30c   : > { %v352_v46 = vpop.f32.mrb[6].mxu1 }
 0x30d   : > { %v357_v47 = vmul.f32 0.17677669, %v352_v46  ;;  %v852_v48 = vpop.f32.mrb[7].mxu1  ;;  %v358_v49 = vsel %vm231_vm2, %v356_v44, -inf }
 0x30e   : > { %359 = vmax.xlane.f32.xlu0 %v358_v49 }
 0x30f   : > { %v361_v50 = vsel %vm231_vm2, %v357_v47, -inf }
 0x310   : > { %362 = vmax.xlane.f32.xlu1 %v361_v50 }
 0x312   : > { %v472_v51 = vpop.f32.mrb[8].mxu1 }
 0x313   : > { %v479_v52 = vmul.f32 0.17677669, %v472_v51  ;;  %v863_v53 = vpop.f32.mrb[9].mxu1 }
 0x314   : > { %v475_v54 = vpop.f32.mrb[10].mxu1 }
 0x315   : > { %v480_v55 = vmul.f32 0.17677669, %v475_v54  ;;  %v864_v56 = vpop.f32.mrb[11].mxu1  ;;  %v481_v57 = vsel %vm231_vm2, %v479_v52, -inf }
 0x316   : > { %482 = vmax.xlane.f32.xlu0 %v481_v57 }
 0x317   : > { %v484_v58 = vsel %vm231_vm2, %v480_v55, -inf }
 0x31a   : > { %485 = vmax.xlane.f32.xlu0 %v484_v58  ;;  %v595_v59 = vpop.f32.mrb[12].mxu1 }
 0x31b   : > { %v602_v60 = vmul.f32 0.17677669, %v595_v59  ;;  %v875_v61 = vpop.f32.mrb[13].mxu1 }
 0x31c   : > { %v598_v62 = vpop.f32.mrb[14].mxu1 }
 0x31d   : > { %v603_v63 = vmul.f32 0.17677669, %v598_v62  ;;  %v604_v1 = vsel %vm231_vm2, %v602_v60, -inf  ;;  %v876_v2 = vpop.f32.mrb[15].mxu1 }
 0x31e   : > { %605 = vmax.xlane.f32.xlu0 %v604_v1 }
 0x31f   : > { %v607_v3 = vsel %vm231_vm2, %v603_v63, -inf }
 0x320   : > { %608 = vmax.xlane.f32.xlu1 %v607_v3 }
 0x39b   : > { %v360_v4 = vpop.xlane.xlu0 %359 }
 0x39c   : > { %v364_v5 = vsub.f32 %v356_v44, %v360_v4 }
 0x39d   : > { %v363_v6 = vpop.xlane.xlu1 %362 }
 0x39e   : > { %v366_v7 = vmul.f32 1.442695, %v364_v5  ;;  %v365_v8 = vsub.f32 %v357_v47, %v363_v6 }
 0x3a0   : > { %922 = vpow2.f32 %v366_v7  ;;  %v368_v9 = vmul.f32 1.442695, %v365_v8 }
 0x3a2   : > { %924 = vpow2.f32 %v368_v9 }
 0x3a3   : > { %v483_v10 = vpop.xlane.xlu0 %482 }
 0x3a4   : > { %v487_v11 = vsub.f32 %v479_v52, %v483_v10 }
 0x3a6   : > { %v489_v12 = vmul.f32 1.442695, %v487_v11 }
 0x3a7   : > { %v486_v13 = vpop.xlane.xlu0 %485 }
 0x3a8   : > { %926 = vpow2.f32 %v489_v12  ;;  %v488_v14 = vsub.f32 %v480_v55, %v486_v13 }
 0x3aa   : > { %v923_v15 = vpop.eup %922  ;;  %v491_v16 = vmul.f32 1.442695, %v488_v14 }
 0x3ab   : > { %v606_v17 = vpop.xlane.xlu0 %605  ;;  %v370_v18 = vsel %vm231_vm2, %v923_v15, 0.0 }
 0x3ac   : > { %v925_v19 = vpop.eup %924  ;;  %928 = vpow2.f32 %v491_v16  ;;  %v610_v20 = vsub.f32 %v602_v60, %v606_v17  ;;  %371 = vadd.xlane.f32.xlu0 %v370_v18 }
 0x3ad   : > { %v373_v21 = vsel %vm231_vm2, %v925_v19, 0.0  ;;  %v609_v30 = vpop.xlane.xlu1 %608 }
 0x3ae   : > { %v612_v23 = vmul.f32 1.442695, %v610_v20  ;;  %374 = vadd.xlane.f32.xlu1 %v373_v21  ;;  %v611_v31 = vsub.f32 %v603_v63, %v609_v30 }
 0x3b0   : > { %930 = vpow2.f32 %v612_v23  ;;  %v614_v32 = vmul.f32 1.442695, %v611_v31 }
 0x3b2   : > { %v927_v24 = vpop.eup %926  ;;  %932 = vpow2.f32 %v614_v32 }
 0x3b3   : > { %v493_v25 = vsel %vm231_vm2, %v927_v24, 0.0 }
 0x3b4   : > { %494 = vadd.xlane.f32.xlu0 %v493_v25 }
 0x3b6   : > { %v929_v26 = vpop.eup %928 }
 0x3b7   : > { %v496_v27 = vsel %vm231_vm2, %v929_v26, 0.0 }
 0x3b8   : > { %497 = vadd.xlane.f32.xlu1 %v496_v27 }
 0x3ba   : > { %v931_v28 = vpop.eup %930 }
 0x3bb   : > { %v616_v29 = vsel %vm231_vm2, %v931_v28, 0.0 }
 0x3bc   : > { %617 = vadd.xlane.f32.xlu0 %v616_v29  ;;  %v933_v33 = vpop.eup %932 }
 0x3bd   : > { %v619_v34 = vsel %vm231_vm2, %v933_v33, 0.0 }
 0x3c9   : > { %504 = vrot.lane.b32.xlu1 %v1015_v22, %s958_s21 }
 0x3d2   : > { %381 = vrot.lane.b32.xlu0 %v1015_v22, %s956_s19 }
 0x3ed   : > { %620 = vadd.xlane.f32.xlu1 %v619_v34 }
 0x3fe   : > { %627 = vrot.lane.b32.xlu1 %v1015_v22, %s957_s20 }
 0x439   : > { %v372_v36 = vpop.xlane.xlu0 %371 }
 0x43b   : > { %v375_v35 = vpop.xlane.xlu1 %374 }
 0x43c   : > { %934 = vrcp.f32 %v375_v35 }
 0x43d   : > { %936 = vrcp.f32 %v372_v36 }
 0x441   : > { %v495_v37 = vpop.xlane.xlu0 %494 }
 0x445   : > { %v498_v38 = vpop.xlane.xlu1 %497 }
 0x446   : > { %938 = vrcp.f32 %v498_v38  ;;  %v935_v40 = vpop.eup %934 }
 0x447   : > { %940 = vrcp.f32 %v495_v37  ;;  %v937_v43 = vpop.eup %936  ;;  %v379_v44 = vmul.f32 %v935_v40, %v925_v19 }
 0x448   : > { %v378_v45 = vmul.f32 %v937_v43, %v923_v15 }
 0x449   : > { %v618_v42 = vpop.xlane.xlu0 %617  ;;  %v505_v22 = vpop.permute.xlu1 %504 }
 0x44a   : > { %v380_v47 = vpack.c.bf16 %v379_v44, %v378_v45  ;;  %942 = vrcp.f32 %v618_v42 }
 0x44d   : > { %v382_v46 = vpop.permute.xlu0 %381 }
 0x44e   : > { %854 = vmatpush3.bf16.msra.mxu0 %v382_v46 }
 0x44f   : > { %865 = vmatprep.subr.bf16.mxu0 %v954_v0 }
 0x450   : > { %v939_v48 = vpop.eup %938 }
 0x451   : > { %856 = vmatmul.mubr.msk.bf16.vlgmr.msra.gmra.mrb[4].mxu0 %vm231_vm2, %v380_v47  ;;  %v941_v49 = vpop.eup %940  ;;  %v502_v50 = vmul.f32 %v939_v48, %v929_v26 }
 0x452   : > { %866 = vmatpush3.bf16.msra.mxu0 %v505_v22  ;;  %867 = vmatprep.mubr.msk.bf16.mxu0 %vm955_vm0, %v954_v0  ;;  %v501_v51 = vmul.f32 %v941_v49, %v927_v24 }
 0x453   : > { %877 = vmatprep.subr.bf16.mxu0 %v954_v0 }
 0x454   : > { %v503_v52 = vpack.c.bf16 %v502_v50, %v501_v51  ;;  %v943_v55 = vpop.eup %942 }
 0x455   : > { %v624_v57 = vmul.f32 %v943_v55, %v931_v28 }
 0x459   : > { %868 = vmatmul.mubr.msk.bf16.vlgmr.msra.gmra.mrb[8].mxu0 %vm231_vm2, %v503_v52 }
 0x45a   : > { %879 = vmatprep.mubr.msk.bf16.mxu0 %vm955_vm0, %v954_v0 }
 0x47a   : > { %v621_v53 = vpop.xlane.xlu1 %620 }
 0x47b   : > { %944 = vrcp.f32 %v621_v53 }
 0x47e   : > { %v628_v54 = vpop.permute.xlu1 %627 }
 0x47f   : > { %878 = vmatpush3.bf16.msra.mxu0 %v628_v54 }
 0x485   : > { %v945_v56 = vpop.eup %944 }
 0x486   : > { %v625_v58 = vmul.f32 %v945_v56, %v933_v33 }
 0x488   : > { %v626_v59 = vpack.c.bf16 %v625_v58, %v624_v57 }
 0x48a   : > { %880 = vmatmul.mubr.msk.bf16.vlgmr.msra.gmra.mrb[12].mxu0 %vm231_vm2, %v626_v59 }
 0x524   : > { %v421_v60 = vpop.f32.mrb[4].mxu0 }
 0x525   : > { %v857_v61 = vpop.f32.mrb[5].mxu0 }
 0x526   : > { %v424_v62 = vpop.f32.mrb[6].mxu0 }
 0x527   : > { %v896_v63 = vpack.i.bf16 %v424_v62, %v421_v60  ;;  %v858_v1 = vpop.f32.mrb[7].mxu0 }
 0x529   : > { %897 = vrot.lane.b32.xlu1 %v896_v63, %s957_s20 }
 0x52c   : > { %v544_v0 = vpop.f32.mrb[8].mxu0 }
 0x52d   : > { %v869_v2 = vpop.f32.mrb[9].mxu0 }
 0x52e   : > { %v547_v3 = vpop.f32.mrb[10].mxu0 }
 0x52f   : > { %v901_v4 = vpack.i.bf16 %v547_v3, %v544_v0  ;;  %v870_v5 = vpop.f32.mrb[11].mxu0 }
 0x531   : > { %902 = vrot.lane.b32.xlu0 %v901_v4, %s958_s21 }
 0x55d   : > { %v667_v6 = vpop.f32.mrb[12].mxu0 }
 0x55e   : > { %v881_v7 = vpop.f32.mrb[13].mxu0 }
 0x55f   : > { %v670_v8 = vpop.f32.mrb[14].mxu0 }
 0x560   : > { %v906_v9 = vpack.i.bf16 %v670_v8, %v667_v6  ;;  %v882_v10 = vpop.f32.mrb[15].mxu0 }
 0x562   : > { %907 = vrot.lane.b32.xlu1 %v906_v9, %s956_s19 }
 0x59b   : > { %v898_v11 = vpop.permute.xlu1 %897 }
 0x59c   : > { %v900_v13 = vunpack.i.h.bf16 %v898_v11  ;;  %v899_v14 = vunpack.i.l.bf16 %v898_v11 }
 0x59e   : > { %v699_v18 = vsel %vm181_vm1, %v1040_v41, %v900_v13  ;;  %v698_v19 = vsel %vm181_vm1, %v1038_v39, %v899_v14 }
 0x5a3   : > { %v903_v12 = vpop.permute.xlu0 %902 }
 0x5a4   : > { %v905_v15 = vunpack.i.h.bf16 %v903_v12  ;;  %v904_v16 = vunpack.i.l.bf16 %v903_v12 }
 0x5a6   : > { %v702_v23 = vsel %vm700_vm3, %v699_v18, %v905_v15  ;;  %v701_v24 = vsel %vm700_vm3, %v698_v19, %v904_v16 }
 0x5d4   : > { %v908_v17 = vpop.permute.xlu1 %907 }
 0x5d5   : > { %v910_v20 = vunpack.i.h.bf16 %v908_v17  ;;  %v909_v21 = vunpack.i.l.bf16 %v908_v17 }
 0x5d7   : > { %v705_v25 = vsel %vm703_vm4, %v702_v23, %v910_v20  ;;  %v704_v26 = vsel %vm703_vm4, %v701_v24, %v909_v21 }
 0x5d8   : > { %v817_v27 = vpack.c.bf16 %v705_v25, %v704_v26 }
 0x5da   : > { %818 = vst [vmem:[%s163_s24] sm:$0xff] %v817_v27  }
 0x5db PF: > { %s12_s9 = sadd.s32 1, %s952_s9  }
 0x5dc   : > { %p9_p4 = scmp.ge.s32.totalorder %s12_s9, 4  }
 0x5de   :  { %11 = sbr.rel (!%p9_p4) target bundleno = 1 (0x1), region = 61 }

// kernel: forward.62
= control target key start
LH: loop header
LB: loop body
LE: loop exit
PB: predicated region body
PF: predicated region fallthrough
CT: control target
= control target key end

     0   :  { %s921_s6 = smov 0   ;;  %s1060_s0 = inlined_call_operand.vmem [shape: bf16[2,16,384], index: 0, kind: input, shape index: {}]   ;;  %s1061_s1 = inlined_call_operand.vmem [shape: bf16[2,16,128], index: 1, kind: output, shape index: {}]  }
   0x1 LB: > { %s739_s7 = sadd.s32 4294967295, %s904_s6   ;;  %p743_p0 = scmp.ge.s32.totalorder %s904_s6, 1  ;;  %s904_s6 = sphi %s921_s6, %s11_s6  }
   0x2   : > { %p87_p1 = scmp.lt.s32.totalorder %s904_s6, 3 }
   0x4   : > { %p88_p2 = pnand %p743_p0, %p87_p1 }
   0x5   : > { %p107_p3 = scmp.lt.s32.totalorder (!%p88_p2), %s739_s7, 1  ;;  %v906_v0 = vmov (!%p88_p2), 0.0   ;;  %vm907_vm0 = vmmov (!%p88_p2), 0   ;;  %vm134_vm1 = vcmask (!%p88_p2), 261120   ;;  %v184_v4 = vlaneseq (!%p88_p2)  ;;  %s908_s12 = smov (!%p88_p2), 96  }
   0x6   : > { %91 = sbr.rel (%p88_p2) target bundleno = 1502 (0x5de), region = 24  ;;  %786 = vmatprep.subr.bf16.mxu0 (!%p88_p2), %v906_v0  ;;  %788 = vmatprep.mubr.msk.bf16.mxu0 (!%p88_p2), %vm907_vm0, %v906_v0  ;;  %vm193_vm3 = vcmask (!%p88_p2), 130048   ;;  %s909_s13 = smov (!%p88_p2), 32   ;;  %vm668_vm5 = vcmask (!%p88_p2), 523264   ;;  %vm671_vm6 = vcmask (!%p88_p2), 785408  }
   0x7   : > { %792 = vmatprep.subr.bf16.mxu1 (!%p88_p2), %v906_v0  ;;  %794 = vmatprep.mubr.msk.bf16.mxu1 (!%p88_p2), %vm907_vm0, %v906_v0  ;;  %v950_v5 = vshrl.u32 (!%p88_p2), %v184_v4, 7  ;;  %v952_v6 = vand.u32 (!%p88_p2), 127, %v184_v4  ;;  %s910_s14 = smov (!%p88_p2), 64  }
   0x9   : > { %v955_v7 = vadd.s32 (!%p88_p2), 8, %v950_v5  ;;  %vm189_vm2 = vcmp.ge.s32.totalorder (!%p88_p2), %v950_v5, %v952_v6 }
   0xb   : > { %vm190_vm4 = vcmp.ge.s32.totalorder (!%p88_p2), %v955_v7, %v952_v6 }
   0xd   : > { %s1063_s7 = smov (!%p107_p3, %s739_s7), 1 }
   0xe   : > { %s834_s8 = smul.u32 24, %s1063_s7  ;;  %s762_s15 = sshll.u32 %s1063_s7, 3 }
   0xf   : > { %s116_s18 = scalar_lea.vmem %s1061_s1, %s762_s15 }
  0x10   : > { %s941_s11 = scalar_lea.vmem %s1060_s0, %s834_s8 }
  0x11   : > { %v863_v1 = vld [vmem:[%s941_s11 + $0x4] ss:$12 sps:$4 sm:$0xff]   ;;  %v864_v3 = vld [vmem:[%s941_s11] ss:$12 sps:$4 sm:$0xff]   ;;  %v974_v28 = vld [vmem:[%s941_s11 + $0x8] ss:$12 sps:$4 sm:$0xff]  }
  0x12   : > { %v139_v2 = vsel %vm134_vm1, %v863_v1, 0  ;;  %793 = vmatpush3.bf16.msra.mxu1 %v974_v28 }
  0x13   : > { %787 = vmatpush3.bf16.xpose.msra.mxu0 %v139_v2  ;;  %798 = vmatprep.subr.bf16.mxu1 %v906_v0 }
  0x14   : > { %804 = vmatprep.subr.bf16.mxu0 %v906_v0 }
  0x1a   : > { %789 = vmatmul.mubr.msk.bf16.vlgmr.msra.gmra.mrb[0].mxu0 %vm134_vm1, %v864_v3 }
  0x1b   : > { %806 = vmatprep.mubr.msk.bf16.mxu0 %vm907_vm0, %v906_v0 }
  0xed   : > { %v175_v8 = vpop.f32.mrb[0].mxu0 }
  0xee   : > { %v182_v9 = vmul.f32 0.17677669, %v175_v8  ;;  %v790_v10 = vpop.f32.mrb[1].mxu0 }
  0xef   : > { %v178_v11 = vpop.f32.mrb[2].mxu0 }
  0xf0   : > { %v183_v12 = vmul.f32 0.17677669, %v178_v11  ;;  %v791_v13 = vpop.f32.mrb[3].mxu0  ;;  %v191_v14 = vsel %vm189_vm2, %v182_v9, -1e+30 }
  0xf1   : > { %v194_v15 = vsel %vm193_vm3, %v191_v14, -inf }
  0xf2   : > { %195 = vmax.xlane.f32.xlu0 %v194_v15  ;;  %v192_v16 = vsel %vm190_vm4, %v183_v12, -1e+30 }
  0xf3   : > { %v197_v17 = vsel %vm193_vm3, %v192_v16, -inf }
  0xf6   : > { %198 = vmax.xlane.f32.xlu0 %v197_v17 }
 0x10c   : > { %269 = vrot.lane.b32.xlu0 %v863_v1, %s908_s12 }
 0x110   : > { %519 = vrot.lane.b32.xlu0 %v863_v1, %s909_s13 }
 0x17f   : > { %v196_v18 = vpop.xlane.xlu0 %195 }
 0x180   : > { %v200_v19 = vsub.f32 %v191_v14, %v196_v18 }
 0x182   : > { %v202_v20 = vmul.f32 1.442695, %v200_v19 }
 0x183   : > { %v199_v21 = vpop.xlane.xlu0 %198 }
 0x184   : > { %866 = vpow2.f32 %v202_v20  ;;  %v201_v22 = vsub.f32 %v192_v16, %v199_v21 }
 0x186   : > { %v204_v23 = vmul.f32 1.442695, %v201_v22 }
 0x187   : > { %v270_v33 = vpop.permute.xlu0 %269 }
 0x188   : > { %868 = vpow2.f32 %v204_v23  ;;  %v275_v37 = vsel %vm134_vm1, %v270_v33, 0 }
 0x18b   : > { %v520_v41 = vpop.permute.xlu0 %519 }
 0x18c   : > { %v525_v43 = vsel %vm134_vm1, %v520_v41, 0 }
 0x18e   : > { %v867_v24 = vpop.eup %866 }
 0x18f   : > { %v206_v25 = vsel %vm193_vm3, %v867_v24, 0.0 }
 0x190   : > { %207 = vadd.xlane.f32.xlu1 %v206_v25 }
 0x192   : > { %v869_v26 = vpop.eup %868 }
 0x193   : > { %v209_v27 = vsel %vm193_vm3, %v869_v26, 0.0 }
 0x194   : > { %210 = vadd.xlane.f32.xlu1 %v209_v27 }
 0x1a5   : > { %267 = vrot.lane.b32.xlu1 %v864_v3, %s908_s12 }
 0x1a9   : > { %394 = vrot.lane.b32.xlu1 %v863_v1, %s910_s14 }
 0x1ad   : > { %392 = vrot.lane.b32.xlu1 %v864_v3, %s910_s14 }
 0x1b1   : > { %517 = vrot.lane.b32.xlu1 %v864_v3, %s909_s13 }
 0x21d   : > { %v208_v29 = vpop.xlane.xlu1 %207 }
 0x21e   : > { %870 = vrcp.f32 %v208_v29 }
 0x221   : > { %v211_v30 = vpop.xlane.xlu1 %210 }
 0x222   : > { %872 = vrcp.f32 %v211_v30 }
 0x225   : > { %v268_v36 = vpop.permute.xlu1 %267 }
 0x228   : > { %v871_v31 = vpop.eup %870 }
 0x229   : > { %v214_v34 = vmul.f32 %v871_v31, %v867_v24  ;;  %v395_v39 = vpop.permute.xlu1 %394 }
 0x22a   : > { %v400_v40 = vsel %vm134_vm1, %v395_v39, 0 }
 0x22c   : > { %v873_v32 = vpop.eup %872 }
 0x22d   : > { %v215_v35 = vmul.f32 %v873_v32, %v869_v26  ;;  %v393_v42 = vpop.permute.xlu1 %392 }
 0x22f   : > { %v216_v38 = vpack.c.bf16 %v215_v35, %v214_v34 }
 0x231   : > { %795 = vmatmul.mubr.msk.bf16.vlgmr.msra.gmra.mrb[0].mxu1 %vm193_vm3, %v216_v38  ;;  %v518_v44 = vpop.permute.xlu1 %517 }
 0x232   : > { %799 = vmatpush3.bf16.xpose.msra.mxu1 %v275_v37  ;;  %800 = vmatprep.mubr.msk.bf16.mxu1 %vm907_vm0, %v906_v0 }
 0x233   : > { %810 = vmatprep.subr.bf16.mxu1 %v906_v0 }
 0x239   : > { %801 = vmatmul.mubr.msk.bf16.vlgmr.msra.gmra.mrb[4].mxu1 %vm134_vm1, %v268_v36 }
 0x23a   : > { %811 = vmatpush3.bf16.xpose.msra.mxu1 %v400_v40  ;;  %812 = vmatprep.mubr.msk.bf16.mxu1 %vm907_vm0, %v906_v0 }
 0x23b   : > { %822 = vmatprep.subr.bf16.mxu1 %v906_v0 }
 0x241   : > { %813 = vmatmul.mubr.msk.bf16.vlgmr.msra.gmra.mrb[8].mxu1 %vm134_vm1, %v393_v42 }
 0x242   : > { %823 = vmatpush3.bf16.xpose.msra.mxu1 %v525_v43  ;;  %824 = vmatprep.mubr.msk.bf16.mxu1 %vm907_vm0, %v906_v0 }
 0x249   : > { %825 = vmatmul.mubr.msk.bf16.vlgmr.msra.gmra.mrb[12].mxu1 %vm134_vm1, %v518_v44 }
 0x304   : > { %v997_v45 = vpop.f32.mrb[0].mxu1 }
 0x305   : > { %v796_v46 = vpop.f32.mrb[1].mxu1 }
 0x306   : > { %v999_v47 = vpop.f32.mrb[2].mxu1 }
 0x307   : > { %v797_v48 = vpop.f32.mrb[3].mxu1 }
 0x30c   : > { %v311_v49 = vpop.f32.mrb[4].mxu1 }
 0x30d   : > { %v318_v50 = vmul.f32 0.17677669, %v311_v49  ;;  %v802_v51 = vpop.f32.mrb[5].mxu1 }
 0x30e   : > { %v314_v52 = vpop.f32.mrb[6].mxu1 }
 0x30f   : > { %v319_v53 = vmul.f32 0.17677669, %v314_v52  ;;  %v803_v54 = vpop.f32.mrb[7].mxu1  ;;  %v320_v55 = vsel %vm189_vm2, %v318_v50, -1e+30 }
 0x310   : > { %v322_v56 = vsel %vm193_vm3, %v320_v55, -inf }
 0x311   : > { %323 = vmax.xlane.f32.xlu0 %v322_v56  ;;  %v321_v57 = vsel %vm190_vm4, %v319_v53, -1e+30 }
 0x312   : > { %v325_v58 = vsel %vm193_vm3, %v321_v57, -inf }
 0x313   : > { %326 = vmax.xlane.f32.xlu1 %v325_v58 }
 0x314   : > { %v436_v59 = vpop.f32.mrb[8].mxu1 }
 0x315   : > { %v443_v60 = vmul.f32 0.17677669, %v436_v59  ;;  %v814_v61 = vpop.f32.mrb[9].mxu1 }
 0x316   : > { %v439_v62 = vpop.f32.mrb[10].mxu1 }
 0x317   : > { %v444_v63 = vmul.f32 0.17677669, %v439_v62  ;;  %v815_v1 = vpop.f32.mrb[11].mxu1  ;;  %v445_v2 = vsel %vm189_vm2, %v443_v60, -1e+30 }
 0x318   : > { %v447_v3 = vsel %vm193_vm3, %v445_v2, -inf }
 0x319   : > { %448 = vmax.xlane.f32.xlu0 %v447_v3  ;;  %v446_v4 = vsel %vm190_vm4, %v444_v63, -1e+30 }
 0x31a   : > { %v450_v9 = vsel %vm193_vm3, %v446_v4, -inf }
 0x31c   : > { %v561_v8 = vpop.f32.mrb[12].mxu1 }
 0x31d   : > { %v568_v10 = vmul.f32 0.17677669, %v561_v8  ;;  %451 = vmax.xlane.f32.xlu0 %v450_v9  ;;  %v826_v11 = vpop.f32.mrb[13].mxu1 }
 0x31e   : > { %v564_v12 = vpop.f32.mrb[14].mxu1 }
 0x31f   : > { %v569_v13 = vmul.f32 0.17677669, %v564_v12  ;;  %v570_v14 = vsel %vm189_vm2, %v568_v10, -1e+30  ;;  %v827_v15 = vpop.f32.mrb[15].mxu1 }
 0x320   : > { %v572_v16 = vsel %vm193_vm3, %v570_v14, -inf }
 0x321   : > { %573 = vmax.xlane.f32.xlu0 %v572_v16  ;;  %v571_v17 = vsel %vm190_vm4, %v569_v13, -1e+30 }
 0x322   : > { %v575_v18 = vsel %vm193_vm3, %v571_v17, -inf }
 0x323   : > { %576 = vmax.xlane.f32.xlu1 %v575_v18 }
 0x39e   : > { %v324_v19 = vpop.xlane.xlu0 %323 }
 0x39f   : > { %v328_v20 = vsub.f32 %v320_v55, %v324_v19 }
 0x3a0   : > { %v327_v21 = vpop.xlane.xlu1 %326 }
 0x3a1   : > { %v330_v22 = vmul.f32 1.442695, %v328_v20  ;;  %v329_v23 = vsub.f32 %v321_v57, %v327_v21 }
 0x3a3   : > { %874 = vpow2.f32 %v330_v22  ;;  %v332_v24 = vmul.f32 1.442695, %v329_v23 }
 0x3a5   : > { %876 = vpow2.f32 %v332_v24 }
 0x3a6   : > { %v449_v5 = vpop.xlane.xlu0 %448 }
 0x3a7   : > { %v453_v25 = vsub.f32 %v445_v2, %v449_v5 }
 0x3a9   : > { %v455_v26 = vmul.f32 1.442695, %v453_v25 }
 0x3aa   : > { %v452_v27 = vpop.xlane.xlu0 %451 }
 0x3ab   : > { %878 = vpow2.f32 %v455_v26  ;;  %v454_v29 = vsub.f32 %v446_v4, %v452_v27 }
 0x3ad   : > { %v875_v30 = vpop.eup %874  ;;  %v457_v6 = vmul.f32 1.442695, %v454_v29 }
 0x3ae   : > { %v574_v7 = vpop.xlane.xlu0 %573  ;;  %v334_v31 = vsel %vm193_vm3, %v875_v30, 0.0 }
 0x3af   : > { %v877_v32 = vpop.eup %876  ;;  %880 = vpow2.f32 %v457_v6  ;;  %v578_v33 = vsub.f32 %v570_v14, %v574_v7  ;;  %335 = vadd.xlane.f32.xlu0 %v334_v31 }
 0x3b0   : > { %v337_v34 = vsel %vm193_vm3, %v877_v32, 0.0  ;;  %v577_v42 = vpop.xlane.xlu1 %576 }
 0x3b1   : > { %v580_v35 = vmul.f32 1.442695, %v578_v33  ;;  %338 = vadd.xlane.f32.xlu1 %v337_v34  ;;  %v579_v43 = vsub.f32 %v571_v17, %v577_v42 }
 0x3b3   : > { %882 = vpow2.f32 %v580_v35  ;;  %v582_v44 = vmul.f32 1.442695, %v579_v43 }
 0x3b5   : > { %v879_v36 = vpop.eup %878  ;;  %884 = vpow2.f32 %v582_v44 }
 0x3b6   : > { %v459_v37 = vsel %vm193_vm3, %v879_v36, 0.0 }
 0x3b7   : > { %460 = vadd.xlane.f32.xlu0 %v459_v37 }
 0x3b9   : > { %v881_v38 = vpop.eup %880 }
 0x3ba   : > { %v462_v39 = vsel %vm193_vm3, %v881_v38, 0.0 }
 0x3bb   : > { %463 = vadd.xlane.f32.xlu1 %v462_v39 }
 0x3bd   : > { %v883_v40 = vpop.eup %882 }
 0x3be   : > { %v584_v41 = vsel %vm193_vm3, %v883_v40, 0.0 }
 0x3bf   : > { %585 = vadd.xlane.f32.xlu0 %v584_v41  ;;  %v885_v46 = vpop.eup %884 }
 0x3c0   : > { %v587_v48 = vsel %vm193_vm3, %v885_v46, 0.0 }
 0x3cc   : > { %470 = vrot.lane.b32.xlu1 %v974_v28, %s910_s14 }
 0x3d5   : > { %345 = vrot.lane.b32.xlu0 %v974_v28, %s908_s12 }
 0x3f0   : > { %588 = vadd.xlane.f32.xlu1 %v587_v48 }
 0x401   : > { %595 = vrot.lane.b32.xlu1 %v974_v28, %s909_s13 }
 0x43c   : > { %v336_v50 = vpop.xlane.xlu0 %335 }
 0x43e   : > { %v339_v49 = vpop.xlane.xlu1 %338 }
 0x43f   : > { %886 = vrcp.f32 %v339_v49 }
 0x440   : > { %888 = vrcp.f32 %v336_v50 }
 0x444   : > { %v461_v51 = vpop.xlane.xlu0 %460 }
 0x448   : > { %v464_v52 = vpop.xlane.xlu1 %463 }
 0x449   : > { %890 = vrcp.f32 %v464_v52  ;;  %v887_v53 = vpop.eup %886 }
 0x44a   : > { %892 = vrcp.f32 %v461_v51  ;;  %v889_v55 = vpop.eup %888  ;;  %v343_v56 = vmul.f32 %v887_v53, %v877_v32 }
 0x44b   : > { %v342_v57 = vmul.f32 %v889_v55, %v875_v30 }
 0x44c   : > { %v586_v54 = vpop.xlane.xlu0 %585  ;;  %v471_v28 = vpop.permute.xlu1 %470 }
 0x44d   : > { %v344_v59 = vpack.c.bf16 %v343_v56, %v342_v57  ;;  %894 = vrcp.f32 %v586_v54 }
 0x450   : > { %v346_v58 = vpop.permute.xlu0 %345 }
 0x451   : > { %805 = vmatpush3.bf16.msra.mxu0 %v346_v58 }
 0x452   : > { %816 = vmatprep.subr.bf16.mxu0 %v906_v0 }
 0x453   : > { %v891_v60 = vpop.eup %890 }
 0x454   : > { %807 = vmatmul.mubr.msk.bf16.vlgmr.msra.gmra.mrb[4].mxu0 %vm193_vm3, %v344_v59  ;;  %v893_v61 = vpop.eup %892  ;;  %v468_v62 = vmul.f32 %v891_v60, %v881_v38 }
 0x455   : > { %817 = vmatpush3.bf16.msra.mxu0 %v471_v28  ;;  %818 = vmatprep.mubr.msk.bf16.mxu0 %vm907_vm0, %v906_v0  ;;  %v467_v63 = vmul.f32 %v893_v61, %v879_v36 }
 0x456   : > { %828 = vmatprep.subr.bf16.mxu0 %v906_v0 }
 0x457   : > { %v469_v1 = vpack.c.bf16 %v468_v62, %v467_v63  ;;  %v895_v4 = vpop.eup %894 }
 0x458   : > { %v592_v9 = vmul.f32 %v895_v4, %v883_v40 }
 0x45c   : > { %819 = vmatmul.mubr.msk.bf16.vlgmr.msra.gmra.mrb[8].mxu0 %vm193_vm3, %v469_v1 }
 0x45d   : > { %830 = vmatprep.mubr.msk.bf16.mxu0 %vm907_vm0, %v906_v0 }
 0x47d   : > { %v589_v2 = vpop.xlane.xlu1 %588 }
 0x47e   : > { %896 = vrcp.f32 %v589_v2 }
 0x481   : > { %v596_v3 = vpop.permute.xlu1 %595 }
 0x482   : > { %829 = vmatpush3.bf16.msra.mxu0 %v596_v3 }
 0x488   : > { %v897_v8 = vpop.eup %896 }
 0x489   : > { %v593_v10 = vmul.f32 %v897_v8, %v885_v46 }
 0x48b   : > { %v594_v11 = vpack.c.bf16 %v593_v10, %v592_v9 }
 0x48d   : > { %831 = vmatmul.mubr.msk.bf16.vlgmr.msra.gmra.mrb[12].mxu0 %vm193_vm3, %v594_v11 }
 0x527   : > { %v385_v12 = vpop.f32.mrb[4].mxu0 }
 0x528   : > { %v808_v13 = vpop.f32.mrb[5].mxu0 }
 0x529   : > { %v388_v14 = vpop.f32.mrb[6].mxu0 }
 0x52a   : > { %v848_v15 = vpack.i.bf16 %v388_v14, %v385_v12  ;;  %v809_v16 = vpop.f32.mrb[7].mxu0 }
 0x52c   : > { %849 = vrot.lane.b32.xlu1 %v848_v15, %s909_s13 }
 0x52f   : > { %v510_v0 = vpop.f32.mrb[8].mxu0 }
 0x530   : > { %v820_v17 = vpop.f32.mrb[9].mxu0 }
 0x531   : > { %v513_v18 = vpop.f32.mrb[10].mxu0 }
 0x532   : > { %v853_v19 = vpack.i.bf16 %v513_v18, %v510_v0  ;;  %v821_v20 = vpop.f32.mrb[11].mxu0 }
 0x534   : > { %854 = vrot.lane.b32.xlu0 %v853_v19, %s910_s14 }
 0x560   : > { %v635_v21 = vpop.f32.mrb[12].mxu0 }
 0x561   : > { %v832_v22 = vpop.f32.mrb[13].mxu0 }
 0x562   : > { %v638_v23 = vpop.f32.mrb[14].mxu0 }
 0x563   : > { %v858_v24 = vpack.i.bf16 %v638_v23, %v635_v21  ;;  %v833_v5 = vpop.f32.mrb[15].mxu0 }
 0x565   : > { %859 = vrot.lane.b32.xlu1 %v858_v24, %s908_s12 }
 0x59e   : > { %v850_v25 = vpop.permute.xlu1 %849 }
 0x59f   : > { %v852_v27 = vunpack.i.h.bf16 %v850_v25  ;;  %v851_v29 = vunpack.i.l.bf16 %v850_v25 }
 0x5a1   : > { %v667_v31 = vsel %vm134_vm1, %v999_v47, %v852_v27  ;;  %v666_v32 = vsel %vm134_vm1, %v997_v45, %v851_v29 }
 0x5a6   : > { %v855_v26 = vpop.permute.xlu0 %854 }
 0x5a7   : > { %v857_v30 = vunpack.i.h.bf16 %v855_v26  ;;  %v856_v6 = vunpack.i.l.bf16 %v855_v26 }
 0x5a9   : > { %v670_v35 = vsel %vm668_vm5, %v667_v31, %v857_v30  ;;  %v669_v36 = vsel %vm668_vm5, %v666_v32, %v856_v6 }
 0x5d7   : > { %v860_v7 = vpop.permute.xlu1 %859 }
 0x5d8   : > { %v862_v33 = vunpack.i.h.bf16 %v860_v7  ;;  %v861_v34 = vunpack.i.l.bf16 %v860_v7 }
 0x5da   : > { %v673_v37 = vsel %vm671_vm6, %v670_v35, %v862_v33  ;;  %v672_v38 = vsel %vm671_vm6, %v669_v36, %v861_v34 }
 0x5db   : > { %v768_v39 = vpack.c.bf16 %v673_v37, %v672_v38 }
 0x5dd   : > { %769 = vst [vmem:[%s116_s18] sm:$0xff] %v768_v39  }
 0x5de PF: > { %s11_s6 = sadd.s32 1, %s904_s6  }
 0x5df   : > { %p8_p4 = scmp.ge.s32.totalorder %s11_s6, 4  }
 0x5e1   :  { %10 = sbr.rel (!%p8_p4) target bundleno = 1 (0x1), region = 54 }

// kernel: forward.85
= control target key start
LH: loop header
LB: loop body
LE: loop exit
PB: predicated region body
PF: predicated region fallthrough
CT: control target
= control target key end

     0   :  { %s1324_s9 = smov 0   ;;  %s1326_s10 = smov 0   ;;  %s1573_s0 = inlined_call_operand.vmem [shape: bf16[32,128], index: 0, kind: input, shape index: {}]   ;;  %s1574_s1 = inlined_call_operand.vmem [shape: bf16[1024,128], index: 1, kind: input, shape index: {}]   ;;  %s1575_s2 = inlined_call_operand.vmem [shape: bf16[32,128], index: 2, kind: output, shape index: {}]  }
   0x1   :  { %s1328_s11 = smov 0  }
   0x2 LB: > { %s21_s12 = sadd.s32 1, %s1299_s10  ;;  %p1009_p0 = scmp.ge.s32.totalorder %s1303_s11, 1  ;;  %s1303_s11 = sphi %s1328_s11, %s12_s11   ;;  %s1299_s10 = sphi %s1326_s10, %s1577_s10   ;;  %s1295_s9 = sphi %s1324_s9, %s1576_s9  }
   0x3   : > { %p22_p1 = scmp.ge.s32.totalorder %s21_s12, 2  ;;  %p136_p2 = scmp.lt.s32.totalorder %s1303_s11, 3 }
   0x5   : > { %s1579_s12 = smov (%p22_p1, %s21_s12), 0  ;;  %p137_p3 = pnand %p1009_p0, %p136_p2 }
   0x6   : > { %s1010_s13 = sshll.u32 (!%p137_p3), %s1295_s9, 6  ;;  %p1012_p5 = scmp.ne.s32.totalorder (!%p137_p3), %s1295_s9, 0 }
   0x7   : > { %140 = sbr.rel (%p137_p3) target bundleno = 956 (0x3bc), region = 28  ;;  %p170_p4 = scmp.lt.s32.totalorder (!%p137_p3), %s1010_s13, 127 }
   0xe   : > { %s1581_s13 = smov (!%p170_p4, %s1010_s13), 127  ;;  %185 = sbr.rel (%p1012_p5) target bundleno = 22 (0x16), region = 32 }
   0xf   : > { %s1011_s14 = sshll.u32 %s1581_s13, 2  ;;  %vm186_vm0 = vcmask (!%p1012_p5), 7168   ;;  %v1305_v0 = vmov (!%p1012_p5), -inf   ;;  %v1306_v1 = vmov (!%p1012_p5), 0.0  }
  0x10   : > { %s1348_s17 = scalar_lea.vmem %s1574_s1, %s1011_s14  ;;  %187 = vst.msk [vmem:[#allocation2] sm:$0xff] (!%p1012_p5), %vm186_vm0, %v1305_v0  ;;  %188 = vst.msk [vmem:[#allocation2 + $0x8] sm:$0xff] (!%p1012_p5), %vm186_vm0, %v1305_v0 }
  0x11   : > { %189 = vst.msk [vmem:[#allocation2 + $0x10] sm:$0xff] (!%p1012_p5), %vm186_vm0, %v1305_v0  ;;  %190 = vst.msk [vmem:[#allocation2 + $0x18] sm:$0xff] (!%p1012_p5), %vm186_vm0, %v1305_v0 }
  0x12   : > { %191 = vst.msk [vmem:[#allocation3] sm:$0xff] (!%p1012_p5), %vm186_vm0, %v1306_v1  ;;  %192 = vst.msk [vmem:[#allocation3 + $0x8] sm:$0xff] (!%p1012_p5), %vm186_vm0, %v1306_v1 }
  0x13   : > { %193 = vst.msk [vmem:[#allocation3 + $0x10] sm:$0xff] (!%p1012_p5), %vm186_vm0, %v1306_v1  ;;  %194 = vst.msk [vmem:[#allocation3 + $0x18] sm:$0xff] (!%p1012_p5), %vm186_vm0, %v1306_v1 }
  0x14   : > { %195 = vst [vmem:[#allocation4] sm:$0xff] (!%p1012_p5), %v1306_v1  ;;  %196 = vst [vmem:[#allocation4 + $0x8] sm:$0xff] (!%p1012_p5), %v1306_v1 }
  0x15   : > { %197 = vst [vmem:[#allocation4 + $0x10] sm:$0xff] %v1306_v1  ;;  %198 = vst [vmem:[#allocation4 + $0x18] sm:$0xff] %v1306_v1 }
  0x16 PF: > { %v1352_v2 = vld [vmem:[%s1348_s17 + $0x40] sm:$0xff]   ;;  %v1367_v6 = vld [vmem:[%s1348_s17 + $0x48] sm:$0xff]   ;;  %v1382_v10 = vld [vmem:[%s1348_s17 + $0x50] sm:$0xff]   ;;  %v1307_v0 = vmov 0   ;;  %vm717_vm1 = vcmask 7168   ;;  %p1047_p6 = scmp.ne.s32.totalorder %s1295_s9, 1 }
  0x17   : > { %v1355_v3 = vld [vmem:[%s1348_s17 + $0xc0] sm:$0xff]   ;;  %1071 = vmatprep.subr.bf16.mxu0 %v1352_v2  ;;  %v1371_v7 = vld [vmem:[%s1348_s17 + $0xc8] sm:$0xff]   ;;  %v1385_v11 = vld [vmem:[%s1348_s17 + $0xd0] sm:$0xff]   ;;  %1195 = vset.pattern.permute.xlu0 %v1307_v0 }
  0x18   : > { %v1359_v4 = vld [vmem:[%s1348_s17] sm:$0xff]   ;;  %1091 = vmatprep.subr.bf16.mxu1 %v1355_v3  ;;  %v1376_v8 = vld [vmem:[%s1348_s17 + $0x8] sm:$0xff]   ;;  %v1392_v12 = vld [vmem:[%s1348_s17 + $0x10] sm:$0xff]   ;;  %1196 = vset.pattern.permute.xlu1 %v1307_v0 }
  0x19   : > { %v1363_v5 = vld [vmem:[%s1348_s17 + $0x80] sm:$0xff]   ;;  %1072 = vmatpush3.bf16.xpose.msra.mxu0 %v1359_v4  ;;  %v1379_v9 = vld [vmem:[%s1348_s17 + $0x88] sm:$0xff]   ;;  %v1395_v13 = vld [vmem:[%s1348_s17 + $0x90] sm:$0xff]  }
  0x1a   : > { %1092 = vmatpush3.bf16.xpose.msra.mxu1 %v1363_v5  ;;  %1073 = vmatprep.subr.bf16.mxu0 %v1367_v6  ;;  %v1398_v14 = vld [vmem:[%s1348_s17 + $0x58] sm:$0xff]   ;;  %v1213_v18 = vld [vmem:[%s1348_s17 + $0x60] sm:$0xff]   ;;  %v1217_v23 = vld [vmem:[%s1348_s17 + $0x68] sm:$0xff]  }
  0x1b   : > { %1093 = vmatprep.subr.bf16.mxu1 %v1371_v7  ;;  %v1401_v15 = vld [vmem:[%s1348_s17 + $0xd8] sm:$0xff]   ;;  %v1214_v19 = vld [vmem:[%s1348_s17 + $0xe0] sm:$0xff]   ;;  %v1218_v24 = vld [vmem:[%s1348_s17 + $0xe8] sm:$0xff]  }
  0x1c   : > { %v1211_v16 = vld [vmem:[%s1348_s17 + $0x18] sm:$0xff]   ;;  %v1215_v20 = vld [vmem:[%s1348_s17 + $0x20] sm:$0xff]   ;;  %v1219_v25 = vld [vmem:[%s1348_s17 + $0x28] sm:$0xff]  }
  0x1d   : > { %v1212_v17 = vld [vmem:[%s1348_s17 + $0x98] sm:$0xff]   ;;  %v1216_v21 = vld [vmem:[%s1348_s17 + $0xa0] sm:$0xff]   ;;  %v1220_v26 = vld [vmem:[%s1348_s17 + $0xa8] sm:$0xff]  }
  0x1e   : > { %v1229_v22 = vld [vmem:[%s1573_s0] sm:$0xff]   ;;  %v1221_v27 = vld [vmem:[%s1348_s17 + $0x70] sm:$0xff]   ;;  %v1225_v31 = vld [vmem:[%s1348_s17 + $0x78] sm:$0xff]  }
  0x1f   : > { %1087 = vmatprep.mubr.bf16.mxu0 %v1229_v22  ;;  %1107 = vmatprep.mubr.bf16.mxu1 %v1229_v22  ;;  %v1222_v28 = vld [vmem:[%s1348_s17 + $0xf0] sm:$0xff]   ;;  %v1226_v32 = vld [vmem:[%s1348_s17 + $0xf8] sm:$0xff]   ;;  %v1230_v35 = vld [vmem:[%s1573_s0 + $0x8] sm:$0xff]  }
  0x20   : > { %v1223_v29 = vld [vmem:[%s1348_s17 + $0x30] sm:$0xff]   ;;  %v1227_v33 = vld [vmem:[%s1348_s17 + $0x38] sm:$0xff]   ;;  %v577_v1 = vld [vmem:[#allocation2] sm:$0xff] }
  0x21   : > { %1074 = vmatpush3.bf16.xpose.msra.mxu0 %v1376_v8  ;;  %v1224_v30 = vld [vmem:[%s1348_s17 + $0xb0] sm:$0xff]   ;;  %v1228_v34 = vld [vmem:[%s1348_s17 + $0xb8] sm:$0xff]  }
  0x22   : > { %1094 = vmatpush3.bf16.xpose.msra.mxu1 %v1379_v9  ;;  %1075 = vmatprep.subr.bf16.mxu0 %v1382_v10 }
  0x23   : > { %1095 = vmatprep.subr.bf16.mxu1 %v1385_v11 }
  0x29   : > { %1076 = vmatpush3.bf16.xpose.msra.mxu0 %v1392_v12 }
  0x2a   : > { %1096 = vmatpush3.bf16.xpose.msra.mxu1 %v1395_v13  ;;  %1077 = vmatprep.subr.bf16.mxu0 %v1398_v14 }
  0x2b   : > { %1097 = vmatprep.subr.bf16.mxu1 %v1401_v15 }
  0x31   : > { %1078 = vmatpush3.bf16.xpose.msra.mxu0 %v1211_v16 }
  0x32   : > { %1098 = vmatpush3.bf16.xpose.msra.mxu1 %v1212_v17  ;;  %1079 = vmatprep.subr.bf16.mxu0 %v1213_v18 }
  0x33   : > { %1099 = vmatprep.subr.bf16.mxu1 %v1214_v19 }
  0x39   : > { %1080 = vmatpush3.bf16.xpose.msra.mxu0 %v1215_v20 }
  0x3a   : > { %1100 = vmatpush3.bf16.xpose.msra.mxu1 %v1216_v21  ;;  %1081 = vmatprep.subr.bf16.mxu0 %v1217_v23 }
  0x3b   : > { %1101 = vmatprep.subr.bf16.mxu1 %v1218_v24 }
  0x41   : > { %1082 = vmatpush3.bf16.xpose.msra.mxu0 %v1219_v25 }
  0x42   : > { %1102 = vmatpush3.bf16.xpose.msra.mxu1 %v1220_v26  ;;  %1083 = vmatprep.subr.bf16.mxu0 %v1221_v27 }
  0x43   : > { %1103 = vmatprep.subr.bf16.mxu1 %v1222_v28 }
  0x49   : > { %1084 = vmatpush3.bf16.xpose.msra.mxu0 %v1223_v29 }
  0x4a   : > { %1104 = vmatpush3.bf16.xpose.msra.mxu1 %v1224_v30  ;;  %1085 = vmatprep.subr.bf16.mxu0 %v1225_v31 }
  0x4b   : > { %1105 = vmatprep.subr.bf16.mxu1 %v1226_v32 }
  0x51   : > { %1086 = vmatpush3.bf16.xpose.msra.mxu0 %v1227_v33 }
  0x52   : > { %1106 = vmatpush3.bf16.xpose.msra.mxu1 %v1228_v34  ;;  %1111 = vmatprep.subr.bf16.mxu0 %v1352_v2 }
  0x53   : > { %1139 = vmatprep.subr.bf16.mxu1 %v1355_v3 }
  0x58   : > { %1088 = vmatmul.mubr.bf16.vlgmr.msra.gmra.mrb[0].mxu0 %v1229_v22 }
  0x59   : > { %1108 = vmatmul.mubr.bf16.vlgmr.msra.gmra.mrb[0].mxu1 %v1229_v22  ;;  %1089 = vmatprep.mubr.bf16.mxu0 %v1230_v35 }
  0x5a   : > { %1109 = vmatprep.mubr.bf16.mxu1 %v1230_v35  ;;  %1112 = vmatpush3.bf16.msra.mxu0 %v1359_v4  ;;  %v1493_v4 = vld [vmem:[#allocation2 + $0x8] sm:$0xff] }
  0x5b   : > { %1140 = vmatpush3.bf16.msra.mxu1 %v1363_v5  ;;  %1113 = vmatprep.subr.bf16.mxu0 %v1367_v6 }
  0x5c   : > { %1141 = vmatprep.subr.bf16.mxu1 %v1371_v7 }
  0x5e   : > { %1114 = vmatpush3.bf16.msra.mxu0 %v1376_v8 }
  0x5f   : > { %1142 = vmatpush3.bf16.msra.mxu1 %v1379_v9  ;;  %1115 = vmatprep.subr.bf16.mxu0 %v1382_v10  ;;  %v1499_v9 = vld [vmem:[#allocation2 + $0x10] sm:$0xff] }
  0x60   : > { %1090 = vmatmul.mubr.bf16.gmra.mrb[4].mxu0 %v1230_v35  ;;  %1143 = vmatprep.subr.bf16.mxu1 %v1385_v11 }
  0x61   : > { %1110 = vmatmul.mubr.bf16.gmra.mrb[4].mxu1 %v1230_v35 }
  0x62   : > { %1116 = vmatpush3.bf16.msra.mxu0 %v1392_v12 }
  0x63   : > { %1144 = vmatpush3.bf16.msra.mxu1 %v1395_v13  ;;  %1117 = vmatprep.subr.bf16.mxu0 %v1398_v14  ;;  %v1509_v13 = vld [vmem:[#allocation2 + $0x18] sm:$0xff] }
  0x64   : > { %1145 = vmatprep.subr.bf16.mxu1 %v1401_v15 }
  0x66   : > { %1118 = vmatpush3.bf16.msra.mxu0 %v1211_v16 }
  0x67   : > { %1146 = vmatpush3.bf16.msra.mxu1 %v1212_v17  ;;  %1119 = vmatprep.subr.bf16.mxu0 %v1213_v18 }
  0x68   : > { %1147 = vmatprep.subr.bf16.mxu1 %v1214_v19 }
  0x6a   : > { %1120 = vmatpush3.bf16.msra.mxu0 %v1215_v20 }
  0x6b   : > { %1148 = vmatpush3.bf16.msra.mxu1 %v1216_v21  ;;  %1121 = vmatprep.subr.bf16.mxu0 %v1217_v23 }
  0x6c   : > { %1149 = vmatprep.subr.bf16.mxu1 %v1218_v24 }
  0x6e   : > { %1122 = vmatpush3.bf16.msra.mxu0 %v1219_v25 }
  0x6f   : > { %1150 = vmatpush3.bf16.msra.mxu1 %v1220_v26  ;;  %1123 = vmatprep.subr.bf16.mxu0 %v1221_v27 }
  0x70   : > { %1151 = vmatprep.subr.bf16.mxu1 %v1222_v28 }
  0x72   : > { %1124 = vmatpush3.bf16.msra.mxu0 %v1223_v29 }
  0x73   : > { %1152 = vmatpush3.bf16.msra.mxu1 %v1224_v30  ;;  %1125 = vmatprep.subr.bf16.mxu0 %v1225_v31 }
  0x74   : > { %1153 = vmatprep.subr.bf16.mxu1 %v1226_v32 }
  0x76   : > { %1126 = vmatpush3.bf16.msra.mxu0 %v1227_v33 }
  0x77   : > { %1154 = vmatpush3.bf16.msra.mxu1 %v1228_v34 }
 0x12b   : > { %v1445_v36 = vpop.f32.mrb[0].mxu0 }
 0x12c   : > { %v1447_v37 = vpop.f32.mrb[0].mxu1  ;;  %v1449_v38 = vpop.f32.mrb[1].mxu0 }
 0x12d   : > { %v581_v39 = vmax.f32 %v1445_v36, %v1449_v38  ;;  %v1453_v40 = vpop.f32.mrb[1].mxu1  ;;  %v1455_v41 = vpop.f32.mrb[2].mxu0 }
 0x12e   : > { %v1457_v42 = vpop.f32.mrb[2].mxu1  ;;  %v1459_v43 = vpop.f32.mrb[3].mxu0 }
 0x12f   : > { %v586_v44 = vmax.f32 %v1455_v41, %v1459_v43  ;;  %v1463_v45 = vpop.f32.mrb[3].mxu1  ;;  %v582_v46 = vmax.f32 %v581_v39, %v1447_v37 }
 0x131   : > { %v583_v47 = vmax.f32 %v582_v46, %v1453_v40  ;;  %v587_v48 = vmax.f32 %v586_v44, %v1457_v42 }
 0x133   : > { %584 = vmax.xlane.f32.xlu0 %v583_v47  ;;  %v1468_v49 = vpop.f32.mrb[4].mxu0  ;;  %v588_v50 = vmax.f32 %v587_v48, %v1463_v45 }
 0x134   : > { %v1471_v51 = vpop.f32.mrb[4].mxu1  ;;  %v1473_v52 = vpop.f32.mrb[5].mxu0 }
 0x135   : > { %v591_v53 = vmax.f32 %v1468_v49, %v1473_v52  ;;  %v1477_v54 = vpop.f32.mrb[5].mxu1  ;;  %v1479_v55 = vpop.f32.mrb[6].mxu0 }
 0x136   : > { %v1481_v56 = vpop.f32.mrb[6].mxu1  ;;  %v1483_v57 = vpop.f32.mrb[7].mxu0 }
 0x137   : > { %v596_v58 = vmax.f32 %v1479_v55, %v1483_v57  ;;  %v1487_v59 = vpop.f32.mrb[7].mxu1  ;;  %589 = vmax.xlane.f32.xlu0 %v588_v50  ;;  %v592_v60 = vmax.f32 %v591_v53, %v1471_v51 }
 0x139   : > { %v593_v61 = vmax.f32 %v592_v60, %v1477_v54  ;;  %v597_v62 = vmax.f32 %v596_v58, %v1481_v56 }
 0x13b   : > { %594 = vmax.xlane.f32.xlu1 %v593_v61  ;;  %v598_v63 = vmax.f32 %v597_v62, %v1487_v59 }
 0x13f   : > { %599 = vmax.xlane.f32.xlu1 %v598_v63 }
 0x1c0   : > { %v585_v2 = vpop.xlane.xlu0 %584 }
 0x1c1   : > { %v601_v3 = vmax.f32 %v577_v1, %v585_v2 }
 0x1c3   : > { %v605_v5 = vsub.f32 %v577_v1, %v601_v3  ;;  %864 = vst.msk [vmem:[#allocation2] sm:$0xff] %vm717_vm1, %v601_v3  ;;  %619 = vperm.xlu0 %1195, %v601_v3  }
 0x1c4   : > { %v590_v6 = vpop.xlane.xlu0 %589 }
 0x1c5   : > { %v609_v7 = vmul.f32 1.442695, %v605_v5  ;;  %v1497_v8 = vmax.f32 %v1493_v4, %v590_v6 }
 0x1c7   : > { %1231 = vpow2.f32 %v609_v7  ;;  %v606_v10 = vsub.f32 %v1493_v4, %v1497_v8  ;;  %865 = vst.msk [vmem:[#allocation2 + $0x8] sm:$0xff] %vm717_vm1, %v1497_v8  ;;  %624 = vperm.xlu1 %1196, %v1497_v8  }
 0x1c8   : > { %v595_v11 = vpop.xlane.xlu1 %594 }
 0x1c9   : > { %v1507_v12 = vmax.f32 %v1499_v9, %v595_v11 }
 0x1cb   : > { %v607_v14 = vsub.f32 %v1499_v9, %v1507_v12  ;;  %866 = vst.msk [vmem:[#allocation2 + $0x10] sm:$0xff] %vm717_vm1, %v1507_v12  ;;  %629 = vperm.xlu1 %1196, %v1507_v12  }
 0x1cc   : > { %v600_v15 = vpop.xlane.xlu1 %599 }
 0x1cd   : > { %v1517_v16 = vmax.f32 %v1509_v13, %v600_v15 }
 0x1cf   : > { %v608_v17 = vsub.f32 %v1509_v13, %v1517_v16  ;;  %867 = vst.msk [vmem:[#allocation2 + $0x18] sm:$0xff] %vm717_vm1, %v1517_v16  ;;  %634 = vperm.xlu1 %1196, %v1517_v16   ;;  %v687_v13 = vld [vmem:[#allocation3 + $0x10] sm:$0xff] }
 0x1d1   : > { %v1524_v18 = vpop.eup %1231 }
 0x1d3   : > { %728 = vperm.xlu1 %1196, %v1524_v18  }
 0x242   : > { %v620_v19 = vpop.permute.xlu0 %619 }
 0x243   : > { %v637_v20 = vsub.f32 %v1445_v36, %v620_v19  ;;  %v638_v21 = vsub.f32 %v1449_v38, %v620_v19  ;;  %v639_v22 = vsub.f32 %v1447_v37, %v620_v19  ;;  %v640_v23 = vsub.f32 %v1453_v40, %v620_v19 }
 0x245   : > { %v653_v24 = vmul.f32 1.442695, %v637_v20  ;;  %v655_v25 = vmul.f32 1.442695, %v638_v21  ;;  %v657_v26 = vmul.f32 1.442695, %v639_v22 }
 0x246   : > { %v659_v27 = vmul.f32 1.442695, %v640_v23  ;;  %v625_v28 = vpop.permute.xlu1 %624  ;;  %v613_v21 = vmul.f32 1.442695, %v607_v14 }
 0x247   : > { %1233 = vpow2.f32 %v653_v24  ;;  %v641_v29 = vsub.f32 %v1455_v41, %v625_v28  ;;  %v642_v30 = vsub.f32 %v1459_v43, %v625_v28  ;;  %v643_v31 = vsub.f32 %v1457_v42, %v625_v28 }
 0x248   : > { %1235 = vpow2.f32 %v655_v25  ;;  %v644_v32 = vsub.f32 %v1463_v45, %v625_v28 }
 0x249   : > { %1237 = vpow2.f32 %v657_v26  ;;  %v661_v33 = vmul.f32 1.442695, %v641_v29  ;;  %v663_v34 = vmul.f32 1.442695, %v642_v30  ;;  %v665_v35 = vmul.f32 1.442695, %v643_v31 }
 0x24a   : > { %1239 = vpow2.f32 %v659_v27  ;;  %v667_v36 = vmul.f32 1.442695, %v644_v32  ;;  %v630_v37 = vpop.permute.xlu1 %629 }
 0x24b   : > { %1241 = vpow2.f32 %v661_v33  ;;  %v645_v38 = vsub.f32 %v1468_v49, %v630_v37  ;;  %v646_v39 = vsub.f32 %v1473_v52, %v630_v37  ;;  %v647_v40 = vsub.f32 %v1471_v51, %v630_v37 }
 0x24c   : > { %1243 = vpow2.f32 %v663_v34  ;;  %v648_v41 = vsub.f32 %v1477_v54, %v630_v37 }
 0x24d   : > { %1245 = vpow2.f32 %v665_v35  ;;  %v669_v42 = vmul.f32 1.442695, %v645_v38  ;;  %v671_v43 = vmul.f32 1.442695, %v646_v39  ;;  %v673_v44 = vmul.f32 1.442695, %v647_v40 }
 0x24e   : > { %1247 = vpow2.f32 %v667_v36  ;;  %v675_v45 = vmul.f32 1.442695, %v648_v41  ;;  %v635_v46 = vpop.permute.xlu1 %634  ;;  %v611_v35 = vmul.f32 1.442695, %v606_v10  ;;  %v615_v38 = vmul.f32 1.442695, %v608_v17 }
 0x24f   : > { %1249 = vpow2.f32 %v669_v42  ;;  %v649_v47 = vsub.f32 %v1479_v55, %v635_v46  ;;  %v650_v48 = vsub.f32 %v1483_v57, %v635_v46  ;;  %v651_v49 = vsub.f32 %v1481_v56, %v635_v46  ;;  %v685_v41 = vld [vmem:[#allocation3] sm:$0xff]  ;;  %v686_v10 = vld [vmem:[#allocation3 + $0x8] sm:$0xff] }
 0x250   : > { %1251 = vpow2.f32 %v671_v43  ;;  %v652_v50 = vsub.f32 %v1487_v59, %v635_v46  ;;  %v689_v4 = vmul.f32 %v1524_v18, %v685_v41 }
 0x251   : > { %v1234_v51 = vpop.eup %1233  ;;  %1253 = vpow2.f32 %v673_v44  ;;  %v677_v52 = vmul.f32 1.442695, %v649_v47  ;;  %v679_v53 = vmul.f32 1.442695, %v650_v48  ;;  %v681_v54 = vmul.f32 1.442695, %v651_v49 }
 0x252   : > { %v1236_v58 = vpop.eup %1235  ;;  %1255 = vpow2.f32 %v675_v45  ;;  %v683_v60 = vmul.f32 1.442695, %v652_v50  ;;  %v729_v40 = vpop.permute.xlu1 %728  ;;  %v688_v47 = vld [vmem:[#allocation3 + $0x18] sm:$0xff] }
 0x253   : > { %v1238_v61 = vpop.eup %1237  ;;  %1257 = vpow2.f32 %v677_v52  ;;  %v693_v62 = vadd.f32 %v1236_v58, %v1234_v51 }
 0x254   : > { %v1240_v63 = vpop.eup %1239  ;;  %1259 = vpow2.f32 %v679_v53 }
 0x255   : > { %v1242_v55 = vpop.eup %1241  ;;  %1261 = vpow2.f32 %v681_v54  ;;  %v694_v57 = vadd.f32 %v1238_v61, %v693_v62 }
 0x256   : > { %v1244_v56 = vpop.eup %1243  ;;  %1263 = vpow2.f32 %v683_v60  ;;  %v750_v0 = vpack.c.bf16 %v1242_v55, %v1234_v51  ;;  %v722_v60 = vld [vmem:[#allocation4] sm:$0xff] }
 0x257   : > { %v1246_v59 = vpop.eup %1245  ;;  %v695_v1 = vadd.f32 %v1240_v63, %v694_v57  ;;  %v751_v2 = vpack.c.bf16 %v1244_v56, %v1236_v58  ;;  %v698_v3 = vadd.f32 %v1244_v56, %v1242_v55  ;;  %1265 = vpow2.f32 %v613_v21  ;;  %v723_v56 = vld [vmem:[#allocation4 + $0x8] sm:$0xff] }
 0x258   : > { %v1248_v5 = vpop.eup %1247  ;;  %v752_v6 = vpack.c.bf16 %v1246_v59, %v1238_v61  ;;  %1267 = vpow2.f32 %v611_v35 }
 0x259   : > { %v1250_v7 = vpop.eup %1249  ;;  %696 = vadd.xlane.f32.xlu1 %v695_v1  ;;  %790 = vmatprep.mubr.bf16.mxu0 %v751_v2  ;;  %v753_v11 = vpack.c.bf16 %v1248_v5, %v1240_v63  ;;  %v699_v15 = vadd.f32 %v1246_v59, %v698_v3  ;;  %1269 = vpow2.f32 %v615_v38  ;;  %v746_v1 = vmul.f32 %v729_v40, %v722_v60 }
 0x25a   : > { %v1252_v19 = vpop.eup %1251  ;;  %791 = vmatmul.mubr.bf16.vlgmr.msra.gmra.mrb[8].mxu0 %v750_v0 }
 0x25b   : > { %v1254_v20 = vpop.eup %1253  ;;  %839 = vmatprep.mubr.bf16.mxu1 %v753_v11  ;;  %v700_v22 = vadd.f32 %v1248_v5, %v699_v15  ;;  %v703_v23 = vadd.f32 %v1252_v19, %v1250_v7 }
 0x25c   : > { %v1256_v24 = vpop.eup %1255  ;;  %840 = vmatmul.mubr.bf16.vlgmr.msra.gmra.mrb[8].mxu1 %v752_v6 }
 0x25d   : > { %v1258_v25 = vpop.eup %1257  ;;  %701 = vadd.xlane.f32.xlu0 %v700_v22  ;;  %v704_v26 = vadd.f32 %v1254_v20, %v703_v23  ;;  %v724_v23 = vld [vmem:[#allocation4 + $0x10] sm:$0xff] }
 0x25e   : > { %v1260_v27 = vpop.eup %1259  ;;  %v754_v28 = vpack.c.bf16 %v1258_v25, %v1250_v7 }
 0x25f   : > { %v1262_v29 = vpop.eup %1261  ;;  %v755_v30 = vpack.c.bf16 %v1260_v27, %v1252_v19  ;;  %v705_v31 = vadd.f32 %v1256_v24, %v704_v26  ;;  %v708_v32 = vadd.f32 %v1260_v27, %v1258_v25 }
 0x260   : > { %v1264_v33 = vpop.eup %1263  ;;  %v756_v34 = vpack.c.bf16 %v1262_v29, %v1254_v20 }
 0x261   : > { %798 = vmatprep.mubr.bf16.mxu0 %v755_v30  ;;  %v757_v9 = vpack.c.bf16 %v1264_v33, %v1256_v24  ;;  %v709_v12 = vadd.f32 %v1262_v29, %v708_v32  ;;  %v1266_v36 = vpop.eup %1265  ;;  %v725_v29 = vld [vmem:[#allocation4 + $0x18] sm:$0xff] }
 0x262   : > { %799 = vmatmul.mubr.bf16.gmra.mrb[12].mxu0 %v754_v28  ;;  %v1268_v37 = vpop.eup %1267  ;;  %v691_v16 = vmul.f32 %v1266_v36, %v687_v13 }
 0x263   : > { %847 = vmatprep.mubr.bf16.mxu1 %v757_v9  ;;  %v710_v14 = vadd.f32 %v1264_v33, %v709_v12  ;;  %v1270_v39 = vpop.eup %1269  ;;  %v690_v43 = vmul.f32 %v1268_v37, %v686_v10 }
 0x264   : > { %848 = vmatmul.mubr.bf16.gmra.mrb[12].mxu1 %v756_v34  ;;  %v692_v49 = vmul.f32 %v1270_v39, %v688_v47 }
 0x26a   : > { %738 = vperm.xlu1 %1196, %v1266_v36  }
 0x273   : > { %733 = vperm.xlu0 %1195, %v1268_v37  }
 0x28e   : > { %706 = vadd.xlane.f32.xlu1 %v705_v31 }
 0x292   : > { %711 = vadd.xlane.f32.xlu1 %v710_v14 }
 0x2a3   : > { %743 = vperm.xlu1 %1196, %v1270_v39   ;;  %v1308_v39 = vmov (!%p1047_p6), 0  }
 0x2a4   : > { %1271 = vset.pattern.permute.xlu0 (!%p1047_p6), %v1308_v39 }
 0x2a7   : > { %1272 = vset.pattern.permute.xlu1 (!%p1047_p6), %v1308_v39 }
 0x2e6   : > { %v697_v8 = vpop.xlane.xlu1 %696 }
 0x2e7   : > { %v713_v42 = vadd.f32 %v697_v8, %v689_v4 }
 0x2e9   : > { %718 = vst.msk [vmem:[#allocation3] sm:$0xff] %vm717_vm1, %v713_v42 }
 0x2ea   : > { %v702_v44 = vpop.xlane.xlu0 %701  ;;  %v739_v46 = vpop.permute.xlu1 %738 }
 0x2eb   : > { %v714_v45 = vadd.f32 %v702_v44, %v690_v43  ;;  %v748_v32 = vmul.f32 %v739_v46, %v724_v23 }
 0x2ed   : > { %719 = vst.msk [vmem:[#allocation3 + $0x8] sm:$0xff] %vm717_vm1, %v714_v45 }
 0x2f0   : > { %v876_v37 = vld [vmem:[#allocation3] sm:$0xff] (!%p1047_p6) }
 0x2f2   : > { %v734_v0 = vpop.permute.xlu0 %733 }
 0x2f3   : > { %v747_v5 = vmul.f32 %v734_v0, %v723_v56 }
 0x2f4   : > { %v877_v40 = vld [vmem:[#allocation3 + $0x8] sm:$0xff] (!%p1047_p6) }
 0x31b   : > { %v707_v17 = vpop.xlane.xlu1 %706 }
 0x31c   : > { %v715_v48 = vadd.f32 %v707_v17, %v691_v16 }
 0x31e   : > { %720 = vst.msk [vmem:[#allocation3 + $0x10] sm:$0xff] %vm717_vm1, %v715_v48 }
 0x31f   : > { %v712_v18 = vpop.xlane.xlu1 %711 }
 0x320   : > { %v716_v50 = vadd.f32 %v712_v18, %v692_v49 }
 0x322   : > { %721 = vst.msk [vmem:[#allocation3 + $0x18] sm:$0xff] %vm717_vm1, %v716_v50 }
 0x323   : > { %v744_v30 = vpop.permute.xlu1 %743 }
 0x324   : > { %v749_v9 = vmul.f32 %v744_v30, %v725_v29 }
 0x325   : > { %v878_v36 = vld [vmem:[#allocation3 + $0x10] sm:$0xff] (!%p1047_p6) }
 0x326   : > { %1273 = vrcp.f32 (!%p1047_p6), %v878_v36 }
 0x327   : > { %1275 = vrcp.f32 (!%p1047_p6), %v876_v37 }
 0x329   : > { %v879_v38 = vld [vmem:[#allocation3 + $0x18] sm:$0xff] (!%p1047_p6) }
 0x32a   : > { %1277 = vrcp.f32 (!%p1047_p6), %v879_v38 }
 0x32b   : > { %1279 = vrcp.f32 (!%p1047_p6), %v877_v40 }
 0x32d   : > { %v1127_v51 = vpop.f32.mrb[8].mxu0 }
 0x32e   : > { %v1128_v52 = vpop.f32.mrb[9].mxu0 }
 0x32f   : > { %v1155_v53 = vpop.f32.mrb[8].mxu1  ;;  %v1129_v54 = vadd.f32 %v1128_v52, %v1127_v51  ;;  %v1130_v58 = vpop.f32.mrb[10].mxu0 }
 0x330   : > { %v1156_v61 = vpop.f32.mrb[9].mxu1  ;;  %v1131_v62 = vpop.f32.mrb[11].mxu0 }
 0x331   : > { %v1157_v63 = vadd.f32 %v1156_v61, %v1155_v53  ;;  %v1158_v55 = vpop.f32.mrb[10].mxu1  ;;  %v1132_v57 = vadd.f32 %v1131_v62, %v1130_v58  ;;  %v1274_v41 = vpop.eup (!%p1047_p6), %1273 }
 0x332   : > { %v1159_v59 = vpop.f32.mrb[11].mxu1  ;;  %v1276_v4 = vpop.eup (!%p1047_p6), %1275  ;;  %896 = vperm.xlu1 (!%p1047_p6), %1272, %v1274_v41  }
 0x333   : > { %v842_v2 = vadd.f32 %v1157_v63, %v1129_v54  ;;  %v1160_v3 = vadd.f32 %v1159_v59, %v1158_v55  ;;  %886 = vperm.xlu0 (!%p1047_p6), %1271, %v1276_v4  }
 0x334   : > { %v1278_v8 = vpop.eup (!%p1047_p6), %1277 }
 0x335   : > { %v856_v6 = vadd.f32 %v842_v2, %v746_v1  ;;  %v845_v7 = vadd.f32 %v1160_v3, %v1132_v57  ;;  %v1133_v11 = vpop.f32.mrb[12].mxu0  ;;  %v1280_v10 = vpop.eup (!%p1047_p6), %1279 }
 0x336   : > { %v1134_v15 = vpop.f32.mrb[13].mxu0  ;;  %901 = vperm.xlu1 (!%p1047_p6), %1272, %v1278_v8  }
 0x337   : > { %860 = vst [vmem:[#allocation4] sm:$0xff] %v856_v6  ;;  %v857_v19 = vadd.f32 %v845_v7, %v747_v5  ;;  %v1161_v20 = vpop.f32.mrb[12].mxu1  ;;  %v1135_v21 = vadd.f32 %v1134_v15, %v1133_v11  ;;  %v1136_v22 = vpop.f32.mrb[14].mxu0  ;;  %891 = vperm.xlu0 (!%p1047_p6), %1271, %v1280_v10  }
 0x338   : > { %v1162_v24 = vpop.f32.mrb[13].mxu1  ;;  %v1137_v25 = vpop.f32.mrb[15].mxu0 }
 0x339   : > { %861 = vst [vmem:[#allocation4 + $0x8] sm:$0xff] %v857_v19  ;;  %v1163_v26 = vadd.f32 %v1162_v24, %v1161_v20  ;;  %v1164_v27 = vpop.f32.mrb[14].mxu1  ;;  %v1138_v28 = vadd.f32 %v1137_v25, %v1136_v22 }
 0x33a   : > { %v1165_v31 = vpop.f32.mrb[15].mxu1 }
 0x33b   : > { %v850_v33 = vadd.f32 %v1163_v26, %v1135_v21  ;;  %v1166_v34 = vadd.f32 %v1165_v31, %v1164_v27  ;;  %871 = sbr.rel (%p1047_p6) target bundleno = 956 (0x3bc), region = 36 }
 0x33d   : > { %v858_v12 = vadd.f32 %v850_v33, %v748_v32  ;;  %v853_v14 = vadd.f32 %v1166_v34, %v1138_v28 }
 0x33e   : > { %v872_v46 = vld [vmem:[#allocation4] sm:$0xff] (!%p1047_p6) }
 0x33f   : > { %862 = vst [vmem:[#allocation4 + $0x10] sm:$0xff] %v858_v12  ;;  %v859_v35 = vadd.f32 %v853_v14, %v749_v9 }
 0x340   : > { %v873_v13 = vld [vmem:[#allocation4 + $0x8] sm:$0xff] (!%p1047_p6) }
 0x341   : > { %863 = vst [vmem:[#allocation4 + $0x18] sm:$0xff] %v859_v35 }
 0x346   : > { %v874_v44 = vld [vmem:[#allocation4 + $0x10] sm:$0xff] }
 0x348   : > { %v875_v45 = vld [vmem:[#allocation4 + $0x18] sm:$0xff] }
 0x3b1   : > { %v897_v42 = vpop.permute.xlu1 %896 }
 0x3b2   : > { %v887_v43 = vpop.permute.xlu0 %886  ;;  %v906_v17 = vmul.f32 %v897_v42, %v874_v44 }
 0x3b3   : > { %v904_v49 = vmul.f32 %v887_v43, %v872_v46 }
 0x3b5   : > { %v902_v16 = vpop.permute.xlu1 %901 }
 0x3b6   : > { %v907_v47 = vmul.f32 %v902_v16, %v875_v45  ;;  %v892_v48 = vpop.permute.xlu0 %891 }
 0x3b7   : > { %v905_v18 = vmul.f32 %v892_v48, %v873_v13 }
 0x3b8   : > { %v1068_v50 = vpack.c.bf16 %v907_v47, %v906_v17 }
 0x3b9   : > { %v1063_v51 = vpack.c.bf16 %v905_v18, %v904_v49 }
 0x3ba   : > { %1070 = vst [vmem:[%s1575_s2 + $0x8] sm:$0xff] %v1068_v50  }
 0x3bb   : > { %1064 = vst [vmem:[%s1575_s2] sm:$0xff] %v1063_v51  }
 0x3bc PF: > { %s12_s11 = sadd.s32 1, %s1303_s11   ;;  %s1576_s9 = smov %s1299_s10 }
 0x3bd   : > { %p9_p7 = scmp.ge.s32.totalorder %s12_s11, 4   ;;  %s1577_s10 = smov %s1579_s12 }
 0x3bf   :  { %11 = sbr.rel (!%p9_p7) target bundleno = 2 (0x2), region = 69 }

</bundles_post_ra>
